<compile_context>
chip_gen: v5e
topology: v5e:2x2
jax: 0.10.0
libtpu: 0.0.40
codegen_flags: <defaults>
</compile_context>

<pallas_src>
import math

import jax
import jax.numpy as jnp
from jax.experimental import pallas as pl
from jax.experimental.pallas import tpu as pltpu

# ------------- synthetic ChemBERTa config (small, same structure) ------------
VOCAB = 100
HIDDEN = 32
N_HEADS = 4
HEAD_DIM = HIDDEN // N_HEADS           # 8
N_LAYERS = 2
INTERMEDIATE = 64
MAX_POS = 40
PAD_IDX = 1                            # RoBERTa padding_idx
NUM_CLASSES = 3
LN_EPS = 1e-12
MASK_NEG = -1e9                        # additive attention bias for masked keys

# ------------------------------ TPU layout -----------------------------------
HP = 128                               # hidden padded to one full lane tile
QKV_COLS = 3 * HP                      # compact: one 128-lane band per Q/K/V
Q_OFF, K_OFF, V_OFF = 0, HP, 2 * HP    # heads live in 8-lane sub-slices

WEIGHT_DTYPE = jnp.bfloat16            # weight storage (halves HBM->VMEM bytes)
MXU_DTYPE = jnp.bfloat16               # MXU operand dtype; accumulation is f32

_SQRT1_2 = 1.0 / math.sqrt(2.0)


# --------------------------- in-kernel helpers --------------------------------
def _mm(a, b):
    return jnp.dot(a.astype(MXU_DTYPE), b.astype(MXU_DTYPE),
                   preferred_element_type=jnp.float32)


def _mm_nt(a, b):
    # a @ b.T expressed directly as dot_general ("NT" matmul, no transpose op)
    return jax.lax.dot_general(a.astype(MXU_DTYPE), b.astype(MXU_DTYPE),
                               (((1,), (1,)), ((), ())),
                               preferred_element_type=jnp.float32)


def _erf(x):
    # f32-accurate rational-exp erf approximation (|err| < 1.2e-7), built only
    # from exp/mul/add so it lowers cleanly in Mosaic.
    a = jnp.abs(x)
    t = 1.0 / (1.0 + 0.5 * a)
    poly = -1.26551223 + t * (1.00002368 + t * (0.37409196 + t * (0.09678418 +
           t * (-0.18628806 + t * (0.27886807 + t * (-1.13520398 + t * (
           1.48851587 + t * (-0.82215223 + t * 0.17087277))))))))
    y = t * jnp.exp(-a * a + poly)
    return jnp.where(x >= 0.0, 1.0 - y, y - 1.0)


def _gelu_erf(x):
    # exact (erf-based) GELU, matching torch.nn.functional.gelu default
    return 0.5 * x * (1.0 + _erf(x * _SQRT1_2))


def _layernorm_pad(x, gamma, beta):
    # LayerNorm over the first HIDDEN lanes of a 128-lane-padded activation.
    # Padded lanes of x are zero; gamma/beta are zero-padded so padded output
    # lanes stay exactly zero.
    lane = jax.lax.broadcasted_iota(jnp.int32, x.shape, 1)
    valid = lane < HIDDEN
    mean = jnp.sum(x, axis=-1, keepdims=True) * (1.0 / HIDDEN)
    c = jnp.where(valid, x - mean, 0.0)
    var = jnp.sum(c * c, axis=-1, keepdims=True) * (1.0 / HIDDEN)
    return c * jax.lax.rsqrt(var + LN_EPS) * gamma + beta


# ------------------------------ fused kernel ----------------------------------
def _model_kernel(emb_ref, mask_ref, qkvw_ref, qkvb_ref, aow_ref, fcw_ref,
                  lvec_ref, hmat_ref, hvec_ref, out_ref):
    """Whole post-embedding model in one invocation (layers unrolled)."""
    hv = hvec_ref[...]                            # [8, HP] global vectors
    mask = mask_ref[...]                          # [bs, bs] additive bias

    # Embedding LayerNorm.
    h = _layernorm_pad(emb_ref[...], hv[0:1, :], hv[1:2, :])

    for layer in range(N_LAYERS):                 # fully unrolled (2 layers)
        lv = lvec_ref[layer]                      # [8, HP] per-layer vectors
        aow = aow_ref[layer]                      # [HP, HP] bf16
        fcw = fcw_ref[layer]                      # [2, HP, HP] bf16

        # Fused QKV projection (1/sqrt(head_dim) folded into q weights/bias).
        qkv = _mm(h, qkvw_ref[layer]) + qkvb_ref[layer]   # [bs, 3*HP] f32

        # Multi-head self-attention, batched over the batch dim per head.
        # Cross-batch and padded-key scores are removed by the additive mask;
        # the per-head output projection is fused into the loop.
        attn = None
        for hd in range(N_HEADS):
            c0 = hd * HEAD_DIM
            q = qkv[:, Q_OFF + c0:Q_OFF + c0 + HEAD_DIM]
            k = qkv[:, K_OFF + c0:K_OFF + c0 + HEAD_DIM]
            v = qkv[:, V_OFF + c0:V_OFF + c0 + HEAD_DIM]
            s = _mm_nt(q, k) + mask               # [bs, bs]
            s = s - jnp.max(s, axis=-1, keepdims=True)
            p = jnp.exp(s)
            p = p * pl.reciprocal(jnp.sum(p, axis=-1, keepdims=True), approx=True)
            ctx = _mm(p, v)                       # [bs, HEAD_DIM]
            part = _mm(ctx, aow[c0:c0 + HEAD_DIM, :])     # [bs, HP]
            attn = part if attn is None else attn + part

        attn = attn + lv[0:1, :]                  # attention.output bias
        h = _layernorm_pad(attn + h, lv[1:2, :], lv[2:3, :])

        # Feed-forward: fc1 -> exact GELU -> fc2, residual + LayerNorm.
        ff = _gelu_erf(_mm(h, fcw[0]) + lv[3:4, :])
        ff = _mm(ff, fcw[1]) + lv[4:5, :]
        h = _layernorm_pad(ff + h, lv[5:6, :], lv[6:7, :])

    # Pooler (tanh) + classifier.  nn.Dropout(p=0.1) is identity at inference.
    # Run on all bs rows (same single MXU pass as 8 rows) and do ONE aligned
    # full-tile store; the wrapper slices the CLS rows / first NUM_CLASSES lanes.
    pooled = jnp.tanh(_mm(h, hmat_ref[0]) + hv[2:3, :])
    out_ref[...] = _mm(pooled, hmat_ref[1]) + hv[3:4, :]


def _fused_forward(emb_pad, mask_bias, packed, *, batch, seq):
    bs = batch * seq
    vmem = pl.BlockSpec(memory_space=pltpu.MemorySpace.VMEM)
    return pl.pallas_call(
        _model_kernel,
        out_shape=jax.ShapeDtypeStruct((bs, HP), jnp.float32),
        in_specs=[vmem] * 9,
        out_specs=vmem,
    )(emb_pad, mask_bias,
      packed["qkv_w"], packed["qkv_b"], packed["ao_w"], packed["fc_w"],
      packed["layer_vecs"], packed["head_mats"], packed["head_vecs"])


# ------------------------------ model (glue) ----------------------------------
def chemberta_classifier_forward(packed, input_ids, attention_mask):
    B_, S_ = input_ids.shape
    # RoBERTa create_position_ids_from_input_ids
    pad_mask = (input_ids != PAD_IDX).astype(jnp.int32)
    position_ids = jnp.cumsum(pad_mask, axis=1) * pad_mask + PAD_IDX
    # TODO(synk): the embedding gathers could be fused into the kernel via
    # scalar-prefetched row DMAs; left as thin XLA glue here.
    we = jnp.take(packed["word_emb"], input_ids, axis=0)        # [B,S,H]
    pe = jnp.take(packed["pos_emb"], position_ids, axis=0)      # [B,S,H]
    te = packed["type_emb"][0]                                  # token_type 0
    emb = (we + pe + te).reshape(B_ * S_, HIDDEN).astype(jnp.float32)
    emb_pad = jnp.pad(emb, ((0, 0), (0, HP - HIDDEN)))          # lane-pad to 128

    # Combined block-diagonal (same-batch) + key-padding additive bias [bs,bs].
    row_batch = jnp.repeat(jnp.arange(B_), S_)
    same_batch = row_batch[:, None] == row_batch[None, :]
    key_valid = (attention_mask.reshape(-1) != 0)[None, :]
    mask_bias = jnp.where(same_batch & key_valid, 0.0, MASK_NEG).astype(jnp.float32)

    out = _fused_forward(emb_pad, mask_bias, packed, batch=B_, seq=S_)
    return out[::S_, :NUM_CLASSES]                              # CLS rows -> logits


# --------------------------- parameter packing --------------------------------
def _pad_vec(v, width=HP):
    out = jnp.zeros((width,), jnp.float32)
    return out.at[:v.shape[0]].set(v)


def pack_params(params):
    """Pad / pack the PyTorch-layout params into compact lane-dense arrays."""
    scale = 1.0 / math.sqrt(HEAD_DIM)
    qkv_ws, qkv_bs, ao_ws, fc_ws, lvecs = [], [], [], [], []
    for lp in params["layers"]:
        qw = jnp.zeros((HP, QKV_COLS), jnp.float32)
        qw = qw.at[:HIDDEN, Q_OFF:Q_OFF + HIDDEN].set(lp["q_w"] * scale)
        qw = qw.at[:HIDDEN, K_OFF:K_OFF + HIDDEN].set(lp["k_w"])
        qw = qw.at[:HIDDEN, V_OFF:V_OFF + HIDDEN].set(lp["v_w"])
        qb = jnp.zeros((QKV_COLS,), jnp.float32)
        qb = qb.at[Q_OFF:Q_OFF + HIDDEN].set(lp["q_b"] * scale)
        qb = qb.at[K_OFF:K_OFF + HIDDEN].set(lp["k_b"])
        qb = qb.at[V_OFF:V_OFF + HIDDEN].set(lp["v_b"])
        aw = jnp.zeros((HP, HP), jnp.float32).at[:HIDDEN, :HIDDEN].set(lp["ao_w"])
        f1 = jnp.zeros((HP, HP), jnp.float32).at[:HIDDEN, :INTERMEDIATE].set(lp["fc1_w"])
        f2 = jnp.zeros((HP, HP), jnp.float32).at[:INTERMEDIATE, :HIDDEN].set(lp["fc2_w"])
        qkv_ws.append(qw)
        qkv_bs.append(qb.reshape(1, QKV_COLS))
        ao_ws.append(aw)
        fc_ws.append(jnp.stack([f1, f2]))
        lvecs.append(jnp.stack([
            _pad_vec(lp["ao_b"]), _pad_vec(lp["ln1_g"]), _pad_vec(lp["ln1_b"]),
            _pad_vec(lp["fc1_b"]), _pad_vec(lp["fc2_b"]),
            _pad_vec(lp["ln2_g"]), _pad_vec(lp["ln2_b"]),
            jnp.zeros((HP,), jnp.float32)]))

    pool_w = jnp.zeros((HP, HP), jnp.float32).at[:HIDDEN, :HIDDEN].set(params["pool_w"])
    cls_w = jnp.zeros((HP, HP), jnp.float32).at[:HIDDEN, :NUM_CLASSES].set(params["cls_w"])
    head_vecs = jnp.stack([
        _pad_vec(params["emb_ln_g"]), _pad_vec(params["emb_ln_b"]),
        _pad_vec(params["pool_b"]), _pad_vec(params["cls_b"])] +
        [jnp.zeros((HP,), jnp.float32)] * 4)

    return {
        "word_emb": params["word_emb"],
        "pos_emb": params["pos_emb"],
        "type_emb": params["type_emb"],
        "qkv_w": jnp.stack(qkv_ws).astype(WEIGHT_DTYPE),            # [L, HP, 384]
        "qkv_b": jnp.stack(qkv_bs),                                 # [L, 1, 384] f32
        "ao_w": jnp.stack(ao_ws).astype(WEIGHT_DTYPE),              # [L, HP, HP]
        "fc_w": jnp.stack(fc_ws).astype(WEIGHT_DTYPE),              # [L, 2, HP, HP]
        "layer_vecs": jnp.stack(lvecs),                             # [L, 8, HP] f32
        "head_mats": jnp.stack([pool_w, cls_w]).astype(WEIGHT_DTYPE),  # [2, HP, HP]
        "head_vecs": head_vecs,                                     # [8, HP] f32
    }


# ------------------------------ parameter init --------------------------------
def init_params(key):
    def nrm(k, shape, scale=0.02):
        return scale * jax.random.normal(k, shape, jnp.float32)

    keys = iter(jax.random.split(key, 16 + N_LAYERS * 16))
    params = {
        "word_emb": nrm(next(keys), (VOCAB, HIDDEN)),
        "pos_emb": nrm(next(keys), (MAX_POS, HIDDEN)),
        "type_emb": nrm(next(keys), (1, HIDDEN)),
        "emb_ln_g": jnp.ones((HIDDEN,), jnp.float32),
        "emb_ln_b": jnp.zeros((HIDDEN,), jnp.float32),
        "pool_w": nrm(next(keys), (HIDDEN, HIDDEN)),
        "pool_b": jnp.zeros((HIDDEN,), jnp.float32),
        "cls_w": nrm(next(keys), (HIDDEN, NUM_CLASSES)),
        "cls_b": jnp.zeros((NUM_CLASSES,), jnp.float32),
        "layers": [],
    }
    for _ in range(N_LAYERS):
        lp = {
            "q_w": nrm(next(keys), (HIDDEN, HIDDEN)),
            "q_b": jnp.zeros((HIDDEN,), jnp.float32),
            "k_w": nrm(next(keys), (HIDDEN, HIDDEN)),
            "k_b": jnp.zeros((HIDDEN,), jnp.float32),
            "v_w": nrm(next(keys), (HIDDEN, HIDDEN)),
            "v_b": jnp.zeros((HIDDEN,), jnp.float32),
            "ao_w": nrm(next(keys), (HIDDEN, HIDDEN)),
            "ao_b": jnp.zeros((HIDDEN,), jnp.float32),
            "ln1_g": jnp.ones((HIDDEN,), jnp.float32),
            "ln1_b": jnp.zeros((HIDDEN,), jnp.float32),
            "fc1_w": nrm(next(keys), (HIDDEN, INTERMEDIATE)),
            "fc1_b": jnp.zeros((INTERMEDIATE,), jnp.float32),
            "fc2_w": nrm(next(keys), (INTERMEDIATE, HIDDEN)),
            "fc2_b": jnp.zeros((HIDDEN,), jnp.float32),
            "ln2_g": jnp.ones((HIDDEN,), jnp.float32),
            "ln2_b": jnp.zeros((HIDDEN,), jnp.float32),
        }
        params["layers"].append(lp)
    return params


# ----------------------------------- main --------------------------------------
if __name__ == "__main__":
    B, S = 2, 8
    root = jax.random.PRNGKey(0)
    k_param, k_ids = jax.random.split(root)

    params = init_params(k_param)
    packed = pack_params(params)          # pack / pad / bf16-cast once, outside jit

    input_ids = jax.random.randint(k_ids, (B, S), 2, VOCAB, dtype=jnp.int32)
    attention_mask = jnp.array([[1, 1, 1, 1, 1, 1, 1, 1],
                                [1, 1, 1, 1, 1, 0, 0, 0]], dtype=jnp.int32)
    # masked positions are padding tokens
    input_ids = jnp.where(attention_mask == 1, input_ids, PAD_IDX)

    logits = jax.jit(chemberta_classifier_forward)(packed, input_ids, attention_mask)
    logits = jax.block_until_ready(logits)

    assert logits.shape == (B, NUM_CLASSES)
    assert bool(jnp.all(jnp.isfinite(logits)))
    print("KERNEL_OK")
</pallas_src>

<mosaic_0001>
module attributes {stable_mosaic.version = 11 : i64} {
  func.func @_model_kernel(%arg0: memref<16x128xf32, #tpu.memory_space<vmem>>, %arg1: memref<16x16xf32, #tpu.memory_space<vmem>>, %arg2: memref<2x128x384xbf16, #tpu.memory_space<vmem>>, %arg3: memref<2x1x384xf32, #tpu.memory_space<vmem>>, %arg4: memref<2x128x128xbf16, #tpu.memory_space<vmem>>, %arg5: memref<2x2x128x128xbf16, #tpu.memory_space<vmem>>, %arg6: memref<2x8x128xf32, #tpu.memory_space<vmem>>, %arg7: memref<2x128x128xbf16, #tpu.memory_space<vmem>>, %arg8: memref<8x128xf32, #tpu.memory_space<vmem>>, %arg9: memref<16x128xf32, #tpu.memory_space<vmem>>) attributes {dimension_semantics = [], scalar_prefetch = 0 : i64, scratch_operands = 0 : i64, tpu.core_type = #tpu.core_type<tc>} {
    %c0 = arith.constant 0 : index
    %c0_0 = arith.constant 0 : index
    %0 = vector.load %arg8[%c0, %c0_0] : memref<8x128xf32, #tpu.memory_space<vmem>>, vector<8x128xf32>
    %c0_1 = arith.constant 0 : index
    %c0_2 = arith.constant 0 : index
    %1 = vector.load %arg1[%c0_1, %c0_2] : memref<16x16xf32, #tpu.memory_space<vmem>>, vector<16x16xf32>
    %c0_3 = arith.constant 0 : index
    %c0_4 = arith.constant 0 : index
    %2 = vector.load %arg0[%c0_3, %c0_4] : memref<16x128xf32, #tpu.memory_space<vmem>>, vector<16x128xf32>
    %3 = vector.extract_strided_slice %0 {offsets = [0, 0], sizes = [1, 128], strides = [1, 1]} : vector<8x128xf32> to vector<1x128xf32>
    %4 = vector.extract_strided_slice %0 {offsets = [1, 0], sizes = [1, 128], strides = [1, 1]} : vector<8x128xf32> to vector<1x128xf32>
    %5 = tpu.iota {dimensions = array<i32: 1>} : vector<16x128xi32>
    %c32_i32 = arith.constant 32 : i32
    %6 = vector.broadcast %c32_i32 : i32 to vector<16x128xi32>
    %7 = arith.cmpi slt, %5, %6 : vector<16x128xi32>
    %cst = arith.constant dense<0.000000e+00> : vector<16xf32>
    %8 = vector.multi_reduction <add>, %2, %cst [1] : vector<16x128xf32> to vector<16xf32>
    %9 = vector.shape_cast %8 : vector<16xf32> to vector<16x1xf32>
    %cst_5 = arith.constant 3.125000e-02 : f32
    %10 = vector.broadcast %cst_5 : f32 to vector<16x1xf32>
    %11 = arith.mulf %9, %10 : vector<16x1xf32>
    %12 = vector.broadcast %11 : vector<16x1xf32> to vector<16x128xf32>
    %13 = arith.subf %2, %12 : vector<16x128xf32>
    %cst_6 = arith.constant 0.000000e+00 : f32
    %14 = vector.broadcast %cst_6 : f32 to vector<16x128xf32>
    %15 = arith.select %7, %13, %14 : vector<16x128xi1>, vector<16x128xf32>
    %16 = arith.mulf %15, %15 : vector<16x128xf32>
    %cst_7 = arith.constant dense<0.000000e+00> : vector<16xf32>
    %17 = vector.multi_reduction <add>, %16, %cst_7 [1] : vector<16x128xf32> to vector<16xf32>
    %18 = vector.shape_cast %17 : vector<16xf32> to vector<16x1xf32>
    %cst_8 = arith.constant 3.125000e-02 : f32
    %19 = vector.broadcast %cst_8 : f32 to vector<16x1xf32>
    %20 = arith.mulf %18, %19 : vector<16x1xf32>
    %cst_9 = arith.constant 9.99999996E-13 : f32
    %21 = vector.broadcast %cst_9 : f32 to vector<16x1xf32>
    %22 = arith.addf %20, %21 : vector<16x1xf32>
    %23 = math.rsqrt %22 : vector<16x1xf32>
    %24 = vector.broadcast %23 : vector<16x1xf32> to vector<16x128xf32>
    %25 = arith.mulf %15, %24 : vector<16x128xf32>
    %26 = vector.broadcast %3 : vector<1x128xf32> to vector<16x128xf32>
    %27 = arith.mulf %25, %26 : vector<16x128xf32>
    %28 = vector.broadcast %4 : vector<1x128xf32> to vector<16x128xf32>
    %29 = arith.addf %27, %28 : vector<16x128xf32>
    %c0_10 = arith.constant 0 : index
    %c0_11 = arith.constant 0 : index
    %c0_12 = arith.constant 0 : index
    %30 = vector.load %arg6[%c0_10, %c0_11, %c0_12] : memref<2x8x128xf32, #tpu.memory_space<vmem>>, vector<1x8x128xf32>
    %31 = vector.shape_cast %30 : vector<1x8x128xf32> to vector<8x128xf32>
    %c0_13 = arith.constant 0 : index
    %c0_14 = arith.constant 0 : index
    %c0_15 = arith.constant 0 : index
    %32 = vector.load %arg4[%c0_13, %c0_14, %c0_15] : memref<2x128x128xbf16, #tpu.memory_space<vmem>>, vector<1x128x128xbf16>
    %33 = vector.shape_cast %32 : vector<1x128x128xbf16> to vector<128x128xbf16>
    %c0_16 = arith.constant 0 : index
    %c0_17 = arith.constant 0 : index
    %c0_18 = arith.constant 0 : index
    %c0_19 = arith.constant 0 : index
    %34 = vector.load %arg5[%c0_16, %c0_17, %c0_18, %c0_19] : memref<2x2x128x128xbf16, #tpu.memory_space<vmem>>, vector<1x2x128x128xbf16>
    %35 = vector.shape_cast %34 : vector<1x2x128x128xbf16> to vector<2x128x128xbf16>
    %c0_20 = arith.constant 0 : index
    %c0_21 = arith.constant 0 : index
    %c0_22 = arith.constant 0 : index
    %36 = vector.load %arg2[%c0_20, %c0_21, %c0_22] : memref<2x128x384xbf16, #tpu.memory_space<vmem>>, vector<1x128x384xbf16>
    %37 = vector.shape_cast %36 : vector<1x128x384xbf16> to vector<128x384xbf16>
    %38 = arith.truncf %29 : vector<16x128xf32> to vector<16x128xbf16>
    %cst_23 = arith.constant dense<0.000000e+00> : vector<16x384xf32>
    %39 = tpu.matmul %38, %37, %cst_23 {dimension_numbers = #tpu.dot_dimension_numbers<[1], [0], [0], [1], [0, 0, 1, 1], [], []>} : vector<16x128xbf16>, vector<128x384xbf16>, vector<16x384xf32> -> vector<16x384xf32>
    %c0_24 = arith.constant 0 : index
    %c0_25 = arith.constant 0 : index
    %c0_26 = arith.constant 0 : index
    %40 = vector.load %arg3[%c0_24, %c0_25, %c0_26] : memref<2x1x384xf32, #tpu.memory_space<vmem>>, vector<1x1x384xf32>
    %41 = vector.shape_cast %40 : vector<1x1x384xf32> to vector<1x384xf32>
    %42 = vector.broadcast %41 : vector<1x384xf32> to vector<16x384xf32>
    %43 = arith.addf %39, %42 : vector<16x384xf32>
    %44 = vector.extract_strided_slice %43 {offsets = [0, 0], sizes = [16, 8], strides = [1, 1]} : vector<16x384xf32> to vector<16x8xf32>
    %45 = vector.extract_strided_slice %43 {offsets = [0, 128], sizes = [16, 8], strides = [1, 1]} : vector<16x384xf32> to vector<16x8xf32>
    %46 = vector.extract_strided_slice %43 {offsets = [0, 256], sizes = [16, 8], strides = [1, 1]} : vector<16x384xf32> to vector<16x8xf32>
    %47 = arith.truncf %44 : vector<16x8xf32> to vector<16x8xbf16>
    %48 = arith.truncf %45 : vector<16x8xf32> to vector<16x8xbf16>
    %cst_27 = arith.constant dense<0.000000e+00> : vector<16x16xf32>
    %49 = tpu.matmul %47, %48, %cst_27 {dimension_numbers = #tpu.dot_dimension_numbers<[1], [1], [0], [0], [0, 0, 1, 0], [], []>} : vector<16x8xbf16>, vector<16x8xbf16>, vector<16x16xf32> -> vector<16x16xf32>
    %50 = arith.addf %49, %1 : vector<16x16xf32>
    %cst_28 = arith.constant dense<0xFF800000> : vector<16xf32>
    %51 = vector.multi_reduction <maximumf>, %50, %cst_28 [1] : vector<16x16xf32> to vector<16xf32>
    %52 = vector.shape_cast %51 : vector<16xf32> to vector<16x1xf32>
    %53 = vector.broadcast %52 : vector<16x1xf32> to vector<16x16xf32>
    %54 = arith.subf %50, %53 : vector<16x16xf32>
    %55 = math.exp %54 : vector<16x16xf32>
    %cst_29 = arith.constant dense<0.000000e+00> : vector<16xf32>
    %56 = vector.multi_reduction <add>, %55, %cst_29 [1] : vector<16x16xf32> to vector<16xf32>
    %57 = vector.shape_cast %56 : vector<16xf32> to vector<16x1xf32>
    %58 = tpu.reciprocal %57 {approx = true} : vector<16x1xf32> -> vector<16x1xf32>
    %59 = vector.broadcast %58 : vector<16x1xf32> to vector<16x16xf32>
    %60 = arith.mulf %55, %59 : vector<16x16xf32>
    %61 = arith.truncf %60 : vector<16x16xf32> to vector<16x16xbf16>
    %62 = arith.truncf %46 : vector<16x8xf32> to vector<16x8xbf16>
    %cst_30 = arith.constant dense<0.000000e+00> : vector<16x8xf32>
    %63 = tpu.matmul %61, %62, %cst_30 {dimension_numbers = #tpu.dot_dimension_numbers<[1], [0], [0], [1], [0, 0, 1, 1], [], []>} : vector<16x16xbf16>, vector<16x8xbf16>, vector<16x8xf32> -> vector<16x8xf32>
    %64 = vector.extract_strided_slice %33 {offsets = [0, 0], sizes = [8, 128], strides = [1, 1]} : vector<128x128xbf16> to vector<8x128xbf16>
    %65 = arith.truncf %63 : vector<16x8xf32> to vector<16x8xbf16>
    %cst_31 = arith.constant dense<0.000000e+00> : vector<16x128xf32>
    %66 = tpu.matmul %65, %64, %cst_31 {dimension_numbers = #tpu.dot_dimension_numbers<[1], [0], [0], [1], [0, 0, 1, 1], [], []>} : vector<16x8xbf16>, vector<8x128xbf16>, vector<16x128xf32> -> vector<16x128xf32>
    %67 = vector.extract_strided_slice %43 {offsets = [0, 8], sizes = [16, 8], strides = [1, 1]} : vector<16x384xf32> to vector<16x8xf32>
    %68 = vector.extract_strided_slice %43 {offsets = [0, 136], sizes = [16, 8], strides = [1, 1]} : vector<16x384xf32> to vector<16x8xf32>
    %69 = vector.extract_strided_slice %43 {offsets = [0, 264], sizes = [16, 8], strides = [1, 1]} : vector<16x384xf32> to vector<16x8xf32>
    %70 = arith.truncf %67 : vector<16x8xf32> to vector<16x8xbf16>
    %71 = arith.truncf %68 : vector<16x8xf32> to vector<16x8xbf16>
    %cst_32 = arith.constant dense<0.000000e+00> : vector<16x16xf32>
    %72 = tpu.matmul %70, %71, %cst_32 {dimension_numbers = #tpu.dot_dimension_numbers<[1], [1], [0], [0], [0, 0, 1, 0], [], []>} : vector<16x8xbf16>, vector<16x8xbf16>, vector<16x16xf32> -> vector<16x16xf32>
    %73 = arith.addf %72, %1 : vector<16x16xf32>
    %cst_33 = arith.constant dense<0xFF800000> : vector<16xf32>
    %74 = vector.multi_reduction <maximumf>, %73, %cst_33 [1] : vector<16x16xf32> to vector<16xf32>
    %75 = vector.shape_cast %74 : vector<16xf32> to vector<16x1xf32>
    %76 = vector.broadcast %75 : vector<16x1xf32> to vector<16x16xf32>
    %77 = arith.subf %73, %76 : vector<16x16xf32>
    %78 = math.exp %77 : vector<16x16xf32>
    %cst_34 = arith.constant dense<0.000000e+00> : vector<16xf32>
    %79 = vector.multi_reduction <add>, %78, %cst_34 [1] : vector<16x16xf32> to vector<16xf32>
    %80 = vector.shape_cast %79 : vector<16xf32> to vector<16x1xf32>
    %81 = tpu.reciprocal %80 {approx = true} : vector<16x1xf32> -> vector<16x1xf32>
    %82 = vector.broadcast %81 : vector<16x1xf32> to vector<16x16xf32>
    %83 = arith.mulf %78, %82 : vector<16x16xf32>
    %84 = arith.truncf %83 : vector<16x16xf32> to vector<16x16xbf16>
    %85 = arith.truncf %69 : vector<16x8xf32> to vector<16x8xbf16>
    %cst_35 = arith.constant dense<0.000000e+00> : vector<16x8xf32>
    %86 = tpu.matmul %84, %85, %cst_35 {dimension_numbers = #tpu.dot_dimension_numbers<[1], [0], [0], [1], [0, 0, 1, 1], [], []>} : vector<16x16xbf16>, vector<16x8xbf16>, vector<16x8xf32> -> vector<16x8xf32>
    %87 = vector.extract_strided_slice %33 {offsets = [8, 0], sizes = [8, 128], strides = [1, 1]} : vector<128x128xbf16> to vector<8x128xbf16>
    %88 = arith.truncf %86 : vector<16x8xf32> to vector<16x8xbf16>
    %cst_36 = arith.constant dense<0.000000e+00> : vector<16x128xf32>
    %89 = tpu.matmul %88, %87, %cst_36 {dimension_numbers = #tpu.dot_dimension_numbers<[1], [0], [0], [1], [0, 0, 1, 1], [], []>} : vector<16x8xbf16>, vector<8x128xbf16>, vector<16x128xf32> -> vector<16x128xf32>
    %90 = arith.addf %66, %89 : vector<16x128xf32>
    %91 = vector.extract_strided_slice %43 {offsets = [0, 16], sizes = [16, 8], strides = [1, 1]} : vector<16x384xf32> to vector<16x8xf32>
    %92 = vector.extract_strided_slice %43 {offsets = [0, 144], sizes = [16, 8], strides = [1, 1]} : vector<16x384xf32> to vector<16x8xf32>
    %93 = vector.extract_strided_slice %43 {offsets = [0, 272], sizes = [16, 8], strides = [1, 1]} : vector<16x384xf32> to vector<16x8xf32>
    %94 = arith.truncf %91 : vector<16x8xf32> to vector<16x8xbf16>
    %95 = arith.truncf %92 : vector<16x8xf32> to vector<16x8xbf16>
    %cst_37 = arith.constant dense<0.000000e+00> : vector<16x16xf32>
    %96 = tpu.matmul %94, %95, %cst_37 {dimension_numbers = #tpu.dot_dimension_numbers<[1], [1], [0], [0], [0, 0, 1, 0], [], []>} : vector<16x8xbf16>, vector<16x8xbf16>, vector<16x16xf32> -> vector<16x16xf32>
    %97 = arith.addf %96, %1 : vector<16x16xf32>
    %cst_38 = arith.constant dense<0xFF800000> : vector<16xf32>
    %98 = vector.multi_reduction <maximumf>, %97, %cst_38 [1] : vector<16x16xf32> to vector<16xf32>
    %99 = vector.shape_cast %98 : vector<16xf32> to vector<16x1xf32>
    %100 = vector.broadcast %99 : vector<16x1xf32> to vector<16x16xf32>
    %101 = arith.subf %97, %100 : vector<16x16xf32>
    %102 = math.exp %101 : vector<16x16xf32>
    %cst_39 = arith.constant dense<0.000000e+00> : vector<16xf32>
    %103 = vector.multi_reduction <add>, %102, %cst_39 [1] : vector<16x16xf32> to vector<16xf32>
    %104 = vector.shape_cast %103 : vector<16xf32> to vector<16x1xf32>
    %105 = tpu.reciprocal %104 {approx = true} : vector<16x1xf32> -> vector<16x1xf32>
    %106 = vector.broadcast %105 : vector<16x1xf32> to vector<16x16xf32>
    %107 = arith.mulf %102, %106 : vector<16x16xf32>
    %108 = arith.truncf %107 : vector<16x16xf32> to vector<16x16xbf16>
    %109 = arith.truncf %93 : vector<16x8xf32> to vector<16x8xbf16>
    %cst_40 = arith.constant dense<0.000000e+00> : vector<16x8xf32>
    %110 = tpu.matmul %108, %109, %cst_40 {dimension_numbers = #tpu.dot_dimension_numbers<[1], [0], [0], [1], [0, 0, 1, 1], [], []>} : vector<16x16xbf16>, vector<16x8xbf16>, vector<16x8xf32> -> vector<16x8xf32>
    %111 = vector.extract_strided_slice %33 {offsets = [16, 0], sizes = [8, 128], strides = [1, 1]} : vector<128x128xbf16> to vector<8x128xbf16>
    %112 = arith.truncf %110 : vector<16x8xf32> to vector<16x8xbf16>
    %cst_41 = arith.constant dense<0.000000e+00> : vector<16x128xf32>
    %113 = tpu.matmul %112, %111, %cst_41 {dimension_numbers = #tpu.dot_dimension_numbers<[1], [0], [0], [1], [0, 0, 1, 1], [], []>} : vector<16x8xbf16>, vector<8x128xbf16>, vector<16x128xf32> -> vector<16x128xf32>
    %114 = arith.addf %90, %113 : vector<16x128xf32>
    %115 = vector.extract_strided_slice %43 {offsets = [0, 24], sizes = [16, 8], strides = [1, 1]} : vector<16x384xf32> to vector<16x8xf32>
    %116 = vector.extract_strided_slice %43 {offsets = [0, 152], sizes = [16, 8], strides = [1, 1]} : vector<16x384xf32> to vector<16x8xf32>
    %117 = vector.extract_strided_slice %43 {offsets = [0, 280], sizes = [16, 8], strides = [1, 1]} : vector<16x384xf32> to vector<16x8xf32>
    %118 = arith.truncf %115 : vector<16x8xf32> to vector<16x8xbf16>
    %119 = arith.truncf %116 : vector<16x8xf32> to vector<16x8xbf16>
    %cst_42 = arith.constant dense<0.000000e+00> : vector<16x16xf32>
    %120 = tpu.matmul %118, %119, %cst_42 {dimension_numbers = #tpu.dot_dimension_numbers<[1], [1], [0], [0], [0, 0, 1, 0], [], []>} : vector<16x8xbf16>, vector<16x8xbf16>, vector<16x16xf32> -> vector<16x16xf32>
    %121 = arith.addf %120, %1 : vector<16x16xf32>
    %cst_43 = arith.constant dense<0xFF800000> : vector<16xf32>
    %122 = vector.multi_reduction <maximumf>, %121, %cst_43 [1] : vector<16x16xf32> to vector<16xf32>
    %123 = vector.shape_cast %122 : vector<16xf32> to vector<16x1xf32>
    %124 = vector.broadcast %123 : vector<16x1xf32> to vector<16x16xf32>
    %125 = arith.subf %121, %124 : vector<16x16xf32>
    %126 = math.exp %125 : vector<16x16xf32>
    %cst_44 = arith.constant dense<0.000000e+00> : vector<16xf32>
    %127 = vector.multi_reduction <add>, %126, %cst_44 [1] : vector<16x16xf32> to vector<16xf32>
    %128 = vector.shape_cast %127 : vector<16xf32> to vector<16x1xf32>
    %129 = tpu.reciprocal %128 {approx = true} : vector<16x1xf32> -> vector<16x1xf32>
    %130 = vector.broadcast %129 : vector<16x1xf32> to vector<16x16xf32>
    %131 = arith.mulf %126, %130 : vector<16x16xf32>
    %132 = arith.truncf %131 : vector<16x16xf32> to vector<16x16xbf16>
    %133 = arith.truncf %117 : vector<16x8xf32> to vector<16x8xbf16>
    %cst_45 = arith.constant dense<0.000000e+00> : vector<16x8xf32>
    %134 = tpu.matmul %132, %133, %cst_45 {dimension_numbers = #tpu.dot_dimension_numbers<[1], [0], [0], [1], [0, 0, 1, 1], [], []>} : vector<16x16xbf16>, vector<16x8xbf16>, vector<16x8xf32> -> vector<16x8xf32>
    %135 = vector.extract_strided_slice %33 {offsets = [24, 0], sizes = [8, 128], strides = [1, 1]} : vector<128x128xbf16> to vector<8x128xbf16>
    %136 = arith.truncf %134 : vector<16x8xf32> to vector<16x8xbf16>
    %cst_46 = arith.constant dense<0.000000e+00> : vector<16x128xf32>
    %137 = tpu.matmul %136, %135, %cst_46 {dimension_numbers = #tpu.dot_dimension_numbers<[1], [0], [0], [1], [0, 0, 1, 1], [], []>} : vector<16x8xbf16>, vector<8x128xbf16>, vector<16x128xf32> -> vector<16x128xf32>
    %138 = arith.addf %114, %137 : vector<16x128xf32>
    %139 = vector.extract_strided_slice %31 {offsets = [0, 0], sizes = [1, 128], strides = [1, 1]} : vector<8x128xf32> to vector<1x128xf32>
    %140 = vector.broadcast %139 : vector<1x128xf32> to vector<16x128xf32>
    %141 = arith.addf %138, %140 : vector<16x128xf32>
    %142 = arith.addf %141, %29 : vector<16x128xf32>
    %143 = vector.extract_strided_slice %31 {offsets = [1, 0], sizes = [1, 128], strides = [1, 1]} : vector<8x128xf32> to vector<1x128xf32>
    %144 = vector.extract_strided_slice %31 {offsets = [2, 0], sizes = [1, 128], strides = [1, 1]} : vector<8x128xf32> to vector<1x128xf32>
    %145 = tpu.iota {dimensions = array<i32: 1>} : vector<16x128xi32>
    %c32_i32_47 = arith.constant 32 : i32
    %146 = vector.broadcast %c32_i32_47 : i32 to vector<16x128xi32>
    %147 = arith.cmpi slt, %145, %146 : vector<16x128xi32>
    %cst_48 = arith.constant dense<0.000000e+00> : vector<16xf32>
    %148 = vector.multi_reduction <add>, %142, %cst_48 [1] : vector<16x128xf32> to vector<16xf32>
    %149 = vector.shape_cast %148 : vector<16xf32> to vector<16x1xf32>
    %cst_49 = arith.constant 3.125000e-02 : f32
    %150 = vector.broadcast %cst_49 : f32 to vector<16x1xf32>
    %151 = arith.mulf %149, %150 : vector<16x1xf32>
    %152 = vector.broadcast %151 : vector<16x1xf32> to vector<16x128xf32>
    %153 = arith.subf %142, %152 : vector<16x128xf32>
    %cst_50 = arith.constant 0.000000e+00 : f32
    %154 = vector.broadcast %cst_50 : f32 to vector<16x128xf32>
    %155 = arith.select %147, %153, %154 : vector<16x128xi1>, vector<16x128xf32>
    %156 = arith.mulf %155, %155 : vector<16x128xf32>
    %cst_51 = arith.constant dense<0.000000e+00> : vector<16xf32>
    %157 = vector.multi_reduction <add>, %156, %cst_51 [1] : vector<16x128xf32> to vector<16xf32>
    %158 = vector.shape_cast %157 : vector<16xf32> to vector<16x1xf32>
    %cst_52 = arith.constant 3.125000e-02 : f32
    %159 = vector.broadcast %cst_52 : f32 to vector<16x1xf32>
    %160 = arith.mulf %158, %159 : vector<16x1xf32>
    %cst_53 = arith.constant 9.99999996E-13 : f32
    %161 = vector.broadcast %cst_53 : f32 to vector<16x1xf32>
    %162 = arith.addf %160, %161 : vector<16x1xf32>
    %163 = math.rsqrt %162 : vector<16x1xf32>
    %164 = vector.broadcast %163 : vector<16x1xf32> to vector<16x128xf32>
    %165 = arith.mulf %155, %164 : vector<16x128xf32>
    %166 = vector.broadcast %143 : vector<1x128xf32> to vector<16x128xf32>
    %167 = arith.mulf %165, %166 : vector<16x128xf32>
    %168 = vector.broadcast %144 : vector<1x128xf32> to vector<16x128xf32>
    %169 = arith.addf %167, %168 : vector<16x128xf32>
    %170 = vector.extract_strided_slice %35 {offsets = [0, 0, 0], sizes = [1, 128, 128], strides = [1, 1, 1]} : vector<2x128x128xbf16> to vector<1x128x128xbf16>
    %171 = vector.shape_cast %170 : vector<1x128x128xbf16> to vector<128x128xbf16>
    %172 = arith.truncf %169 : vector<16x128xf32> to vector<16x128xbf16>
    %cst_54 = arith.constant dense<0.000000e+00> : vector<16x128xf32>
    %173 = tpu.matmul %172, %171, %cst_54 {dimension_numbers = #tpu.dot_dimension_numbers<[1], [0], [0], [1], [0, 0, 1, 1], [], []>} : vector<16x128xbf16>, vector<128x128xbf16>, vector<16x128xf32> -> vector<16x128xf32>
    %174 = vector.extract_strided_slice %31 {offsets = [3, 0], sizes = [1, 128], strides = [1, 1]} : vector<8x128xf32> to vector<1x128xf32>
    %175 = vector.broadcast %174 : vector<1x128xf32> to vector<16x128xf32>
    %176 = arith.addf %173, %175 : vector<16x128xf32>
    %cst_55 = arith.constant 5.000000e-01 : f32
    %177 = vector.broadcast %cst_55 : f32 to vector<16x128xf32>
    %178 = arith.mulf %177, %176 : vector<16x128xf32>
    %cst_56 = arith.constant 0.707106769 : f32
    %179 = vector.broadcast %cst_56 : f32 to vector<16x128xf32>
    %180 = arith.mulf %176, %179 : vector<16x128xf32>
    %181 = math.absf %180 : vector<16x128xf32>
    %cst_57 = arith.constant 5.000000e-01 : f32
    %182 = vector.broadcast %cst_57 : f32 to vector<16x128xf32>
    %183 = arith.mulf %182, %181 : vector<16x128xf32>
    %cst_58 = arith.constant 1.000000e+00 : f32
    %184 = vector.broadcast %cst_58 : f32 to vector<16x128xf32>
    %185 = arith.addf %184, %183 : vector<16x128xf32>
    %cst_59 = arith.constant 1.000000e+00 : f32
    %186 = vector.broadcast %cst_59 : f32 to vector<16x128xf32>
    %187 = arith.divf %186, %185 : vector<16x128xf32>
    %cst_60 = arith.constant 0.170872763 : f32
    %188 = vector.broadcast %cst_60 : f32 to vector<16x128xf32>
    %189 = arith.mulf %187, %188 : vector<16x128xf32>
    %cst_61 = arith.constant -0.822152256 : f32
    %190 = vector.broadcast %cst_61 : f32 to vector<16x128xf32>
    %191 = arith.addf %190, %189 : vector<16x128xf32>
    %192 = arith.mulf %187, %191 : vector<16x128xf32>
    %cst_62 = arith.constant 1.48851585 : f32
    %193 = vector.broadcast %cst_62 : f32 to vector<16x128xf32>
    %194 = arith.addf %193, %192 : vector<16x128xf32>
    %195 = arith.mulf %187, %194 : vector<16x128xf32>
    %cst_63 = arith.constant -1.13520396 : f32
    %196 = vector.broadcast %cst_63 : f32 to vector<16x128xf32>
    %197 = arith.addf %196, %195 : vector<16x128xf32>
    %198 = arith.mulf %187, %197 : vector<16x128xf32>
    %cst_64 = arith.constant 0.278868079 : f32
    %199 = vector.broadcast %cst_64 : f32 to vector<16x128xf32>
    %200 = arith.addf %199, %198 : vector<16x128xf32>
    %201 = arith.mulf %187, %200 : vector<16x128xf32>
    %cst_65 = arith.constant -0.186288059 : f32
    %202 = vector.broadcast %cst_65 : f32 to vector<16x128xf32>
    %203 = arith.addf %202, %201 : vector<16x128xf32>
    %204 = arith.mulf %187, %203 : vector<16x128xf32>
    %cst_66 = arith.constant 0.0967841818 : f32
    %205 = vector.broadcast %cst_66 : f32 to vector<16x128xf32>
    %206 = arith.addf %205, %204 : vector<16x128xf32>
    %207 = arith.mulf %187, %206 : vector<16x128xf32>
    %cst_67 = arith.constant 0.374091953 : f32
    %208 = vector.broadcast %cst_67 : f32 to vector<16x128xf32>
    %209 = arith.addf %208, %207 : vector<16x128xf32>
    %210 = arith.mulf %187, %209 : vector<16x128xf32>
    %cst_68 = arith.constant 1.00002372 : f32
    %211 = vector.broadcast %cst_68 : f32 to vector<16x128xf32>
    %212 = arith.addf %211, %210 : vector<16x128xf32>
    %213 = arith.mulf %187, %212 : vector<16x128xf32>
    %cst_69 = arith.constant -1.26551223 : f32
    %214 = vector.broadcast %cst_69 : f32 to vector<16x128xf32>
    %215 = arith.addf %214, %213 : vector<16x128xf32>
    %cst_70 = arith.constant 0.000000e+00 : f32
    %216 = vector.broadcast %cst_70 : f32 to vector<16x128xf32>
    %217 = arith.subf %216, %181 : vector<16x128xf32>
    %218 = arith.mulf %217, %181 : vector<16x128xf32>
    %219 = arith.addf %218, %215 : vector<16x128xf32>
    %220 = math.exp %219 : vector<16x128xf32>
    %221 = arith.mulf %187, %220 : vector<16x128xf32>
    %cst_71 = arith.constant 0.000000e+00 : f32
    %222 = vector.broadcast %cst_71 : f32 to vector<16x128xf32>
    %223 = arith.cmpf oge, %180, %222 : vector<16x128xf32>
    %cst_72 = arith.constant 1.000000e+00 : f32
    %224 = vector.broadcast %cst_72 : f32 to vector<16x128xf32>
    %225 = arith.subf %224, %221 : vector<16x128xf32>
    %cst_73 = arith.constant 1.000000e+00 : f32
    %226 = vector.broadcast %cst_73 : f32 to vector<16x128xf32>
    %227 = arith.subf %221, %226 : vector<16x128xf32>
    %228 = arith.select %223, %225, %227 : vector<16x128xi1>, vector<16x128xf32>
    %cst_74 = arith.constant 1.000000e+00 : f32
    %229 = vector.broadcast %cst_74 : f32 to vector<16x128xf32>
    %230 = arith.addf %229, %228 : vector<16x128xf32>
    %231 = arith.mulf %178, %230 : vector<16x128xf32>
    %232 = vector.extract_strided_slice %35 {offsets = [1, 0, 0], sizes = [1, 128, 128], strides = [1, 1, 1]} : vector<2x128x128xbf16> to vector<1x128x128xbf16>
    %233 = vector.shape_cast %232 : vector<1x128x128xbf16> to vector<128x128xbf16>
    %234 = arith.truncf %231 : vector<16x128xf32> to vector<16x128xbf16>
    %cst_75 = arith.constant dense<0.000000e+00> : vector<16x128xf32>
    %235 = tpu.matmul %234, %233, %cst_75 {dimension_numbers = #tpu.dot_dimension_numbers<[1], [0], [0], [1], [0, 0, 1, 1], [], []>} : vector<16x128xbf16>, vector<128x128xbf16>, vector<16x128xf32> -> vector<16x128xf32>
    %236 = vector.extract_strided_slice %31 {offsets = [4, 0], sizes = [1, 128], strides = [1, 1]} : vector<8x128xf32> to vector<1x128xf32>
    %237 = vector.broadcast %236 : vector<1x128xf32> to vector<16x128xf32>
    %238 = arith.addf %235, %237 : vector<16x128xf32>
    %239 = arith.addf %238, %169 : vector<16x128xf32>
    %240 = vector.extract_strided_slice %31 {offsets = [5, 0], sizes = [1, 128], strides = [1, 1]} : vector<8x128xf32> to vector<1x128xf32>
    %241 = vector.extract_strided_slice %31 {offsets = [6, 0], sizes = [1, 128], strides = [1, 1]} : vector<8x128xf32> to vector<1x128xf32>
    %242 = tpu.iota {dimensions = array<i32: 1>} : vector<16x128xi32>
    %c32_i32_76 = arith.constant 32 : i32
    %243 = vector.broadcast %c32_i32_76 : i32 to vector<16x128xi32>
    %244 = arith.cmpi slt, %242, %243 : vector<16x128xi32>
    %cst_77 = arith.constant dense<0.000000e+00> : vector<16xf32>
    %245 = vector.multi_reduction <add>, %239, %cst_77 [1] : vector<16x128xf32> to vector<16xf32>
    %246 = vector.shape_cast %245 : vector<16xf32> to vector<16x1xf32>
    %cst_78 = arith.constant 3.125000e-02 : f32
    %247 = vector.broadcast %cst_78 : f32 to vector<16x1xf32>
    %248 = arith.mulf %246, %247 : vector<16x1xf32>
    %249 = vector.broadcast %248 : vector<16x1xf32> to vector<16x128xf32>
    %250 = arith.subf %239, %249 : vector<16x128xf32>
    %cst_79 = arith.constant 0.000000e+00 : f32
    %251 = vector.broadcast %cst_79 : f32 to vector<16x128xf32>
    %252 = arith.select %244, %250, %251 : vector<16x128xi1>, vector<16x128xf32>
    %253 = arith.mulf %252, %252 : vector<16x128xf32>
    %cst_80 = arith.constant dense<0.000000e+00> : vector<16xf32>
    %254 = vector.multi_reduction <add>, %253, %cst_80 [1] : vector<16x128xf32> to vector<16xf32>
    %255 = vector.shape_cast %254 : vector<16xf32> to vector<16x1xf32>
    %cst_81 = arith.constant 3.125000e-02 : f32
    %256 = vector.broadcast %cst_81 : f32 to vector<16x1xf32>
    %257 = arith.mulf %255, %256 : vector<16x1xf32>
    %cst_82 = arith.constant 9.99999996E-13 : f32
    %258 = vector.broadcast %cst_82 : f32 to vector<16x1xf32>
    %259 = arith.addf %257, %258 : vector<16x1xf32>
    %260 = math.rsqrt %259 : vector<16x1xf32>
    %261 = vector.broadcast %260 : vector<16x1xf32> to vector<16x128xf32>
    %262 = arith.mulf %252, %261 : vector<16x128xf32>
    %263 = vector.broadcast %240 : vector<1x128xf32> to vector<16x128xf32>
    %264 = arith.mulf %262, %263 : vector<16x128xf32>
    %265 = vector.broadcast %241 : vector<1x128xf32> to vector<16x128xf32>
    %266 = arith.addf %264, %265 : vector<16x128xf32>
    %c1 = arith.constant 1 : index
    %c0_83 = arith.constant 0 : index
    %c0_84 = arith.constant 0 : index
    %267 = vector.load %arg6[%c1, %c0_83, %c0_84] : memref<2x8x128xf32, #tpu.memory_space<vmem>>, vector<1x8x128xf32>
    %268 = vector.shape_cast %267 : vector<1x8x128xf32> to vector<8x128xf32>
    %c1_85 = arith.constant 1 : index
    %c0_86 = arith.constant 0 : index
    %c0_87 = arith.constant 0 : index
    %269 = vector.load %arg4[%c1_85, %c0_86, %c0_87] : memref<2x128x128xbf16, #tpu.memory_space<vmem>>, vector<1x128x128xbf16>
    %270 = vector.shape_cast %269 : vector<1x128x128xbf16> to vector<128x128xbf16>
    %c1_88 = arith.constant 1 : index
    %c0_89 = arith.constant 0 : index
    %c0_90 = arith.constant 0 : index
    %c0_91 = arith.constant 0 : index
    %271 = vector.load %arg5[%c1_88, %c0_89, %c0_90, %c0_91] : memref<2x2x128x128xbf16, #tpu.memory_space<vmem>>, vector<1x2x128x128xbf16>
    %272 = vector.shape_cast %271 : vector<1x2x128x128xbf16> to vector<2x128x128xbf16>
    %c1_92 = arith.constant 1 : index
    %c0_93 = arith.constant 0 : index
    %c0_94 = arith.constant 0 : index
    %273 = vector.load %arg2[%c1_92, %c0_93, %c0_94] : memref<2x128x384xbf16, #tpu.memory_space<vmem>>, vector<1x128x384xbf16>
    %274 = vector.shape_cast %273 : vector<1x128x384xbf16> to vector<128x384xbf16>
    %275 = arith.truncf %266 : vector<16x128xf32> to vector<16x128xbf16>
    %cst_95 = arith.constant dense<0.000000e+00> : vector<16x384xf32>
    %276 = tpu.matmul %275, %274, %cst_95 {dimension_numbers = #tpu.dot_dimension_numbers<[1], [0], [0], [1], [0, 0, 1, 1], [], []>} : vector<16x128xbf16>, vector<128x384xbf16>, vector<16x384xf32> -> vector<16x384xf32>
    %c1_96 = arith.constant 1 : index
    %c0_97 = arith.constant 0 : index
    %c0_98 = arith.constant 0 : index
    %277 = vector.load %arg3[%c1_96, %c0_97, %c0_98] : memref<2x1x384xf32, #tpu.memory_space<vmem>>, vector<1x1x384xf32>
    %278 = vector.shape_cast %277 : vector<1x1x384xf32> to vector<1x384xf32>
    %279 = vector.broadcast %278 : vector<1x384xf32> to vector<16x384xf32>
    %280 = arith.addf %276, %279 : vector<16x384xf32>
    %281 = vector.extract_strided_slice %280 {offsets = [0, 0], sizes = [16, 8], strides = [1, 1]} : vector<16x384xf32> to vector<16x8xf32>
    %282 = vector.extract_strided_slice %280 {offsets = [0, 128], sizes = [16, 8], strides = [1, 1]} : vector<16x384xf32> to vector<16x8xf32>
    %283 = vector.extract_strided_slice %280 {offsets = [0, 256], sizes = [16, 8], strides = [1, 1]} : vector<16x384xf32> to vector<16x8xf32>
    %284 = arith.truncf %281 : vector<16x8xf32> to vector<16x8xbf16>
    %285 = arith.truncf %282 : vector<16x8xf32> to vector<16x8xbf16>
    %cst_99 = arith.constant dense<0.000000e+00> : vector<16x16xf32>
    %286 = tpu.matmul %284, %285, %cst_99 {dimension_numbers = #tpu.dot_dimension_numbers<[1], [1], [0], [0], [0, 0, 1, 0], [], []>} : vector<16x8xbf16>, vector<16x8xbf16>, vector<16x16xf32> -> vector<16x16xf32>
    %287 = arith.addf %286, %1 : vector<16x16xf32>
    %cst_100 = arith.constant dense<0xFF800000> : vector<16xf32>
    %288 = vector.multi_reduction <maximumf>, %287, %cst_100 [1] : vector<16x16xf32> to vector<16xf32>
    %289 = vector.shape_cast %288 : vector<16xf32> to vector<16x1xf32>
    %290 = vector.broadcast %289 : vector<16x1xf32> to vector<16x16xf32>
    %291 = arith.subf %287, %290 : vector<16x16xf32>
    %292 = math.exp %291 : vector<16x16xf32>
    %cst_101 = arith.constant dense<0.000000e+00> : vector<16xf32>
    %293 = vector.multi_reduction <add>, %292, %cst_101 [1] : vector<16x16xf32> to vector<16xf32>
    %294 = vector.shape_cast %293 : vector<16xf32> to vector<16x1xf32>
    %295 = tpu.reciprocal %294 {approx = true} : vector<16x1xf32> -> vector<16x1xf32>
    %296 = vector.broadcast %295 : vector<16x1xf32> to vector<16x16xf32>
    %297 = arith.mulf %292, %296 : vector<16x16xf32>
    %298 = arith.truncf %297 : vector<16x16xf32> to vector<16x16xbf16>
    %299 = arith.truncf %283 : vector<16x8xf32> to vector<16x8xbf16>
    %cst_102 = arith.constant dense<0.000000e+00> : vector<16x8xf32>
    %300 = tpu.matmul %298, %299, %cst_102 {dimension_numbers = #tpu.dot_dimension_numbers<[1], [0], [0], [1], [0, 0, 1, 1], [], []>} : vector<16x16xbf16>, vector<16x8xbf16>, vector<16x8xf32> -> vector<16x8xf32>
    %301 = vector.extract_strided_slice %270 {offsets = [0, 0], sizes = [8, 128], strides = [1, 1]} : vector<128x128xbf16> to vector<8x128xbf16>
    %302 = arith.truncf %300 : vector<16x8xf32> to vector<16x8xbf16>
    %cst_103 = arith.constant dense<0.000000e+00> : vector<16x128xf32>
    %303 = tpu.matmul %302, %301, %cst_103 {dimension_numbers = #tpu.dot_dimension_numbers<[1], [0], [0], [1], [0, 0, 1, 1], [], []>} : vector<16x8xbf16>, vector<8x128xbf16>, vector<16x128xf32> -> vector<16x128xf32>
    %304 = vector.extract_strided_slice %280 {offsets = [0, 8], sizes = [16, 8], strides = [1, 1]} : vector<16x384xf32> to vector<16x8xf32>
    %305 = vector.extract_strided_slice %280 {offsets = [0, 136], sizes = [16, 8], strides = [1, 1]} : vector<16x384xf32> to vector<16x8xf32>
    %306 = vector.extract_strided_slice %280 {offsets = [0, 264], sizes = [16, 8], strides = [1, 1]} : vector<16x384xf32> to vector<16x8xf32>
    %307 = arith.truncf %304 : vector<16x8xf32> to vector<16x8xbf16>
    %308 = arith.truncf %305 : vector<16x8xf32> to vector<16x8xbf16>
    %cst_104 = arith.constant dense<0.000000e+00> : vector<16x16xf32>
    %309 = tpu.matmul %307, %308, %cst_104 {dimension_numbers = #tpu.dot_dimension_numbers<[1], [1], [0], [0], [0, 0, 1, 0], [], []>} : vector<16x8xbf16>, vector<16x8xbf16>, vector<16x16xf32> -> vector<16x16xf32>
    %310 = arith.addf %309, %1 : vector<16x16xf32>
    %cst_105 = arith.constant dense<0xFF800000> : vector<16xf32>
    %311 = vector.multi_reduction <maximumf>, %310, %cst_105 [1] : vector<16x16xf32> to vector<16xf32>
    %312 = vector.shape_cast %311 : vector<16xf32> to vector<16x1xf32>
    %313 = vector.broadcast %312 : vector<16x1xf32> to vector<16x16xf32>
    %314 = arith.subf %310, %313 : vector<16x16xf32>
    %315 = math.exp %314 : vector<16x16xf32>
    %cst_106 = arith.constant dense<0.000000e+00> : vector<16xf32>
    %316 = vector.multi_reduction <add>, %315, %cst_106 [1] : vector<16x16xf32> to vector<16xf32>
    %317 = vector.shape_cast %316 : vector<16xf32> to vector<16x1xf32>
    %318 = tpu.reciprocal %317 {approx = true} : vector<16x1xf32> -> vector<16x1xf32>
    %319 = vector.broadcast %318 : vector<16x1xf32> to vector<16x16xf32>
    %320 = arith.mulf %315, %319 : vector<16x16xf32>
    %321 = arith.truncf %320 : vector<16x16xf32> to vector<16x16xbf16>
    %322 = arith.truncf %306 : vector<16x8xf32> to vector<16x8xbf16>
    %cst_107 = arith.constant dense<0.000000e+00> : vector<16x8xf32>
    %323 = tpu.matmul %321, %322, %cst_107 {dimension_numbers = #tpu.dot_dimension_numbers<[1], [0], [0], [1], [0, 0, 1, 1], [], []>} : vector<16x16xbf16>, vector<16x8xbf16>, vector<16x8xf32> -> vector<16x8xf32>
    %324 = vector.extract_strided_slice %270 {offsets = [8, 0], sizes = [8, 128], strides = [1, 1]} : vector<128x128xbf16> to vector<8x128xbf16>
    %325 = arith.truncf %323 : vector<16x8xf32> to vector<16x8xbf16>
    %cst_108 = arith.constant dense<0.000000e+00> : vector<16x128xf32>
    %326 = tpu.matmul %325, %324, %cst_108 {dimension_numbers = #tpu.dot_dimension_numbers<[1], [0], [0], [1], [0, 0, 1, 1], [], []>} : vector<16x8xbf16>, vector<8x128xbf16>, vector<16x128xf32> -> vector<16x128xf32>
    %327 = arith.addf %303, %326 : vector<16x128xf32>
    %328 = vector.extract_strided_slice %280 {offsets = [0, 16], sizes = [16, 8], strides = [1, 1]} : vector<16x384xf32> to vector<16x8xf32>
    %329 = vector.extract_strided_slice %280 {offsets = [0, 144], sizes = [16, 8], strides = [1, 1]} : vector<16x384xf32> to vector<16x8xf32>
    %330 = vector.extract_strided_slice %280 {offsets = [0, 272], sizes = [16, 8], strides = [1, 1]} : vector<16x384xf32> to vector<16x8xf32>
    %331 = arith.truncf %328 : vector<16x8xf32> to vector<16x8xbf16>
    %332 = arith.truncf %329 : vector<16x8xf32> to vector<16x8xbf16>
    %cst_109 = arith.constant dense<0.000000e+00> : vector<16x16xf32>
    %333 = tpu.matmul %331, %332, %cst_109 {dimension_numbers = #tpu.dot_dimension_numbers<[1], [1], [0], [0], [0, 0, 1, 0], [], []>} : vector<16x8xbf16>, vector<16x8xbf16>, vector<16x16xf32> -> vector<16x16xf32>
    %334 = arith.addf %333, %1 : vector<16x16xf32>
    %cst_110 = arith.constant dense<0xFF800000> : vector<16xf32>
    %335 = vector.multi_reduction <maximumf>, %334, %cst_110 [1] : vector<16x16xf32> to vector<16xf32>
    %336 = vector.shape_cast %335 : vector<16xf32> to vector<16x1xf32>
    %337 = vector.broadcast %336 : vector<16x1xf32> to vector<16x16xf32>
    %338 = arith.subf %334, %337 : vector<16x16xf32>
    %339 = math.exp %338 : vector<16x16xf32>
    %cst_111 = arith.constant dense<0.000000e+00> : vector<16xf32>
    %340 = vector.multi_reduction <add>, %339, %cst_111 [1] : vector<16x16xf32> to vector<16xf32>
    %341 = vector.shape_cast %340 : vector<16xf32> to vector<16x1xf32>
    %342 = tpu.reciprocal %341 {approx = true} : vector<16x1xf32> -> vector<16x1xf32>
    %343 = vector.broadcast %342 : vector<16x1xf32> to vector<16x16xf32>
    %344 = arith.mulf %339, %343 : vector<16x16xf32>
    %345 = arith.truncf %344 : vector<16x16xf32> to vector<16x16xbf16>
    %346 = arith.truncf %330 : vector<16x8xf32> to vector<16x8xbf16>
    %cst_112 = arith.constant dense<0.000000e+00> : vector<16x8xf32>
    %347 = tpu.matmul %345, %346, %cst_112 {dimension_numbers = #tpu.dot_dimension_numbers<[1], [0], [0], [1], [0, 0, 1, 1], [], []>} : vector<16x16xbf16>, vector<16x8xbf16>, vector<16x8xf32> -> vector<16x8xf32>
    %348 = vector.extract_strided_slice %270 {offsets = [16, 0], sizes = [8, 128], strides = [1, 1]} : vector<128x128xbf16> to vector<8x128xbf16>
    %349 = arith.truncf %347 : vector<16x8xf32> to vector<16x8xbf16>
    %cst_113 = arith.constant dense<0.000000e+00> : vector<16x128xf32>
    %350 = tpu.matmul %349, %348, %cst_113 {dimension_numbers = #tpu.dot_dimension_numbers<[1], [0], [0], [1], [0, 0, 1, 1], [], []>} : vector<16x8xbf16>, vector<8x128xbf16>, vector<16x128xf32> -> vector<16x128xf32>
    %351 = arith.addf %327, %350 : vector<16x128xf32>
    %352 = vector.extract_strided_slice %280 {offsets = [0, 24], sizes = [16, 8], strides = [1, 1]} : vector<16x384xf32> to vector<16x8xf32>
    %353 = vector.extract_strided_slice %280 {offsets = [0, 152], sizes = [16, 8], strides = [1, 1]} : vector<16x384xf32> to vector<16x8xf32>
    %354 = vector.extract_strided_slice %280 {offsets = [0, 280], sizes = [16, 8], strides = [1, 1]} : vector<16x384xf32> to vector<16x8xf32>
    %355 = arith.truncf %352 : vector<16x8xf32> to vector<16x8xbf16>
    %356 = arith.truncf %353 : vector<16x8xf32> to vector<16x8xbf16>
    %cst_114 = arith.constant dense<0.000000e+00> : vector<16x16xf32>
    %357 = tpu.matmul %355, %356, %cst_114 {dimension_numbers = #tpu.dot_dimension_numbers<[1], [1], [0], [0], [0, 0, 1, 0], [], []>} : vector<16x8xbf16>, vector<16x8xbf16>, vector<16x16xf32> -> vector<16x16xf32>
    %358 = arith.addf %357, %1 : vector<16x16xf32>
    %cst_115 = arith.constant dense<0xFF800000> : vector<16xf32>
    %359 = vector.multi_reduction <maximumf>, %358, %cst_115 [1] : vector<16x16xf32> to vector<16xf32>
    %360 = vector.shape_cast %359 : vector<16xf32> to vector<16x1xf32>
    %361 = vector.broadcast %360 : vector<16x1xf32> to vector<16x16xf32>
    %362 = arith.subf %358, %361 : vector<16x16xf32>
    %363 = math.exp %362 : vector<16x16xf32>
    %cst_116 = arith.constant dense<0.000000e+00> : vector<16xf32>
    %364 = vector.multi_reduction <add>, %363, %cst_116 [1] : vector<16x16xf32> to vector<16xf32>
    %365 = vector.shape_cast %364 : vector<16xf32> to vector<16x1xf32>
    %366 = tpu.reciprocal %365 {approx = true} : vector<16x1xf32> -> vector<16x1xf32>
    %367 = vector.broadcast %366 : vector<16x1xf32> to vector<16x16xf32>
    %368 = arith.mulf %363, %367 : vector<16x16xf32>
    %369 = arith.truncf %368 : vector<16x16xf32> to vector<16x16xbf16>
    %370 = arith.truncf %354 : vector<16x8xf32> to vector<16x8xbf16>
    %cst_117 = arith.constant dense<0.000000e+00> : vector<16x8xf32>
    %371 = tpu.matmul %369, %370, %cst_117 {dimension_numbers = #tpu.dot_dimension_numbers<[1], [0], [0], [1], [0, 0, 1, 1], [], []>} : vector<16x16xbf16>, vector<16x8xbf16>, vector<16x8xf32> -> vector<16x8xf32>
    %372 = vector.extract_strided_slice %270 {offsets = [24, 0], sizes = [8, 128], strides = [1, 1]} : vector<128x128xbf16> to vector<8x128xbf16>
    %373 = arith.truncf %371 : vector<16x8xf32> to vector<16x8xbf16>
    %cst_118 = arith.constant dense<0.000000e+00> : vector<16x128xf32>
    %374 = tpu.matmul %373, %372, %cst_118 {dimension_numbers = #tpu.dot_dimension_numbers<[1], [0], [0], [1], [0, 0, 1, 1], [], []>} : vector<16x8xbf16>, vector<8x128xbf16>, vector<16x128xf32> -> vector<16x128xf32>
    %375 = arith.addf %351, %374 : vector<16x128xf32>
    %376 = vector.extract_strided_slice %268 {offsets = [0, 0], sizes = [1, 128], strides = [1, 1]} : vector<8x128xf32> to vector<1x128xf32>
    %377 = vector.broadcast %376 : vector<1x128xf32> to vector<16x128xf32>
    %378 = arith.addf %375, %377 : vector<16x128xf32>
    %379 = arith.addf %378, %266 : vector<16x128xf32>
    %380 = vector.extract_strided_slice %268 {offsets = [1, 0], sizes = [1, 128], strides = [1, 1]} : vector<8x128xf32> to vector<1x128xf32>
    %381 = vector.extract_strided_slice %268 {offsets = [2, 0], sizes = [1, 128], strides = [1, 1]} : vector<8x128xf32> to vector<1x128xf32>
    %382 = tpu.iota {dimensions = array<i32: 1>} : vector<16x128xi32>
    %c32_i32_119 = arith.constant 32 : i32
    %383 = vector.broadcast %c32_i32_119 : i32 to vector<16x128xi32>
    %384 = arith.cmpi slt, %382, %383 : vector<16x128xi32>
    %cst_120 = arith.constant dense<0.000000e+00> : vector<16xf32>
    %385 = vector.multi_reduction <add>, %379, %cst_120 [1] : vector<16x128xf32> to vector<16xf32>
    %386 = vector.shape_cast %385 : vector<16xf32> to vector<16x1xf32>
    %cst_121 = arith.constant 3.125000e-02 : f32
    %387 = vector.broadcast %cst_121 : f32 to vector<16x1xf32>
    %388 = arith.mulf %386, %387 : vector<16x1xf32>
    %389 = vector.broadcast %388 : vector<16x1xf32> to vector<16x128xf32>
    %390 = arith.subf %379, %389 : vector<16x128xf32>
    %cst_122 = arith.constant 0.000000e+00 : f32
    %391 = vector.broadcast %cst_122 : f32 to vector<16x128xf32>
    %392 = arith.select %384, %390, %391 : vector<16x128xi1>, vector<16x128xf32>
    %393 = arith.mulf %392, %392 : vector<16x128xf32>
    %cst_123 = arith.constant dense<0.000000e+00> : vector<16xf32>
    %394 = vector.multi_reduction <add>, %393, %cst_123 [1] : vector<16x128xf32> to vector<16xf32>
    %395 = vector.shape_cast %394 : vector<16xf32> to vector<16x1xf32>
    %cst_124 = arith.constant 3.125000e-02 : f32
    %396 = vector.broadcast %cst_124 : f32 to vector<16x1xf32>
    %397 = arith.mulf %395, %396 : vector<16x1xf32>
    %cst_125 = arith.constant 9.99999996E-13 : f32
    %398 = vector.broadcast %cst_125 : f32 to vector<16x1xf32>
    %399 = arith.addf %397, %398 : vector<16x1xf32>
    %400 = math.rsqrt %399 : vector<16x1xf32>
    %401 = vector.broadcast %400 : vector<16x1xf32> to vector<16x128xf32>
    %402 = arith.mulf %392, %401 : vector<16x128xf32>
    %403 = vector.broadcast %380 : vector<1x128xf32> to vector<16x128xf32>
    %404 = arith.mulf %402, %403 : vector<16x128xf32>
    %405 = vector.broadcast %381 : vector<1x128xf32> to vector<16x128xf32>
    %406 = arith.addf %404, %405 : vector<16x128xf32>
    %407 = vector.extract_strided_slice %272 {offsets = [0, 0, 0], sizes = [1, 128, 128], strides = [1, 1, 1]} : vector<2x128x128xbf16> to vector<1x128x128xbf16>
    %408 = vector.shape_cast %407 : vector<1x128x128xbf16> to vector<128x128xbf16>
    %409 = arith.truncf %406 : vector<16x128xf32> to vector<16x128xbf16>
    %cst_126 = arith.constant dense<0.000000e+00> : vector<16x128xf32>
    %410 = tpu.matmul %409, %408, %cst_126 {dimension_numbers = #tpu.dot_dimension_numbers<[1], [0], [0], [1], [0, 0, 1, 1], [], []>} : vector<16x128xbf16>, vector<128x128xbf16>, vector<16x128xf32> -> vector<16x128xf32>
    %411 = vector.extract_strided_slice %268 {offsets = [3, 0], sizes = [1, 128], strides = [1, 1]} : vector<8x128xf32> to vector<1x128xf32>
    %412 = vector.broadcast %411 : vector<1x128xf32> to vector<16x128xf32>
    %413 = arith.addf %410, %412 : vector<16x128xf32>
    %cst_127 = arith.constant 5.000000e-01 : f32
    %414 = vector.broadcast %cst_127 : f32 to vector<16x128xf32>
    %415 = arith.mulf %414, %413 : vector<16x128xf32>
    %cst_128 = arith.constant 0.707106769 : f32
    %416 = vector.broadcast %cst_128 : f32 to vector<16x128xf32>
    %417 = arith.mulf %413, %416 : vector<16x128xf32>
    %418 = math.absf %417 : vector<16x128xf32>
    %cst_129 = arith.constant 5.000000e-01 : f32
    %419 = vector.broadcast %cst_129 : f32 to vector<16x128xf32>
    %420 = arith.mulf %419, %418 : vector<16x128xf32>
    %cst_130 = arith.constant 1.000000e+00 : f32
    %421 = vector.broadcast %cst_130 : f32 to vector<16x128xf32>
    %422 = arith.addf %421, %420 : vector<16x128xf32>
    %cst_131 = arith.constant 1.000000e+00 : f32
    %423 = vector.broadcast %cst_131 : f32 to vector<16x128xf32>
    %424 = arith.divf %423, %422 : vector<16x128xf32>
    %cst_132 = arith.constant 0.170872763 : f32
    %425 = vector.broadcast %cst_132 : f32 to vector<16x128xf32>
    %426 = arith.mulf %424, %425 : vector<16x128xf32>
    %cst_133 = arith.constant -0.822152256 : f32
    %427 = vector.broadcast %cst_133 : f32 to vector<16x128xf32>
    %428 = arith.addf %427, %426 : vector<16x128xf32>
    %429 = arith.mulf %424, %428 : vector<16x128xf32>
    %cst_134 = arith.constant 1.48851585 : f32
    %430 = vector.broadcast %cst_134 : f32 to vector<16x128xf32>
    %431 = arith.addf %430, %429 : vector<16x128xf32>
    %432 = arith.mulf %424, %431 : vector<16x128xf32>
    %cst_135 = arith.constant -1.13520396 : f32
    %433 = vector.broadcast %cst_135 : f32 to vector<16x128xf32>
    %434 = arith.addf %433, %432 : vector<16x128xf32>
    %435 = arith.mulf %424, %434 : vector<16x128xf32>
    %cst_136 = arith.constant 0.278868079 : f32
    %436 = vector.broadcast %cst_136 : f32 to vector<16x128xf32>
    %437 = arith.addf %436, %435 : vector<16x128xf32>
    %438 = arith.mulf %424, %437 : vector<16x128xf32>
    %cst_137 = arith.constant -0.186288059 : f32
    %439 = vector.broadcast %cst_137 : f32 to vector<16x128xf32>
    %440 = arith.addf %439, %438 : vector<16x128xf32>
    %441 = arith.mulf %424, %440 : vector<16x128xf32>
    %cst_138 = arith.constant 0.0967841818 : f32
    %442 = vector.broadcast %cst_138 : f32 to vector<16x128xf32>
    %443 = arith.addf %442, %441 : vector<16x128xf32>
    %444 = arith.mulf %424, %443 : vector<16x128xf32>
    %cst_139 = arith.constant 0.374091953 : f32
    %445 = vector.broadcast %cst_139 : f32 to vector<16x128xf32>
    %446 = arith.addf %445, %444 : vector<16x128xf32>
    %447 = arith.mulf %424, %446 : vector<16x128xf32>
    %cst_140 = arith.constant 1.00002372 : f32
    %448 = vector.broadcast %cst_140 : f32 to vector<16x128xf32>
    %449 = arith.addf %448, %447 : vector<16x128xf32>
    %450 = arith.mulf %424, %449 : vector<16x128xf32>
    %cst_141 = arith.constant -1.26551223 : f32
    %451 = vector.broadcast %cst_141 : f32 to vector<16x128xf32>
    %452 = arith.addf %451, %450 : vector<16x128xf32>
    %cst_142 = arith.constant 0.000000e+00 : f32
    %453 = vector.broadcast %cst_142 : f32 to vector<16x128xf32>
    %454 = arith.subf %453, %418 : vector<16x128xf32>
    %455 = arith.mulf %454, %418 : vector<16x128xf32>
    %456 = arith.addf %455, %452 : vector<16x128xf32>
    %457 = math.exp %456 : vector<16x128xf32>
    %458 = arith.mulf %424, %457 : vector<16x128xf32>
    %cst_143 = arith.constant 0.000000e+00 : f32
    %459 = vector.broadcast %cst_143 : f32 to vector<16x128xf32>
    %460 = arith.cmpf oge, %417, %459 : vector<16x128xf32>
    %cst_144 = arith.constant 1.000000e+00 : f32
    %461 = vector.broadcast %cst_144 : f32 to vector<16x128xf32>
    %462 = arith.subf %461, %458 : vector<16x128xf32>
    %cst_145 = arith.constant 1.000000e+00 : f32
    %463 = vector.broadcast %cst_145 : f32 to vector<16x128xf32>
    %464 = arith.subf %458, %463 : vector<16x128xf32>
    %465 = arith.select %460, %462, %464 : vector<16x128xi1>, vector<16x128xf32>
    %cst_146 = arith.constant 1.000000e+00 : f32
    %466 = vector.broadcast %cst_146 : f32 to vector<16x128xf32>
    %467 = arith.addf %466, %465 : vector<16x128xf32>
    %468 = arith.mulf %415, %467 : vector<16x128xf32>
    %469 = vector.extract_strided_slice %272 {offsets = [1, 0, 0], sizes = [1, 128, 128], strides = [1, 1, 1]} : vector<2x128x128xbf16> to vector<1x128x128xbf16>
    %470 = vector.shape_cast %469 : vector<1x128x128xbf16> to vector<128x128xbf16>
    %471 = arith.truncf %468 : vector<16x128xf32> to vector<16x128xbf16>
    %cst_147 = arith.constant dense<0.000000e+00> : vector<16x128xf32>
    %472 = tpu.matmul %471, %470, %cst_147 {dimension_numbers = #tpu.dot_dimension_numbers<[1], [0], [0], [1], [0, 0, 1, 1], [], []>} : vector<16x128xbf16>, vector<128x128xbf16>, vector<16x128xf32> -> vector<16x128xf32>
    %473 = vector.extract_strided_slice %268 {offsets = [4, 0], sizes = [1, 128], strides = [1, 1]} : vector<8x128xf32> to vector<1x128xf32>
    %474 = vector.broadcast %473 : vector<1x128xf32> to vector<16x128xf32>
    %475 = arith.addf %472, %474 : vector<16x128xf32>
    %476 = arith.addf %475, %406 : vector<16x128xf32>
    %477 = vector.extract_strided_slice %268 {offsets = [5, 0], sizes = [1, 128], strides = [1, 1]} : vector<8x128xf32> to vector<1x128xf32>
    %478 = vector.extract_strided_slice %268 {offsets = [6, 0], sizes = [1, 128], strides = [1, 1]} : vector<8x128xf32> to vector<1x128xf32>
    %479 = tpu.iota {dimensions = array<i32: 1>} : vector<16x128xi32>
    %c32_i32_148 = arith.constant 32 : i32
    %480 = vector.broadcast %c32_i32_148 : i32 to vector<16x128xi32>
    %481 = arith.cmpi slt, %479, %480 : vector<16x128xi32>
    %cst_149 = arith.constant dense<0.000000e+00> : vector<16xf32>
    %482 = vector.multi_reduction <add>, %476, %cst_149 [1] : vector<16x128xf32> to vector<16xf32>
    %483 = vector.shape_cast %482 : vector<16xf32> to vector<16x1xf32>
    %cst_150 = arith.constant 3.125000e-02 : f32
    %484 = vector.broadcast %cst_150 : f32 to vector<16x1xf32>
    %485 = arith.mulf %483, %484 : vector<16x1xf32>
    %486 = vector.broadcast %485 : vector<16x1xf32> to vector<16x128xf32>
    %487 = arith.subf %476, %486 : vector<16x128xf32>
    %cst_151 = arith.constant 0.000000e+00 : f32
    %488 = vector.broadcast %cst_151 : f32 to vector<16x128xf32>
    %489 = arith.select %481, %487, %488 : vector<16x128xi1>, vector<16x128xf32>
    %490 = arith.mulf %489, %489 : vector<16x128xf32>
    %cst_152 = arith.constant dense<0.000000e+00> : vector<16xf32>
    %491 = vector.multi_reduction <add>, %490, %cst_152 [1] : vector<16x128xf32> to vector<16xf32>
    %492 = vector.shape_cast %491 : vector<16xf32> to vector<16x1xf32>
    %cst_153 = arith.constant 3.125000e-02 : f32
    %493 = vector.broadcast %cst_153 : f32 to vector<16x1xf32>
    %494 = arith.mulf %492, %493 : vector<16x1xf32>
    %cst_154 = arith.constant 9.99999996E-13 : f32
    %495 = vector.broadcast %cst_154 : f32 to vector<16x1xf32>
    %496 = arith.addf %494, %495 : vector<16x1xf32>
    %497 = math.rsqrt %496 : vector<16x1xf32>
    %498 = vector.broadcast %497 : vector<16x1xf32> to vector<16x128xf32>
    %499 = arith.mulf %489, %498 : vector<16x128xf32>
    %500 = vector.broadcast %477 : vector<1x128xf32> to vector<16x128xf32>
    %501 = arith.mulf %499, %500 : vector<16x128xf32>
    %502 = vector.broadcast %478 : vector<1x128xf32> to vector<16x128xf32>
    %503 = arith.addf %501, %502 : vector<16x128xf32>
    %c0_155 = arith.constant 0 : index
    %c0_156 = arith.constant 0 : index
    %c0_157 = arith.constant 0 : index
    %504 = vector.load %arg7[%c0_155, %c0_156, %c0_157] : memref<2x128x128xbf16, #tpu.memory_space<vmem>>, vector<1x128x128xbf16>
    %505 = vector.shape_cast %504 : vector<1x128x128xbf16> to vector<128x128xbf16>
    %506 = arith.truncf %503 : vector<16x128xf32> to vector<16x128xbf16>
    %cst_158 = arith.constant dense<0.000000e+00> : vector<16x128xf32>
    %507 = tpu.matmul %506, %505, %cst_158 {dimension_numbers = #tpu.dot_dimension_numbers<[1], [0], [0], [1], [0, 0, 1, 1], [], []>} : vector<16x128xbf16>, vector<128x128xbf16>, vector<16x128xf32> -> vector<16x128xf32>
    %508 = vector.extract_strided_slice %0 {offsets = [2, 0], sizes = [1, 128], strides = [1, 1]} : vector<8x128xf32> to vector<1x128xf32>
    %509 = vector.broadcast %508 : vector<1x128xf32> to vector<16x128xf32>
    %510 = arith.addf %507, %509 : vector<16x128xf32>
    %511 = math.tanh %510 : vector<16x128xf32>
    %c1_159 = arith.constant 1 : index
    %c0_160 = arith.constant 0 : index
    %c0_161 = arith.constant 0 : index
    %512 = vector.load %arg7[%c1_159, %c0_160, %c0_161] : memref<2x128x128xbf16, #tpu.memory_space<vmem>>, vector<1x128x128xbf16>
    %513 = vector.shape_cast %512 : vector<1x128x128xbf16> to vector<128x128xbf16>
    %514 = arith.truncf %511 : vector<16x128xf32> to vector<16x128xbf16>
    %cst_162 = arith.constant dense<0.000000e+00> : vector<16x128xf32>
    %515 = tpu.matmul %514, %513, %cst_162 {dimension_numbers = #tpu.dot_dimension_numbers<[1], [0], [0], [1], [0, 0, 1, 1], [], []>} : vector<16x128xbf16>, vector<128x128xbf16>, vector<16x128xf32> -> vector<16x128xf32>
    %516 = vector.extract_strided_slice %0 {offsets = [3, 0], sizes = [1, 128], strides = [1, 1]} : vector<8x128xf32> to vector<1x128xf32>
    %517 = vector.broadcast %516 : vector<1x128xf32> to vector<16x128xf32>
    %518 = arith.addf %515, %517 : vector<16x128xf32>
    %c0_163 = arith.constant 0 : index
    %c0_164 = arith.constant 0 : index
    %519 = vector.load %arg9[%c0_163, %c0_164] : memref<16x128xf32, #tpu.memory_space<vmem>>, vector<16x128xf32>
    tpu.vector_store %arg9[%c0_163, %c0_164], %518 {strides = array<i32>} : memref<16x128xf32, #tpu.memory_space<vmem>>, vector<16x128xf32>,
    return
  }
}

</mosaic_0001>

<bundles_post_ra>
// kernel: chemberta_classifier_forward.1
= control target key start
LH: loop header
LB: loop body
LE: loop exit
PB: predicated region body
PF: predicated region fallthrough
CT: control target
= control target key end

     0   :  { %14 = vsyncpa [#allocation3], 0  ;;  %s3652_s0 = inlined_call_operand.vmem [shape: f32[16,128], index: 0, kind: input, shape index: {}]   ;;  %s3653_s1 = inlined_call_operand.vmem [shape: f32[16,16], index: 1, kind: input, shape index: {}]   ;;  %s3654_s2 = inlined_call_operand.vmem [shape: bf16[2,128,384], index: 2, kind: input, shape index: {}]   ;;  %s3655_s3 = inlined_call_operand.vmem [shape: f32[2,1,384], index: 3, kind: input, shape index: {}]   ;;  %s3656_s4 = inlined_call_operand.hbm [shape: bf16[2,128,128], index: 4, kind: input, shape index: {}]   ;;  %s3657_s5 = inlined_call_operand.hbm [shape: bf16[2,2,128,128], index: 5, kind: input, shape index: {}]   ;;  %s3658_s6 = inlined_call_operand.vmem [shape: f32[2,8,128], index: 6, kind: input, shape index: {}]   ;;  %s3659_s7 = inlined_call_operand.hbm [shape: bf16[2,128,128], index: 7, kind: input, shape index: {}]   ;;  %s3660_s8 = inlined_call_operand.vmem [shape: f32[8,128], index: 8, kind: input, shape index: {}]   ;;  %s3661_s9 = inlined_call_operand.vmem [shape: f32[16,128], index: 9, kind: output, shape index: {}]  }
   0x1   :  { %15 = vsyncpa [#allocation5], 0  ;;  %s41_s11 = sshll.u32 %s3657_s5, 4  ;;  %s2916_s12 = smov [#allocation4]   ;;  %s42_s11 = int_to_ptr.hbm [resolvable:$true] %s41_s11 }
   0x2   :  { %s43_s13 = sshll.u32 %s2916_s12, 4  ;;  %s28_s16 = sshll.u32 %s3656_s4, 4  ;;  %s44_s13 = int_to_ptr.vmem [resolvable:$true] %s43_s13  ;;  %s29_s16 = int_to_ptr.hbm [resolvable:$true] %s28_s16 }
   0x3   :  { %s2917_s17 = smov 64   ;;  %s2918_s18 = smov 4  }
   0x4   :  { %49 = dma.hbm_to_vmem [thread:$0]  %s42_s11, 4096, %s44_s13, [#allocation5], %s2917_s17, %s2917_s17, %s2918_s18  }
   0x5   :  { %s2919_s19 = smov [#allocation2]   ;;  %s56_s23 = sshll.u32 %s3659_s7, 4  ;;  %s57_s23 = int_to_ptr.hbm [resolvable:$true] %s56_s23 }
   0x6   :  { %s30_s20 = sshll.u32 %s2919_s19, 4  ;;  %s2920_s5 = smov [#allocation6]   ;;  %s31_s20 = int_to_ptr.vmem [resolvable:$true] %s30_s20 }
   0x7   :  { %36 = dma.hbm_to_vmem [thread:$0]  %s29_s16, 2048, %s31_s20, [#allocation3], %s2917_s17, %s2917_s17, %s2918_s18  }
   0x8   :  { %s58_s24 = sshll.u32 %s2920_s5, 4  ;;  %s59_s24 = int_to_ptr.vmem [resolvable:$true] %s58_s24 }
   0x9   :  { %64 = dma.hbm_to_vmem [thread:$0]  %s57_s23, 2048, %s59_s24, [#allocation5], %s2917_s17, %s2917_s17, %s2918_s18  }
   0xa   :  { %2912 = dma.done.wait [#allocation3], 2048  }
   0xb   :  { %2913 = vsyncadd [#allocation3], 4294965248 }
   0xc   :  { %2914 = dma.done.wait [#allocation5], 6144  }
   0xd   :  { %2915 = vsyncadd [#allocation5], 4294961152  ;;  %v83_v0 = vld [vmem:[%s3652_s0] sm:$0xff]  ;;  %v84_v1 = vld [vmem:[%s3652_s0 + $0x8] sm:$0xff]  ;;  %v85_v2 = vlaneseq  ;;  %vm386_vm7 = vcmask 64512   ;;  %vm407_vm8 = vcmask 130048  }
   0xe   :  { %88 = vadd.xlane.f32.xlu0 %v83_v0  ;;  %v2269_v14 = vld [vmem:[%s3654_s2 + $0xa8] sm:$0xf]  ;;  %v2667_v15 = vld [vmem:[%s3654_s2 + $0xb0] sm:$0xf0]  ;;  %v2666_v16 = vld [vmem:[%s3654_s2 + $0xac] sm:$0xf] }
   0xf   :  { %v2989_v3 = vand.u32 127, %v85_v2  ;;  %v2270_v17 = vor.u32 %v2667_v15, %v2269_v14  ;;  %v2271_v18 = vld [vmem:[%s3654_s2 + $0xb4] sm:$0xf0]  ;;  %v2277_v19 = vld [vmem:[%s3654_s2 + $0xb0] sm:$0xf]  ;;  %s2921_s30 = smov 120  }
  0x10   :  { %v2668_v20 = vld [vmem:[%s3654_s2 + $0xb8] sm:$0xf0]  ;;  %v2274_v21 = vor.u32 %v2666_v16, %v2271_v18  ;;  %v2257_v23 = vld [vmem:[%s3654_s2 + $0x90] sm:$0xf]  ;;  %v2663_v25 = vld [vmem:[%s3654_s2 + $0x94] sm:$0xf] }
  0x11   :  { %vm87_vm0 = vcmp.lt.s32.totalorder %v2989_v3, 32  ;;  %v2278_v22 = vor.u32 %v2668_v20, %v2277_v19  ;;  %342 = vmatpush.bf16.msra.mxu0 %v2270_v17  ;;  %v2664_v24 = vld [vmem:[%s3654_s2 + $0x98] sm:$0xf0]  ;;  %v2259_v27 = vld [vmem:[%s3654_s2 + $0x9c] sm:$0xf0]  ;;  %s2922_s10 = smov 112  }
  0x12   :  { %356 = vmatpush.bf16.msra.mxu1 %v2274_v21  ;;  %v2258_v26 = vor.u32 %v2664_v24, %v2257_v23  ;;  %v2265_v28 = vld [vmem:[%s3654_s2 + $0x98] sm:$0xf]  ;;  %v2665_v29 = vld [vmem:[%s3654_s2 + $0xa0] sm:$0xf0]  ;;  %v2262_v30 = vor.u32 %v2663_v25, %v2259_v27  ;;  %v2660_v34 = vld [vmem:[%s3654_s2 + $0x7c] sm:$0xf] }
  0x13   :  { %370 = vmatpush.bf16.msra.mxu2 %v2278_v22  ;;  %v2266_v31 = vor.u32 %v2665_v29, %v2265_v28  ;;  %v2245_v32 = vld [vmem:[%s3654_s2 + $0x78] sm:$0xf]  ;;  %v2661_v33 = vld [vmem:[%s3654_s2 + $0x80] sm:$0xf0]  ;;  %v2247_v36 = vld [vmem:[%s3654_s2 + $0x84] sm:$0xf0] }
  0x14   :  { %v2246_v35 = vor.u32 %v2661_v33, %v2245_v32  ;;  %v2253_v37 = vld [vmem:[%s3654_s2 + $0x80] sm:$0xf]  ;;  %v2662_v38 = vld [vmem:[%s3654_s2 + $0x88] sm:$0xf0]  ;;  %v2250_v39 = vor.u32 %v2660_v34, %v2247_v36  ;;  %v2657_v43 = vld [vmem:[%s3654_s2 + $0x64] sm:$0xf] }
  0x15   :  { %343 = vmatpush.bf16.msra.mxu0 %v2258_v26  ;;  %v2254_v40 = vor.u32 %v2662_v38, %v2253_v37  ;;  %v2233_v41 = vld [vmem:[%s3654_s2 + $0x60] sm:$0xf]  ;;  %v2658_v42 = vld [vmem:[%s3654_s2 + $0x68] sm:$0xf0]  ;;  %v2235_v45 = vld [vmem:[%s3654_s2 + $0x6c] sm:$0xf0] }
  0x16   :  { %90 = vadd.xlane.f32.xlu0 %v84_v1  ;;  %357 = vmatpush.bf16.msra.mxu1 %v2262_v30  ;;  %v2234_v44 = vor.u32 %v2658_v42, %v2233_v41  ;;  %v2241_v46 = vld [vmem:[%s3654_s2 + $0x68] sm:$0xf]  ;;  %v2659_v47 = vld [vmem:[%s3654_s2 + $0x70] sm:$0xf0]  ;;  %v2238_v48 = vor.u32 %v2657_v43, %v2235_v45  ;;  %v2654_v52 = vld [vmem:[%s3654_s2 + $0x4c] sm:$0xf] }
  0x17   :  { %371 = vmatpush.bf16.msra.mxu2 %v2266_v31  ;;  %v2242_v49 = vor.u32 %v2659_v47, %v2241_v46  ;;  %v2221_v50 = vld [vmem:[%s3654_s2 + $0x48] sm:$0xf]  ;;  %v2655_v51 = vld [vmem:[%s3654_s2 + $0x50] sm:$0xf0]  ;;  %v2223_v54 = vld [vmem:[%s3654_s2 + $0x54] sm:$0xf0] }
  0x18   :  { %v2222_v53 = vor.u32 %v2655_v51, %v2221_v50  ;;  %v2229_v55 = vld [vmem:[%s3654_s2 + $0x50] sm:$0xf]  ;;  %v2656_v56 = vld [vmem:[%s3654_s2 + $0x58] sm:$0xf0]  ;;  %v2226_v57 = vor.u32 %v2654_v52, %v2223_v54  ;;  %v2651_v61 = vld [vmem:[%s3654_s2 + $0x34] sm:$0xf] }
  0x19   :  { %344 = vmatpush.bf16.msra.mxu0 %v2246_v35  ;;  %v2230_v58 = vor.u32 %v2656_v56, %v2229_v55  ;;  %v2209_v59 = vld [vmem:[%s3654_s2 + $0x30] sm:$0xf]  ;;  %v2652_v60 = vld [vmem:[%s3654_s2 + $0x38] sm:$0xf0]  ;;  %v2211_v63 = vld [vmem:[%s3654_s2 + $0x3c] sm:$0xf0] }
  0x1a   :  { %358 = vmatpush.bf16.msra.mxu1 %v2250_v39  ;;  %v2210_v62 = vor.u32 %v2652_v60, %v2209_v59  ;;  %v2214_v2 = vor.u32 %v2651_v61, %v2211_v63  ;;  %v2185_v16 = vld [vmem:[%s3654_s2] sm:$0xf]  ;;  %v2646_v17 = vld [vmem:[%s3654_s2 + $0x8] sm:$0xf0]  ;;  %v2645_v18 = vld [vmem:[%s3654_s2 + $0x4] sm:$0xf] }
  0x1b   :  { %372 = vmatpush.bf16.msra.mxu2 %v2254_v40  ;;  %v2186_v20 = vor.u32 %v2646_v17, %v2185_v16  ;;  %v2187_v21 = vld [vmem:[%s3654_s2 + $0xc] sm:$0xf0]  ;;  %v2193_v22 = vld [vmem:[%s3654_s2 + $0x8] sm:$0xf]  ;;  %v2647_v23 = vld [vmem:[%s3654_s2 + $0x10] sm:$0xf0] }
  0x1c   :  { %v2190_v25 = vor.u32 %v2645_v18, %v2187_v21  ;;  %v2194_v26 = vor.u32 %v2647_v23, %v2193_v22  ;;  %v80_v42 = vld [vmem:[%s3660_s8] sm:$0xff]  ;;  %v3177_v16 = vld [vmem:[%s3653_s1 + $0x8] sm:$0xff]  ;;  %s2923_s11 = smov 104   ;;  %vm524_vm9 = vcmask 1043456  }
  0x1d   :  { %345 = vmatpush.bf16.msra.mxu0 %v2234_v44  ;;  %v130_v45 = vperm.slane %v80_v42, 0  ;;  %v133_v50 = vperm.slane %v80_v42, 1  ;;  %v206_v55 = vld [vmem:[%s3655_s3] sm:$0x7] }
  0x1e   :  { %359 = vmatpush.bf16.msra.mxu1 %v2238_v48  ;;  %v2709_v3 = vld [vmem:[#allocation6] sm:$0xff] }
  0x1f   :  { %373 = vmatpush.bf16.msra.mxu2 %v2242_v49 }
  0x21   :  { %346 = vmatpush.bf16.msra.mxu0 %v2222_v53 }
  0x22   :  { %360 = vmatpush.bf16.msra.mxu1 %v2226_v57 }
  0x23   :  { %374 = vmatpush.bf16.msra.mxu2 %v2230_v58 }
  0x25   :  { %347 = vmatpush.bf16.msra.mxu0 %v2210_v62  ;;  %v210_v62 = vperm.slane %v206_v55, 2 }
  0x26   :  { %361 = vmatpush.bf16.msra.mxu1 %v2214_v2 }
  0x81   :  { %v89_v4 = vpop.xlane.xlu0 %88 }
  0x82   :  { %v92_v5 = vmul.f32 0.03125, %v89_v4 }
  0x84   :  { %v94_v6 = vsub.f32 %v83_v0, %v92_v5  ;;  %v2217_v0 = vld [vmem:[%s3654_s2 + $0x38] sm:$0xf] }
  0x85   :  { %v2197_v5 = vld [vmem:[%s3654_s2 + $0x18] sm:$0xf] }
  0x86   :  { %v2994_v7 = vsel %vm87_vm0, %v94_v6, 0.0  ;;  %v2649_v6 = vld [vmem:[%s3654_s2 + $0x20] sm:$0xf0] }
  0x87   :  { %v98_v8 = vmul.f32 %v2994_v7, %v2994_v7 }
  0x89   :  { %100 = vadd.xlane.f32.xlu1 %v98_v8  ;;  %v91_v9 = vpop.xlane.xlu0 %90  ;;  %v2648_v8 = vld [vmem:[%s3654_s2 + $0x1c] sm:$0xf] }
  0x8a   :  { %v93_v10 = vmul.f32 0.03125, %v91_v9  ;;  %v2198_v9 = vor.u32 %v2649_v6, %v2197_v5 }
  0x8c   :  { %v95_v11 = vsub.f32 %v84_v1, %v93_v10  ;;  %v2653_v1 = vld [vmem:[%s3654_s2 + $0x40] sm:$0xf0]  ;;  %v2199_v10 = vld [vmem:[%s3654_s2 + $0x24] sm:$0xf0]  ;;  %348 = vmatpush.bf16.msra.mxu0 %v2198_v9 }
  0x8d   :  { %v2218_v4 = vor.u32 %v2653_v1, %v2217_v0  ;;  %v2202_v14 = vor.u32 %v2648_v8, %v2199_v10  ;;  %v208_v0 = vperm.slane %v206_v55, 0 }
  0x8e   :  { %v3000_v12 = vsel %vm87_vm0, %v95_v11, 0.0  ;;  %v2205_v11 = vld [vmem:[%s3654_s2 + $0x20] sm:$0xf] }
  0x8f   :  { %v99_v13 = vmul.f32 %v3000_v12, %v3000_v12  ;;  %375 = vmatpush.bf16.msra.mxu2 %v2218_v4  ;;  %362 = vmatpush.bf16.msra.mxu1 %v2202_v14 }
  0x90   :  { %349 = vmatpush.bf16.msra.mxu0 %v2186_v20 }
  0x91   :  { %102 = vadd.xlane.f32.xlu1 %v99_v13  ;;  %v2650_v13 = vld [vmem:[%s3654_s2 + $0x28] sm:$0xf0] }
  0x92   :  { %v2206_v15 = vor.u32 %v2650_v13, %v2205_v11  ;;  %v3170_v11 = vld [vmem:[%s3653_s1] sm:$0xff] }
  0x93   :  { %363 = vmatpush.bf16.msra.mxu1 %v2190_v25 }
  0x94   :  { %376 = vmatpush.bf16.msra.mxu2 %v2206_v15 }
  0x98   :  { %377 = vmatpush.bf16.msra.mxu2 %v2194_v26 }
  0xfc   :  { %v101_v19 = vpop.xlane.xlu1 %100 }
  0xfd   :  { %v104_v24 = vmul.f32 0.03125, %v101_v19 }
  0xff   :  { %v106_v27 = vadd.f32 1e-12, %v104_v24 }
 0x101   :  { %2733 = vrsqrt.f32 %v106_v27  ;;  %vm114_vm2 = vweird.f32 %v106_v27 }
 0x104   :  { %v103_v28 = vpop.xlane.xlu1 %102 }
 0x105   :  { %v105_v29 = vmul.f32 0.03125, %v103_v28 }
 0x107   :  { %v2734_v30 = vpop.eup %2733  ;;  %v107_v31 = vadd.f32 1e-12, %v105_v29 }
 0x108   :  { %v109_v32 = vmul.f32 %v2734_v30, %v106_v27  ;;  %vm115_vm1 = vweird.f32 %v2734_v30 }
 0x109   :  { %2735 = vrsqrt.f32 %v107_v31  ;;  %vm116_vm3 = vmor %vm114_vm2, %vm115_vm1  ;;  %vm124_vm5 = vweird.f32 %v107_v31 }
 0x10a   :  { %v110_v33 = vmul.f32 %v2734_v30, %v109_v32  ;;  %v137_v32 = vld [vmem:[#allocation2] sm:$0xf] }
 0x10c   :  { %v111_v34 = vmul.f32 0.5, %v110_v33  ;;  %v546_v33 = vsel %vm524_vm9, %v137_v32, 0 }
 0x10d   :  { %555 = vmatpush.bf16.msrb.mxu2 %v546_v33 }
 0x10e   :  { %v112_v35 = vsub.f32 1.5, %v111_v34 }
 0x10f   :  { %v2736_v36 = vpop.eup %2735 }
 0x110   :  { %v113_v37 = vmul.f32 %v2734_v30, %v112_v35  ;;  %v119_v38 = vmul.f32 %v2736_v36, %v107_v31  ;;  %vm125_vm4 = vweird.f32 %v2736_v36 }
 0x111   :  { %vm126_vm6 = vmor %vm124_vm5, %vm125_vm4 }
 0x112   :  { %v120_v39 = vmul.f32 %v2736_v36, %v119_v38  ;;  %v117_v40 = vsel %vm116_vm3, %v2734_v30, %v113_v37 }
 0x113   :  { %v128_v44 = vmul.f32 %v117_v40, %v2994_v7 }
 0x114   :  { %v121_v41 = vmul.f32 0.5, %v120_v39 }
 0x115   :  { %v131_v49 = vmul.f32 %v130_v45, %v128_v44 }
 0x116   :  { %v122_v43 = vsub.f32 1.5, %v121_v41 }
 0x117   :  { %v3153_v52 = vadd.f32 %v133_v50, %v131_v49 }
 0x118   :  { %v123_v46 = vmul.f32 %v2736_v36, %v122_v43 }
 0x11a   :  { %v127_v47 = vsel %vm126_vm6, %v2736_v36, %v123_v46 }
 0x11b   :  { %v129_v48 = vmul.f32 %v127_v47, %v3000_v12  ;;  %v209_v12 = vperm.slane %v206_v55, 1 }
 0x11d   :  { %v132_v51 = vmul.f32 %v130_v45, %v129_v48 }
 0x11f   :  { %v3155_v53 = vadd.f32 %v133_v50, %v132_v51 }
 0x121   :  { %v205_v54 = vpack.c.bf16 %v3155_v53, %v3153_v52 }
 0x123   :  { %350 = vmatmul.bf16.vlgmr.msra.gmra.mxu0 %v205_v54  ;;  %364 = vmatmul.bf16.vlgmr.msra.gmra.mxu1 %v205_v54 }
 0x124   :  { %378 = vmatmul.bf16.vlgmr.msra.gmra.mxu2 %v205_v54 }
 0x1a0   :  { %v365_v7 = vpop.f32.mrf.mxu1  ;;  %v351_v56 = vpop.f32.mrf.mxu0 }
 0x1a1   :  { %v366_v59 = vadd.f32 %v365_v7, %v209_v12  ;;  %v352_v8 = vadd.f32 %v351_v56, %v208_v0 }
 0x1a7   :  { %v379_v57 = vpop.f32.mrf.mxu2 }
 0x1a8   :  { %v367_v58 = vpop.f32.mrf.mxu1  ;;  %v353_v63 = vpop.f32.mrf.mxu0  ;;  %v380_v5 = vadd.f32 %v379_v57, %v210_v62 }
 0x1a9   :  { %v368_v60 = vadd.f32 %v367_v58, %v209_v12  ;;  %v354_v2 = vadd.f32 %v353_v63, %v208_v0 }
 0x1ab   :  { %v385_v61 = vpack.c.bf16 %v368_v60, %v366_v59  ;;  %v384_v10 = vpack.c.bf16 %v354_v2, %v352_v8 }
 0x1ad   :  { %v391_v1 = vsel %vm386_vm7, %v385_v61, 0 }
 0x1ae   :  { %400 = vmatpush.bf16.xpose.msra.mxu3 %v391_v1 }
 0x1af   :  { %v381_v4 = vpop.f32.mrf.mxu2 }
 0x1b0   :  { %v382_v6 = vadd.f32 %v381_v4, %v210_v62 }
 0x1b2   :  { %v3163_v9 = vpack.c.bf16 %v382_v6, %v380_v5 }
 0x1b5   :  { %2279 = vmatmul.msk.bf16.vlgmr.msra.gmra.mxu3 %vm386_vm7, %v384_v10 }
 0x1b6   :  { %442 = vmatpush.bf16.msrb.mxu3 %v3163_v9 }
 0x238   :  { %v402_v13 = vpop.f32.mrf.mxu3 }
 0x239   :  { %v403_v14 = vadd.f32 %v402_v13, %v3170_v11 }
 0x23b   :  { %v408_v15 = vsel %vm407_vm8, %v403_v14, -inf }
 0x23c   :  { %409 = vmax.xlane.f32.xlu2 %v408_v15 }
 0x240   :  { %v404_v17 = vpop.f32.mrf.mxu3 }
 0x241   :  { %v405_v18 = vadd.f32 %v404_v17, %v3177_v16 }
 0x243   :  { %v411_v19 = vsel %vm407_vm8, %v405_v18, -inf }
 0x244   :  { %412 = vmax.xlane.f32.xlu2 %v411_v19 }
 0x25c   :  { %454 = vrot.lane.b32.xlu2 %v385_v61, %s2921_s30 }
 0x264   :  { %564 = vrot.lane.b32.xlu2 %v385_v61, %s2922_s10 }
 0x26c   :  { %562 = vrot.lane.b32.xlu2 %v384_v10, %s2922_s10 }
 0x2af   :  { %v410_v20 = vpop.xlane.xlu2 %409 }
 0x2b0   :  { %v414_v21 = vsub.f32 %v403_v14, %v410_v20 }
 0x2b2   :  { %v416_v22 = vmul.f32 1.442695, %v414_v21 }
 0x2b4   :  { %2737 = vpow2.f32 %v416_v22 }
 0x2b7   :  { %v413_v23 = vpop.xlane.xlu2 %412 }
 0x2b8   :  { %v415_v24 = vsub.f32 %v405_v18, %v413_v23 }
 0x2ba   :  { %v2738_v25 = vpop.eup %2737  ;;  %v418_v26 = vmul.f32 1.442695, %v415_v24 }
 0x2bb   :  { %v420_v27 = vsel %vm407_vm8, %v2738_v25, 0.0 }
 0x2bc   :  { %2739 = vpow2.f32 %v418_v26  ;;  %421 = vadd.xlane.f32.xlu0 %v420_v27 }
 0x2bf   :  { %v455_v28 = vpop.permute.xlu2 %454 }
 0x2c0   :  { %v460_v29 = vsel %vm386_vm7, %v455_v28, 0 }
 0x2c1   :  { %469 = vmatpush.bf16.xpose.msra.mxu3 %v460_v29 }
 0x2c2   :  { %v2740_v30 = vpop.eup %2739 }
 0x2c3   :  { %v423_v31 = vsel %vm407_vm8, %v2740_v30, 0.0 }
 0x2c4   :  { %424 = vadd.xlane.f32.xlu1 %v423_v31 }
 0x2c7   :  { %v565_v40 = vpop.permute.xlu2 %564 }
 0x2c8   :  { %v570_v42 = vsel %vm386_vm7, %v565_v40, 0 }
 0x2cf   :  { %v563_v46 = vpop.permute.xlu2 %562 }
 0x2d0   :  { %451 = vrot.lane.b32.xlu0 %v384_v10, %s2921_s30 }
 0x2d8   :  { %652 = vrot.lane.b32.xlu0 %v384_v10, %s2923_s11 }
 0x2dd   :  { %654 = vrot.lane.b32.xlu1 %v385_v61, %s2923_s11 }
 0x32f   :  { %v422_v34 = vpop.xlane.xlu0 %421 }
 0x330   :  { %2741 = vrcp.f32 %v422_v34 }
 0x336   :  { %v2742_v36 = vpop.eup %2741 }
 0x337   :  { %v425_v35 = vpop.xlane.xlu1 %424  ;;  %v428_v38 = vmul.f32 %v2742_v36, %v2738_v25 }
 0x338   :  { %2743 = vrcp.f32 %v425_v35 }
 0x33e   :  { %v2744_v37 = vpop.eup %2743 }
 0x33f   :  { %v429_v39 = vmul.f32 %v2744_v37, %v2740_v30 }
 0x341   :  { %v430_v41 = vpack.c.bf16 %v429_v39, %v428_v38 }
 0x342   :  { %v452_v45 = vpop.permute.xlu0 %451 }
 0x343   :  { %2280 = vmatmul.msk.bf16.vlgmr.msrb.gmra.mxu3 %vm407_vm8, %v430_v41 }
 0x344   :  { %579 = vmatpush.bf16.xpose.msrb.mxu3 %v570_v42 }
 0x34a   :  { %v653_v56 = vpop.permute.xlu0 %652 }
 0x34f   :  { %v655_v43 = vpop.permute.xlu1 %654 }
 0x350   :  { %v660_v44 = vsel %vm386_vm7, %v655_v43, 0 }
 0x351   :  { %669 = vmatpush.bf16.xpose.msra.mxu2 %v660_v44 }
 0x353   :  { %2281 = vmatmul.msk.bf16.vlgmr.msra.gmra.mxu3 %vm386_vm7, %v452_v45 }
 0x363   :  { %2285 = vmatmul.msk.bf16.vlgmr.msrb.gmra.mxu3 %vm386_vm7, %v563_v46 }
 0x3c6   :  { %v444_v47 = vpop.f32.mrf.mxu3 }
 0x3ce   :  { %v446_v48 = vpop.f32.mrf.mxu3 }
 0x3cf   :  { %v449_v49 = vpack.c.bf16 %v446_v48, %v444_v47 }
 0x3d1   :  { %2284 = vmatmul.msk.bf16.vlgmr.msrb.gmra.mxu2 %vm386_vm7, %v449_v49  ;;  %v138_v49 = vld [vmem:[#allocation2 + $0x4] sm:$0xf] }
 0x3d6   :  { %v471_v50 = vpop.f32.mrf.mxu3 }
 0x3d7   :  { %v472_v51 = vadd.f32 %v471_v50, %v3170_v11  ;;  %v526_v50 = vsel %vm524_vm9, %v138_v49, 0  ;;  %v2632_v49 = vld [vmem:[#allocation4 + $0x18] sm:$0xff] }
 0x3d8   :  { %535 = vmatpush.bf16.msrb.mxu1 %v526_v50  ;;  %v2631_v50 = vld [vmem:[#allocation4 + $0x10] sm:$0xff] }
 0x3d9   :  { %v476_v54 = vsel %vm407_vm8, %v472_v51, -inf }
 0x3da   :  { %477 = vmax.xlane.f32.xlu1 %v476_v54 }
 0x3de   :  { %v473_v7 = vpop.f32.mrf.mxu3 }
 0x3df   :  { %v474_v55 = vadd.f32 %v473_v7, %v3177_v16 }
 0x3e1   :  { %2288 = vmatmul.msk.bf16.vlgmr.msra.gmra.mxu2 %vm386_vm7, %v653_v56  ;;  %v479_v12 = vsel %vm407_vm8, %v474_v55, -inf }
 0x3e2   :  { %480 = vmax.xlane.f32.xlu0 %v479_v12 }
 0x3e6   :  { %v581_v57 = vpop.f32.mrf.mxu3 }
 0x3e7   :  { %v582_v58 = vadd.f32 %v581_v57, %v3170_v11 }
 0x3e9   :  { %v586_v59 = vsel %vm407_vm8, %v582_v58, -inf }
 0x3ea   :  { %587 = vmax.xlane.f32.xlu0 %v586_v59 }
 0x3ee   :  { %v583_v13 = vpop.f32.mrf.mxu3 }
 0x3ef   :  { %v584_v15 = vadd.f32 %v583_v13, %v3177_v16 }
 0x3f1   :  { %v589_v22 = vsel %vm407_vm8, %v584_v15, -inf }
 0x44d   :  { %v478_v4 = vpop.xlane.xlu1 %477 }
 0x44e   :  { %v482_v8 = vsub.f32 %v472_v51, %v478_v4 }
 0x450   :  { %v484_v14 = vmul.f32 1.442695, %v482_v8 }
 0x454   :  { %v3204_v60 = vpop.f32.mrf.mxu2 }
 0x455   :  { %v481_v61 = vpop.xlane.xlu0 %480 }
 0x456   :  { %v483_v62 = vsub.f32 %v474_v55, %v481_v61 }
 0x458   :  { %v486_v63 = vmul.f32 1.442695, %v483_v62 }
 0x45a   :  { %2745 = vpow2.f32 %v486_v63 }
 0x45b   :  { %2747 = vpow2.f32 %v484_v14  ;;  %v139_v14 = vld [vmem:[#allocation2 + $0x8] sm:$0xf] }
 0x45c   :  { %v3206_v0 = vpop.f32.mrf.mxu2 }
 0x45d   :  { %v588_v17 = vpop.xlane.xlu0 %587 }
 0x45e   :  { %v592_v20 = vsub.f32 %v582_v58, %v588_v17 }
 0x460   :  { %v2746_v1 = vpop.eup %2745 }
 0x461   :  { %v491_v2 = vsel %vm407_vm8, %v2746_v1, 0.0  ;;  %v2748_v23 = vpop.eup %2747 }
 0x462   :  { %492 = vadd.xlane.f32.xlu0 %v491_v2  ;;  %v488_v24 = vsel %vm407_vm8, %v2748_v23, 0.0 }
 0x464   :  { %v671_v5 = vpop.f32.mrf.mxu2 }
 0x465   :  { %v672_v6 = vadd.f32 %v671_v5, %v3170_v11  ;;  %v594_v11 = vmul.f32 1.442695, %v592_v20 }
 0x467   :  { %v676_v10 = vsel %vm407_vm8, %v672_v6, -inf  ;;  %2749 = vpow2.f32 %v594_v11 }
 0x468   :  { %677 = vmax.xlane.f32.xlu2 %v676_v10  ;;  %v140_v10 = vld [vmem:[#allocation2 + $0xc] sm:$0xf] }
 0x469   :  { %v724_v13 = vsel %vm524_vm9, %v140_v10, 0 }
 0x46c   :  { %v673_v18 = vpop.f32.mrf.mxu2 }
 0x46d   :  { %v674_v19 = vadd.f32 %v673_v18, %v3177_v16  ;;  %v3216_v25 = vpop.eup %2749 }
 0x46e   :  { %v598_v26 = vsel %vm407_vm8, %v3216_v25, 0.0 }
 0x46f   :  { %v679_v21 = vsel %vm407_vm8, %v674_v19, -inf }
 0x470   :  { %680 = vmax.xlane.f32.xlu1 %v679_v21  ;;  %590 = vmax.xlane.f32.xlu2 %v589_v22 }
 0x478   :  { %489 = vadd.xlane.f32.xlu1 %v488_v24  ;;  %v3242_v24 = vld [vmem:[%s3658_s6] sm:$0xff] }
 0x480   :  { %599 = vadd.xlane.f32.xlu1 %v598_v26 }
 0x488   :  { %500 = vrot.lane.b32.xlu2 %v3163_v9, %s2921_s30 }
 0x4d5   :  { %v493_v34 = vpop.xlane.xlu0 %492 }
 0x4db   :  { %v678_v16 = vpop.xlane.xlu2 %677 }
 0x4dc   :  { %v682_v27 = vsub.f32 %v672_v6, %v678_v16 }
 0x4de   :  { %v684_v28 = vmul.f32 1.442695, %v682_v27 }
 0x4e0   :  { %2751 = vpow2.f32 %v684_v28  ;;  %v742_v28 = vperm.slane %v3242_v24, 0 }
 0x4e3   :  { %v681_v29 = vpop.xlane.xlu1 %680  ;;  %v591_v30 = vpop.xlane.xlu2 %590 }
 0x4e4   :  { %v593_v31 = vsub.f32 %v584_v15, %v591_v30  ;;  %v683_v35 = vsub.f32 %v674_v19, %v681_v29  ;;  %v634_v15 = vsel %vm524_vm9, %v139_v14, 0  ;;  %v789_v14 = vperm.slane %v3242_v24, 1 }
 0x4e5   :  { %643 = vmatpush.bf16.msra.mxu1 %v634_v15 }
 0x4e6   :  { %v2752_v32 = vpop.eup %2751  ;;  %v596_v33 = vmul.f32 1.442695, %v593_v31  ;;  %v686_v37 = vmul.f32 1.442695, %v683_v35 }
 0x4e7   :  { %v688_v36 = vsel %vm407_vm8, %v2752_v32, 0.0 }
 0x4e8   :  { %689 = vadd.xlane.f32.xlu1 %v688_v36  ;;  %2753 = vpow2.f32 %v596_v33 }
 0x4e9   :  { %2755 = vrcp.f32 %v493_v34 }
 0x4eb   :  { %v490_v38 = vpop.xlane.xlu1 %489  ;;  %v501_v39 = vpop.permute.xlu2 %500 }
 0x4ec   :  { %2757 = vrcp.f32 %v490_v38  ;;  %513 = vmatpush.bf16.msrb.mxu0 %v501_v39 }
 0x4ed   :  { %2759 = vpow2.f32 %v686_v37 }
 0x4ee   :  { %v2754_v40 = vpop.eup %2753 }
 0x4ef   :  { %v2756_v41 = vpop.eup %2755  ;;  %v601_v42 = vsel %vm407_vm8, %v2754_v40, 0.0 }
 0x4f0   :  { %602 = vadd.xlane.f32.xlu0 %v601_v42  ;;  %v497_v44 = vmul.f32 %v2756_v41, %v2746_v1 }
 0x4f2   :  { %v2758_v43 = vpop.eup %2757 }
 0x4f3   :  { %v496_v45 = vmul.f32 %v2758_v43, %v2748_v23  ;;  %v2760_v46 = vpop.eup %2759  ;;  %v600_v51 = vpop.xlane.xlu1 %599 }
 0x4f4   :  { %v691_v48 = vsel %vm407_vm8, %v2760_v46, 0.0 }
 0x4f5   :  { %v498_v47 = vpack.c.bf16 %v497_v44, %v496_v45 }
 0x4f7   :  { %2282 = vmatmul.msk.bf16.vlgmr.msrb.gmra.mxu0 %vm407_vm8, %v498_v47  ;;  %v2634_v47 = vld [vmem:[#allocation4 + $0x28] sm:$0xff] }
 0x4f8   :  { %692 = vadd.xlane.f32.xlu0 %v691_v48  ;;  %v2633_v48 = vld [vmem:[#allocation4 + $0x20] sm:$0xff] }
 0x501   :  { %699 = vrot.lane.b32.xlu1 %v3163_v9, %s2923_s11 }
 0x50c   :  { %609 = vrot.lane.b32.xlu0 %v3163_v9, %s2922_s10 }
 0x55b   :  { %v690_v7 = vpop.xlane.xlu1 %689 }
 0x55c   :  { %2761 = vrcp.f32 %v690_v7  ;;  %v2629_v7 = vld [vmem:[#allocation4] sm:$0xff] }
 0x562   :  { %v2762_v56 = vpop.eup %2761 }
 0x563   :  { %v603_v54 = vpop.xlane.xlu0 %602  ;;  %v696_v58 = vmul.f32 %v2762_v56, %v2752_v32 }
 0x56b   :  { %v693_v55 = vpop.xlane.xlu0 %692 }
 0x56c   :  { %2763 = vrcp.f32 %v693_v55 }
 0x56d   :  { %2765 = vrcp.f32 %v603_v54 }
 0x56e   :  { %2767 = vrcp.f32 %v600_v51  ;;  %v2630_v51 = vld [vmem:[#allocation4 + $0x8] sm:$0xff] }
 0x572   :  { %v2764_v12 = vpop.eup %2763 }
 0x573   :  { %v700_v57 = vpop.permute.xlu1 %699  ;;  %v697_v59 = vmul.f32 %v2764_v12, %v2760_v46  ;;  %v2766_v62 = vpop.eup %2765  ;;  %v2636_v46 = vld [vmem:[#allocation4 + $0x38] sm:$0xff] }
 0x574   :  { %v515_v61 = vpop.f32.mrf.mxu0  ;;  %712 = vmatpush.bf16.msra.mxu3 %v700_v57  ;;  %v2768_v63 = vpop.eup %2767  ;;  %v607_v2 = vmul.f32 %v2766_v62, %v2754_v40 }
 0x575   :  { %v698_v9 = vpack.c.bf16 %v697_v59, %v696_v58  ;;  %v606_v5 = vmul.f32 %v2768_v63, %v3216_v25 }
 0x577   :  { %2289 = vmatmul.msk.bf16.vlgmr.msra.gmra.mxu3 %vm407_vm8, %v698_v9  ;;  %v608_v8 = vpack.c.bf16 %v607_v2, %v606_v5 }
 0x57c   :  { %v517_v1 = vpop.f32.mrf.mxu0 }
 0x57d   :  { %v520_v4 = vpack.c.bf16 %v517_v1, %v515_v61 }
 0x57e   :  { %v610_v6 = vpop.permute.xlu0 %609 }
 0x57f   :  { %2283 = vmatmul.msk.bf16.vlgmr.msrb.gmra.mxu1 %vm386_vm7, %v520_v4  ;;  %622 = vmatpush.bf16.msra.mxu0 %v610_v6 }
 0x580   :  { %845 = vmatpush.bf16.msrb.mxu1 %v2636_v46 }
 0x582   :  { %2286 = vmatmul.msk.bf16.vlgmr.msra.gmra.mxu0 %vm407_vm8, %v608_v8 }
 0x583   :  { %733 = vmatpush.bf16.msrb.mxu0 %v724_v13 }
 0x5fa   :  { %v714_v17 = vpop.f32.mrf.mxu3 }
 0x5fc   :  { %v537_v11 = vpop.f32.mrf.mxu1 }
 0x5fd   :  { %v558_v25 = vadd.f32 %v3204_v60, %v537_v11 }
 0x5ff   :  { %v624_v18 = vpop.f32.mrf.mxu0 }
 0x602   :  { %v716_v19 = vpop.f32.mrf.mxu3 }
 0x603   :  { %v719_v20 = vpack.c.bf16 %v716_v19, %v714_v17 }
 0x604   :  { %v539_v23 = vpop.f32.mrf.mxu1 }
 0x605   :  { %2290 = vmatmul.msk.bf16.vlgmr.msrb.gmra.mxu0 %vm386_vm7, %v719_v20  ;;  %v560_v31 = vadd.f32 %v3206_v0, %v539_v23  ;;  %v792_v20 = vperm.slane %v3242_v24, 2 }
 0x607   :  { %v626_v21 = vpop.f32.mrf.mxu0 }
 0x608   :  { %v629_v22 = vpack.c.bf16 %v626_v21, %v624_v18 }
 0x60a   :  { %2287 = vmatmul.msk.bf16.vlgmr.msra.gmra.mxu1 %vm386_vm7, %v629_v22 }
 0x682   :  { %v735_v26 = vpop.f32.mrf.mxu0 }
 0x687   :  { %v645_v16 = vpop.f32.mrf.mxu1 }
 0x688   :  { %v650_v27 = vadd.f32 %v645_v16, %v558_v25  ;;  %v796_v25 = vperm.slane %v3242_v24, 3 }
 0x68a   :  { %v740_v29 = vadd.f32 %v735_v26, %v650_v27  ;;  %v737_v35 = vpop.f32.mrf.mxu0 }
 0x68c   :  { %v743_v30 = vadd.f32 %v742_v28, %v740_v29 }
 0x68e   :  { %v745_v32 = vadd.f32 %v743_v30, %v3153_v52 }
 0x68f   :  { %v647_v33 = vpop.f32.mrf.mxu1 }
 0x690   :  { %v651_v34 = vadd.f32 %v647_v33, %v560_v31  ;;  %747 = vadd.xlane.f32.xlu2 %v745_v32 }
 0x692   :  { %v741_v36 = vadd.f32 %v737_v35, %v651_v34 }
 0x694   :  { %v744_v37 = vadd.f32 %v742_v28, %v741_v36 }
 0x696   :  { %v746_v38 = vadd.f32 %v744_v37, %v3155_v53  ;;  %v2635_v53 = vld [vmem:[#allocation4 + $0x30] sm:$0xff] }
 0x697   :  { %846 = vmatpush.bf16.msrb.mxu1 %v2635_v53 }
 0x698   :  { %749 = vadd.xlane.f32.xlu0 %v746_v38 }
 0x69b   :  { %847 = vmatpush.bf16.msrb.mxu1 %v2634_v47 }
 0x69f   :  { %848 = vmatpush.bf16.msrb.mxu1 %v2633_v48 }
 0x6a3   :  { %849 = vmatpush.bf16.msrb.mxu1 %v2632_v49 }
 0x6a7   :  { %850 = vmatpush.bf16.msrb.mxu1 %v2631_v50 }
 0x6ab   :  { %851 = vmatpush.bf16.msrb.mxu1 %v2630_v51  ;;  %v2644_v51 = vld [vmem:[#allocation4 + $0x78] sm:$0xff] }
 0x6ac   :  { %1009 = vmatpush.bf16.msrb.mxu2 %v2644_v51 }
 0x6af   :  { %852 = vmatpush.bf16.msrb.mxu1 %v2629_v7 }
 0x703   :  { %v748_v60 = vpop.xlane.xlu2 %747 }
 0x704   :  { %v751_v39 = vmul.f32 0.03125, %v748_v60 }
 0x706   :  { %v753_v40 = vsub.f32 %v745_v32, %v751_v39 }
 0x708   :  { %v755_v41 = vsel %vm87_vm0, %v753_v40, 0.0 }
 0x709   :  { %v757_v42 = vmul.f32 %v755_v41, %v755_v41 }
 0x70b   :  { %759 = vadd.xlane.f32.xlu1 %v757_v42  ;;  %v750_v0 = vpop.xlane.xlu0 %749 }
 0x70c   :  { %v752_v43 = vmul.f32 0.03125, %v750_v0 }
 0x70e   :  { %v754_v52 = vsub.f32 %v746_v38, %v752_v43 }
 0x710   :  { %v756_v44 = vsel %vm87_vm0, %v754_v52, 0.0 }
 0x711   :  { %v758_v45 = vmul.f32 %v756_v44, %v756_v44 }
 0x713   :  { %761 = vadd.xlane.f32.xlu2 %v758_v45 }
 0x77e   :  { %v760_v54 = vpop.xlane.xlu1 %759 }
 0x77f   :  { %v763_v55 = vmul.f32 0.03125, %v760_v54 }
 0x781   :  { %v765_v56 = vadd.f32 1e-12, %v763_v55 }
 0x783   :  { %2769 = vrsqrt.f32 %v765_v56  ;;  %vm773_vm11 = vweird.f32 %v765_v56 }
 0x786   :  { %v762_v12 = vpop.xlane.xlu2 %761 }
 0x787   :  { %v764_v57 = vmul.f32 0.03125, %v762_v12 }
 0x789   :  { %v2770_v58 = vpop.eup %2769  ;;  %v766_v59 = vadd.f32 1e-12, %v764_v57  ;;  %v2643_v57 = vld [vmem:[#allocation4 + $0x70] sm:$0xff] }
 0x78a   :  { %v768_v61 = vmul.f32 %v2770_v58, %v765_v56  ;;  %vm774_vm10 = vweird.f32 %v2770_v58  ;;  %1010 = vmatpush.bf16.msrb.mxu2 %v2643_v57 }
 0x78b   :  { %2771 = vrsqrt.f32 %v766_v59  ;;  %vm775_vm12 = vmor %vm773_vm11, %vm774_vm10  ;;  %vm783_vm14 = vweird.f32 %v766_v59 }
 0x78c   :  { %v769_v9 = vmul.f32 %v2770_v58, %v768_v61 }
 0x78e   :  { %v770_v62 = vmul.f32 0.5, %v769_v9 }
 0x790   :  { %v771_v63 = vsub.f32 1.5, %v770_v62 }
 0x791   :  { %v2772_v1 = vpop.eup %2771 }
 0x792   :  { %v772_v2 = vmul.f32 %v2770_v58, %v771_v63  ;;  %v778_v4 = vmul.f32 %v2772_v1, %v766_v59  ;;  %vm784_vm13 = vweird.f32 %v2772_v1  ;;  %v2642_v63 = vld [vmem:[#allocation4 + $0x68] sm:$0xff] }
 0x793   :  { %vm785_vm15 = vmor %vm783_vm14, %vm784_vm13  ;;  %1011 = vmatpush.bf16.msrb.mxu2 %v2642_v63 }
 0x794   :  { %v779_v5 = vmul.f32 %v2772_v1, %v778_v4  ;;  %v776_v6 = vsel %vm775_vm12, %v2770_v58, %v772_v2 }
 0x795   :  { %v787_v13 = vmul.f32 %v776_v6, %v755_v41  ;;  %v2641_v6 = vld [vmem:[#allocation4 + $0x60] sm:$0xff] }
 0x796   :  { %v780_v8 = vmul.f32 0.5, %v779_v5 }
 0x797   :  { %v790_v19 = vmul.f32 %v789_v14, %v787_v13  ;;  %1012 = vmatpush.bf16.msrb.mxu2 %v2641_v6 }
 0x798   :  { %v781_v10 = vsub.f32 1.5, %v780_v8 }
 0x799   :  { %v3255_v22 = vadd.f32 %v792_v20, %v790_v19 }
 0x79a   :  { %v782_v15 = vmul.f32 %v2772_v1, %v781_v10 }
 0x79c   :  { %v786_v17 = vsel %vm785_vm15, %v2772_v1, %v782_v15  ;;  %v2640_v15 = vld [vmem:[#allocation4 + $0x58] sm:$0xff] }
 0x79d   :  { %v788_v18 = vmul.f32 %v786_v17, %v756_v44  ;;  %1013 = vmatpush.bf16.msrb.mxu2 %v2640_v15 }
 0x79f   :  { %v791_v21 = vmul.f32 %v789_v14, %v788_v18 }
 0x7a1   :  { %v3257_v11 = vadd.f32 %v792_v20, %v791_v21  ;;  %v2639_v21 = vld [vmem:[#allocation4 + $0x50] sm:$0xff] }
 0x7a2   :  { %1014 = vmatpush.bf16.msrb.mxu2 %v2639_v21  ;;  %v2707_v21 = vld [vmem:[%s3654_s2 + $0x170] sm:$0xf0] }
 0x7a3   :  { %v795_v23 = vpack.c.bf16 %v3257_v11, %v3255_v22 }
 0x7a5   :  { %853 = vmatmul.bf16.vlgmr.msrb.gmra.mxu1 %v795_v23 }
 0x822   :  { %v854_v26 = vpop.f32.mrf.mxu1 }
 0x823   :  { %v3262_v16 = vadd.f32 %v854_v26, %v796_v25 }
 0x825   :  { %v3265_v27 = vmul.f32 0.70710677, %v3262_v16 }
 0x827   :  { %v3268_v28 = vand.u32 2147483647, %v3265_v27  ;;  %vm947_vm12 = vcmp.ge.f32.partialorder %v3265_v27, 0.0  ;;  %v960_v27 = vperm.slane %v3242_v24, 4 }
 0x829   :  { %v865_v29 = vmul.f32 0.5, %v3268_v28 }
 0x82a   :  { %v856_v30 = vpop.f32.mrf.mxu1 }
 0x82b   :  { %v867_v31 = vadd.f32 1.0, %v865_v29  ;;  %v3271_v32 = vadd.f32 %v856_v30, %v796_v25  ;;  %v2638_v30 = vld [vmem:[#allocation4 + $0x48] sm:$0xff] }
 0x82c   :  { %1015 = vmatpush.bf16.msrb.mxu2 %v2638_v30  ;;  %v2708_v30 = vld [vmem:[%s3654_s2 + $0x178] sm:$0xf0] }
 0x82d   :  { %2773 = vrcp.f32 %v867_v31  ;;  %v3274_v33 = vmul.f32 0.70710677, %v3271_v32  ;;  %v880_v39 = vand.u32 2147483648, %v867_v31  ;;  %v878_v41 = vand.u32 2147483647, %v867_v31 }
 0x82e   :  { %vm874_vm2 = vweird.f32 %v867_v31 }
 0x82f   :  { %v3277_v34 = vand.u32 2147483647, %v3274_v33  ;;  %v881_v0 = vor.u32 1.1754944e-38, %v880_v39  ;;  %vm879_vm4 = vcmp.eq.f32.partialorder %v878_v41, 8.507059e+37  ;;  %vm948_vm13 = vcmp.ge.f32.partialorder %v3274_v33, 0.0 }
 0x831   :  { %v866_v35 = vmul.f32 0.5, %v3277_v34 }
 0x833   :  { %v2774_v36 = vpop.eup %2773  ;;  %v868_v38 = vadd.f32 1.0, %v866_v35 }
 0x834   :  { %v870_v37 = vmul.f32 %v2774_v36, %v867_v31  ;;  %vm875_vm1 = vweird.f32 %v2774_v36 }
 0x835   :  { %2775 = vrcp.f32 %v868_v38  ;;  %vm876_vm3 = vmor %vm874_vm2, %vm875_vm1  ;;  %v895_v48 = vand.u32 2147483648, %v868_v38  ;;  %v893_v50 = vand.u32 2147483647, %v868_v38  ;;  %vm889_vm6 = vweird.f32 %v868_v38 }
 0x836   :  { %v871_v60 = vsub.f32 1.0, %v870_v37  ;;  %v935_v37 = vsub.f32 0.0, %v3268_v28 }
 0x837   :  { %v896_v56 = vor.u32 1.1754944e-38, %v895_v48  ;;  %vm894_vm11 = vcmp.eq.f32.partialorder %v893_v50, 8.507059e+37 }
 0x838   :  { %v872_v40 = vmul.f32 %v2774_v36, %v871_v60  ;;  %v2637_v60 = vld [vmem:[#allocation4 + $0x40] sm:$0xff] }
 0x839   :  { %1016 = vmatpush.bf16.msrb.mxu2 %v2637_v60 }
 0x83a   :  { %v873_v42 = vadd.f32 %v2774_v36, %v872_v40 }
 0x83b   :  { %v2776_v43 = vpop.eup %2775 }
 0x83c   :  { %v877_v52 = vsel %vm876_vm3, %v2774_v36, %v873_v42  ;;  %v885_v45 = vmul.f32 %v2776_v43, %v868_v38  ;;  %vm890_vm5 = vweird.f32 %v2776_v43  ;;  %v937_v42 = vmul.f32 %v935_v37, %v3268_v28  ;;  %v2704_v37 = vld [vmem:[%s3654_s2 + $0x158] sm:$0xf0] }
 0x83d   :  { %v3280_v44 = vsel %vm879_vm4, %v881_v0, %v877_v52  ;;  %vm891_vm10 = vmor %vm889_vm6, %vm890_vm5 }
 0x83e   :  { %v899_v46 = vmul.f32 0.17087276, %v3280_v44  ;;  %v886_v53 = vsub.f32 1.0, %v885_v45 }
 0x840   :  { %v901_v47 = vadd.f32 -0.82215226, %v899_v46  ;;  %v887_v49 = vmul.f32 %v2776_v43, %v886_v53  ;;  %v936_v53 = vsub.f32 0.0, %v3277_v34 }
 0x842   :  { %v903_v54 = vmul.f32 %v901_v47, %v3280_v44  ;;  %v888_v7 = vadd.f32 %v2776_v43, %v887_v49  ;;  %v938_v49 = vmul.f32 %v936_v53, %v3277_v34  ;;  %v2455_v53 = vld [vmem:[%s3654_s2 + $0x144] sm:$0xf0] }
 0x844   :  { %v905_v55 = vadd.f32 1.4885159, %v903_v54  ;;  %v892_v12 = vsel %vm891_vm10, %v2776_v43, %v888_v7 }
 0x845   :  { %v3285_v59 = vsel %vm894_vm11, %v896_v56, %v892_v12  ;;  %v859_v12 = vmul.f32 0.5, %v3262_v16 }
 0x846   :  { %v907_v58 = vmul.f32 %v905_v55, %v3280_v44  ;;  %v900_v61 = vmul.f32 0.17087276, %v3285_v59 }
 0x848   :  { %v909_v9 = vadd.f32 -1.135204, %v907_v58  ;;  %v902_v62 = vadd.f32 -0.82215226, %v900_v61 }
 0x84a   :  { %v911_v1 = vmul.f32 %v909_v9, %v3280_v44  ;;  %v904_v2 = vmul.f32 %v902_v62, %v3285_v59 }
 0x84c   :  { %v913_v4 = vadd.f32 0.27886808, %v911_v1  ;;  %v906_v5 = vadd.f32 1.4885159, %v904_v2 }
 0x84e   :  { %v915_v8 = vmul.f32 %v913_v4, %v3280_v44  ;;  %v908_v10 = vmul.f32 %v906_v5, %v3285_v59 }
 0x850   :  { %v917_v13 = vadd.f32 -0.18628806, %v915_v8  ;;  %v910_v14 = vadd.f32 -1.135204, %v908_v10 }
 0x852   :  { %v919_v17 = vmul.f32 %v917_v13, %v3280_v44  ;;  %v912_v18 = vmul.f32 %v910_v14, %v3285_v59 }
 0x854   :  { %v921_v19 = vadd.f32 0.09678418, %v919_v17  ;;  %v914_v20 = vadd.f32 0.27886808, %v912_v18 }
 0x856   :  { %v923_v23 = vmul.f32 %v921_v19, %v3280_v44  ;;  %v916_v25 = vmul.f32 %v914_v20, %v3285_v59  ;;  %v2477_v20 = vld [vmem:[%s3654_s2 + $0x168] sm:$0xf] }
 0x858   :  { %v925_v26 = vadd.f32 0.37409195, %v923_v23  ;;  %v918_v29 = vadd.f32 -0.18628806, %v916_v25  ;;  %v2706_v23 = vld [vmem:[%s3654_s2 + $0x16c] sm:$0xf]  ;;  %v2478_v25 = vor.u32 %v2707_v21, %v2477_v20 }
 0x859   :  { %v2690_v20 = vld [vmem:[%s3654_s2 + $0xe8] sm:$0xf0] }
 0x85a   :  { %v927_v31 = vmul.f32 %v925_v26, %v3280_v44  ;;  %v920_v35 = vmul.f32 %v918_v29, %v3285_v59  ;;  %v2479_v26 = vld [vmem:[%s3654_s2 + $0x174] sm:$0xf0]  ;;  %v2485_v29 = vld [vmem:[%s3654_s2 + $0x170] sm:$0xf]  ;;  %1284 = vmatpush.bf16.msrb.mxu3 %v2478_v25 }
 0x85c   :  { %v929_v36 = vadd.f32 1.0000237, %v927_v31  ;;  %v922_v38 = vadd.f32 0.09678418, %v920_v35  ;;  %v2482_v31 = vor.u32 %v2706_v23, %v2479_v26  ;;  %v2486_v35 = vor.u32 %v2708_v30, %v2485_v29  ;;  %v2393_v26 = vld [vmem:[%s3654_s2 + $0xc0] sm:$0xf] }
 0x85d   :  { %v2686_v29 = vld [vmem:[%s3654_s2 + $0xc8] sm:$0xf0]  ;;  %v2685_v30 = vld [vmem:[%s3654_s2 + $0xc4] sm:$0xf] }
 0x85e   :  { %v931_v39 = vmul.f32 %v929_v36, %v3280_v44  ;;  %v924_v40 = vmul.f32 %v922_v38, %v3285_v59  ;;  %1298 = vmatpush.bf16.msra.mxu0 %v2482_v31  ;;  %1312 = vmatpush.bf16.msra.mxu1 %v2486_v35  ;;  %v2465_v36 = vld [vmem:[%s3654_s2 + $0x150] sm:$0xf]  ;;  %v2703_v38 = vld [vmem:[%s3654_s2 + $0x154] sm:$0xf]  ;;  %v2394_v35 = vor.u32 %v2686_v29, %v2393_v26 }
 0x85f   :  { %v2466_v60 = vor.u32 %v2704_v37, %v2465_v36  ;;  %v2395_v36 = vld [vmem:[%s3654_s2 + $0xcc] sm:$0xf0]  ;;  %v2401_v37 = vld [vmem:[%s3654_s2 + $0xc8] sm:$0xf] }
 0x860   :  { %v933_v41 = vadd.f32 -1.2655122, %v931_v39  ;;  %v926_v0 = vadd.f32 0.37409195, %v924_v40  ;;  %v2467_v39 = vld [vmem:[%s3654_s2 + $0x15c] sm:$0xf0] }
 0x861   :  { %v2473_v40 = vld [vmem:[%s3654_s2 + $0x158] sm:$0xf]  ;;  %1285 = vmatpush.bf16.msrb.mxu3 %v2466_v60  ;;  %v2687_v60 = vld [vmem:[%s3654_s2 + $0xd0] sm:$0xf0] }
 0x862   :  { %v939_v43 = vadd.f32 %v937_v42, %v933_v41  ;;  %v928_v52 = vmul.f32 %v926_v0, %v3285_v59  ;;  %v2705_v41 = vld [vmem:[%s3654_s2 + $0x160] sm:$0xf0]  ;;  %v2470_v42 = vor.u32 %v2703_v38, %v2467_v39  ;;  %v2398_v38 = vor.u32 %v2685_v30, %v2395_v36 }
 0x863   :  { %v2474_v0 = vor.u32 %v2705_v41, %v2473_v40  ;;  %v2402_v40 = vor.u32 %v2687_v60, %v2401_v37 }
 0x864   :  { %v941_v45 = vmul.f32 1.442695, %v939_v43  ;;  %v930_v46 = vadd.f32 1.0000237, %v928_v52  ;;  %1299 = vmatpush.bf16.msra.mxu0 %v2470_v42  ;;  %v2453_v43 = vld [vmem:[%s3654_s2 + $0x138] sm:$0xf] }
 0x865   :  { %1313 = vmatpush.bf16.msra.mxu1 %v2474_v0  ;;  %v2701_v52 = vld [vmem:[%s3654_s2 + $0x140] sm:$0xf0] }
 0x866   :  { %2777 = vpow2.f32 %v941_v45  ;;  %v932_v47 = vmul.f32 %v930_v46, %v3285_v59  ;;  %v2700_v45 = vld [vmem:[%s3654_s2 + $0x13c] sm:$0xf]  ;;  %v2454_v46 = vor.u32 %v2701_v52, %v2453_v43 }
 0x868   :  { %v934_v48 = vadd.f32 -1.2655122, %v932_v47  ;;  %v2461_v47 = vld [vmem:[%s3654_s2 + $0x140] sm:$0xf]  ;;  %1286 = vmatpush.bf16.msrb.mxu3 %v2454_v46 }
 0x86a   :  { %v940_v50 = vadd.f32 %v938_v49, %v934_v48  ;;  %v2702_v48 = vld [vmem:[%s3654_s2 + $0x148] sm:$0xf0]  ;;  %v2458_v49 = vor.u32 %v2700_v45, %v2455_v53 }
 0x86c   :  { %v2778_v51 = vpop.eup %2777  ;;  %v943_v7 = vmul.f32 1.442695, %v940_v50  ;;  %v2462_v50 = vor.u32 %v2702_v48, %v2461_v47  ;;  %1300 = vmatpush.bf16.msra.mxu0 %v2458_v49 }
 0x86d   :  { %v945_v54 = vmul.f32 %v2778_v51, %v3280_v44  ;;  %v860_v44 = vmul.f32 0.5, %v3271_v32  ;;  %v2441_v51 = vld [vmem:[%s3654_s2 + $0x120] sm:$0xf] }
 0x86e   :  { %2779 = vpow2.f32 %v943_v7  ;;  %1314 = vmatpush.bf16.msra.mxu1 %v2462_v50  ;;  %v2697_v7 = vld [vmem:[%s3654_s2 + $0x124] sm:$0xf] }
 0x86f   :  { %v949_v28 = vsub.f32 1.0, %v945_v54  ;;  %v2323_v55 = vadd.f32 -1.0, %v945_v54  ;;  %v2698_v54 = vld [vmem:[%s3654_s2 + $0x128] sm:$0xf0] }
 0x871   :  { %v953_v56 = vsel %vm947_vm12, %v949_v28, %v2323_v55  ;;  %v2442_v28 = vor.u32 %v2698_v54, %v2441_v51  ;;  %v2443_v55 = vld [vmem:[%s3654_s2 + $0x12c] sm:$0xf0] }
 0x872   :  { %v955_v57 = vadd.f32 1.0, %v953_v56  ;;  %v2449_v56 = vld [vmem:[%s3654_s2 + $0x128] sm:$0xf] }
 0x873   :  { %1287 = vmatpush.bf16.msrb.mxu3 %v2442_v28 }
 0x874   :  { %v957_v58 = vmul.f32 %v955_v57, %v859_v12  ;;  %v2780_v61 = vpop.eup %2779  ;;  %v2699_v12 = vld [vmem:[%s3654_s2 + $0x130] sm:$0xf0]  ;;  %v2446_v57 = vor.u32 %v2697_v7, %v2443_v55  ;;  %v1067_v55 = vperm.slane %v3242_v24, 5 }
 0x875   :  { %v946_v9 = vmul.f32 %v2780_v61, %v3285_v59  ;;  %v2429_v61 = vld [vmem:[%s3654_s2 + $0x108] sm:$0xf] }
 0x876   :  { %1301 = vmatpush.bf16.msra.mxu0 %v2446_v57 }
 0x877   :  { %v950_v62 = vsub.f32 1.0, %v946_v9  ;;  %v2324_v34 = vadd.f32 -1.0, %v946_v9  ;;  %v2695_v9 = vld [vmem:[%s3654_s2 + $0x110] sm:$0xf0] }
 0x879   :  { %v954_v63 = vsel %vm948_vm13, %v950_v62, %v2324_v34  ;;  %v2694_v62 = vld [vmem:[%s3654_s2 + $0x10c] sm:$0xf]  ;;  %v2430_v34 = vor.u32 %v2695_v9, %v2429_v61  ;;  %v1070_v61 = vperm.slane %v3242_v24, 6 }
 0x87a   :  { %v956_v1 = vadd.f32 1.0, %v954_v63  ;;  %v2431_v63 = vld [vmem:[%s3654_s2 + $0x114] sm:$0xf0] }
 0x87b   :  { %1288 = vmatpush.bf16.msrb.mxu3 %v2430_v34 }
 0x87c   :  { %v958_v2 = vmul.f32 %v956_v1, %v860_v44  ;;  %v2437_v44 = vld [vmem:[%s3654_s2 + $0x110] sm:$0xf]  ;;  %v2696_v1 = vld [vmem:[%s3654_s2 + $0x118] sm:$0xf0] }
 0x87e   :  { %v959_v4 = vpack.c.bf16 %v958_v2, %v957_v58  ;;  %v2450_v58 = vor.u32 %v2699_v12, %v2449_v56  ;;  %v2434_v2 = vor.u32 %v2694_v62, %v2431_v63 }
 0x880   :  { %1017 = vmatmul.bf16.vlgmr.msrb.gmra.mxu2 %v959_v4  ;;  %1315 = vmatpush.bf16.msra.mxu1 %v2450_v58  ;;  %v2438_v4 = vor.u32 %v2696_v1, %v2437_v44 }
 0x881   :  { %1302 = vmatpush.bf16.msra.mxu0 %v2434_v2 }
 0x884   :  { %1316 = vmatpush.bf16.msra.mxu1 %v2438_v4 }
 0x903   :  { %v1018_v5 = vpop.f32.mrf.mxu2 }
 0x904   :  { %v1019_v16 = vadd.f32 %v1018_v5, %v960_v27  ;;  %v2692_v5 = vld [vmem:[%s3654_s2 + $0xf8] sm:$0xf0] }
 0x906   :  { %v1023_v6 = vadd.f32 %v1019_v16, %v3255_v22  ;;  %v2691_v16 = vld [vmem:[%s3654_s2 + $0xf4] sm:$0xf] }
 0x908   :  { %1025 = vadd.xlane.f32.xlu2 %v1023_v6 }
 0x90b   :  { %v1020_v8 = vpop.f32.mrf.mxu2 }
 0x90c   :  { %v1021_v59 = vadd.f32 %v1020_v8, %v960_v27  ;;  %v2417_v27 = vld [vmem:[%s3654_s2 + $0xf0] sm:$0xf]  ;;  %v2419_v8 = vld [vmem:[%s3654_s2 + $0xfc] sm:$0xf0] }
 0x90e   :  { %v1024_v10 = vadd.f32 %v1021_v59, %v3257_v11  ;;  %v2425_v59 = vld [vmem:[%s3654_s2 + $0xf8] sm:$0xf] }
 0x910   :  { %1027 = vadd.xlane.f32.xlu2 %v1024_v10 }
 0x97b   :  { %v1026_v33 = vpop.xlane.xlu2 %1025 }
 0x97c   :  { %v1029_v13 = vmul.f32 0.03125, %v1026_v33  ;;  %v2422_v33 = vor.u32 %v2691_v16, %v2419_v8 }
 0x97e   :  { %v1031_v14 = vsub.f32 %v1023_v6, %v1029_v13  ;;  %v2418_v6 = vor.u32 %v2692_v5, %v2417_v27  ;;  %1303 = vmatpush.bf16.msra.mxu0 %v2422_v33 }
 0x980   :  { %v3317_v32 = vsel %vm87_vm0, %v1031_v14, 0.0  ;;  %1289 = vmatpush.bf16.msrb.mxu3 %v2418_v6  ;;  %v2405_v14 = vld [vmem:[%s3654_s2 + $0xd8] sm:$0xf] }
 0x981   :  { %v1035_v15 = vmul.f32 %v3317_v32, %v3317_v32 }
 0x983   :  { %1037 = vadd.xlane.f32.xlu0 %v1035_v15  ;;  %v1028_v17 = vpop.xlane.xlu2 %1027  ;;  %v2689_v15 = vld [vmem:[%s3654_s2 + $0xe0] sm:$0xf0] }
 0x984   :  { %v1030_v18 = vmul.f32 0.03125, %v1028_v17  ;;  %v2688_v17 = vld [vmem:[%s3654_s2 + $0xdc] sm:$0xf] }
 0x986   :  { %v1032_v22 = vsub.f32 %v1024_v10, %v1030_v18  ;;  %v2693_v10 = vld [vmem:[%s3654_s2 + $0x100] sm:$0xf0]  ;;  %v2406_v18 = vor.u32 %v2689_v15, %v2405_v14 }
 0x987   :  { %v2426_v13 = vor.u32 %v2693_v10, %v2425_v59 }
 0x988   :  { %v3323_v19 = vsel %vm87_vm0, %v1032_v22, 0.0  ;;  %v2407_v22 = vld [vmem:[%s3654_s2 + $0xe4] sm:$0xf0]  ;;  %1290 = vmatpush.bf16.msrb.mxu3 %v2406_v18 }
 0x989   :  { %v1036_v11 = vmul.f32 %v3323_v19, %v3323_v19  ;;  %1317 = vmatpush.bf16.msra.mxu1 %v2426_v13  ;;  %v2410_v23 = vor.u32 %v2688_v17, %v2407_v22 }
 0x98b   :  { %1039 = vadd.xlane.f32.xlu1 %v1036_v11  ;;  %v2413_v11 = vld [vmem:[%s3654_s2 + $0xe0] sm:$0xf]  ;;  %1304 = vmatpush.bf16.msra.mxu0 %v2410_v23 }
 0x98c   :  { %v2414_v25 = vor.u32 %v2690_v20, %v2413_v11  ;;  %1291 = vmatpush.bf16.msrb.mxu3 %v2394_v35  ;;  %v3492_v11 = vld [vmem:[%s3653_s1] sm:$0xff] }
 0x98e   :  { %1318 = vmatpush.bf16.msra.mxu1 %v2414_v25  ;;  %v3499_v25 = vld [vmem:[%s3653_s1 + $0x8] sm:$0xff] }
 0x98f   :  { %1305 = vmatpush.bf16.msra.mxu0 %v2398_v38 }
 0x992   :  { %1319 = vmatpush.bf16.msra.mxu1 %v2402_v40 }
 0x9f6   :  { %v1038_v21 = vpop.xlane.xlu0 %1037 }
 0x9f7   :  { %v1041_v31 = vmul.f32 0.03125, %v1038_v21 }
 0x9f9   :  { %v1043_v39 = vadd.f32 1e-12, %v1041_v31 }
 0x9fb   :  { %2781 = vrsqrt.f32 %v1043_v39  ;;  %vm1051_vm15 = vweird.f32 %v1043_v39 }
 0x9fe   :  { %v1040_v41 = vpop.xlane.xlu1 %1039 }
 0x9ff   :  { %v1042_v42 = vmul.f32 0.03125, %v1040_v41 }
 0xa01   :  { %v2782_v0 = vpop.eup %2781  ;;  %v1044_v43 = vadd.f32 1e-12, %v1042_v42 }
 0xa02   :  { %v1046_v52 = vmul.f32 %v2782_v0, %v1043_v39  ;;  %vm1052_vm14 = vweird.f32 %v2782_v0 }
 0xa03   :  { %2783 = vrsqrt.f32 %v1044_v43  ;;  %vm1053_vm1 = vmor %vm1051_vm15, %vm1052_vm14  ;;  %vm1061_vm3 = vweird.f32 %v1044_v43 }
 0xa04   :  { %v1047_v45 = vmul.f32 %v2782_v0, %v1046_v52 }
 0xa06   :  { %v1048_v46 = vmul.f32 0.5, %v1047_v45 }
 0xa08   :  { %v1049_v53 = vsub.f32 1.5, %v1048_v46 }
 0xa09   :  { %v2784_v47 = vpop.eup %2783 }
 0xa0a   :  { %v1050_v48 = vmul.f32 %v2782_v0, %v1049_v53  ;;  %v1056_v49 = vmul.f32 %v2784_v47, %v1044_v43  ;;  %vm1062_vm2 = vweird.f32 %v2784_v47  ;;  %v1076_v43 = vld [vmem:[#allocation2 + $0x40] sm:$0xf] }
 0xa0b   :  { %vm1063_vm4 = vmor %vm1061_vm3, %vm1062_vm2  ;;  %v1485_v52 = vsel %vm524_vm9, %v1076_v43, 0 }
 0xa0c   :  { %v1057_v50 = vmul.f32 %v2784_v47, %v1056_v49  ;;  %v1054_v51 = vsel %vm1053_vm1, %v2782_v0, %v1050_v48 }
 0xa0d   :  { %v1065_v28 = vmul.f32 %v1054_v51, %v3317_v32 }
 0xa0e   :  { %v1058_v54 = vmul.f32 0.5, %v1057_v50 }
 0xa0f   :  { %v1068_v58 = vmul.f32 %v1067_v55, %v1065_v28 }
 0xa10   :  { %v1059_v7 = vsub.f32 1.5, %v1058_v54 }
 0xa11   :  { %v3475_v62 = vadd.f32 %v1070_v61, %v1068_v58 }
 0xa12   :  { %v1060_v56 = vmul.f32 %v2784_v47, %v1059_v7 }
 0xa14   :  { %v1064_v12 = vsel %vm1063_vm4, %v2784_v47, %v1060_v56 }
 0xa15   :  { %v1066_v57 = vmul.f32 %v1064_v12, %v3323_v19  ;;  %v2390_v19 = vld [vmem:[%s3655_s3 + $0x3] sm:$0x7] }
 0xa16   :  { %v1151_v1 = vperm.slane %v2390_v19, 1  ;;  %v1152_v2 = vperm.slane %v2390_v19, 2  ;;  %v1150_v33 = vperm.slane %v2390_v19, 0 }
 0xa17   :  { %v1069_v9 = vmul.f32 %v1067_v55, %v1066_v57 }
 0xa19   :  { %v3477_v34 = vadd.f32 %v1070_v61, %v1069_v9 }
 0xa1b   :  { %v1146_v63 = vpack.c.bf16 %v3477_v34, %v3475_v62 }
 0xa1d   :  { %1292 = vmatmul.bf16.vlgmr.msrb.gmra.mxu3 %v1146_v63  ;;  %1306 = vmatmul.bf16.vlgmr.msra.gmra.mxu0 %v1146_v63 }
 0xa1e   :  { %1320 = vmatmul.bf16.vlgmr.msra.gmra.mxu1 %v1146_v63 }
 0xa9a   :  { %v1307_v32 = vpop.f32.mrf.mxu0 }
 0xa9b   :  { %v1321_v44 = vpop.f32.mrf.mxu1  ;;  %v1308_v27 = vadd.f32 %v1307_v32, %v1151_v1 }
 0xa9c   :  { %v1322_v6 = vadd.f32 %v1321_v44, %v1152_v2 }
 0xaa0   :  { %v1293_v24 = vpop.f32.mrf.mxu3 }
 0xaa1   :  { %v1294_v17 = vadd.f32 %v1293_v24, %v1150_v33 }
 0xaa2   :  { %v1309_v4 = vpop.f32.mrf.mxu0 }
 0xaa3   :  { %v1310_v5 = vadd.f32 %v1309_v4, %v1151_v1  ;;  %v1323_v16 = vpop.f32.mrf.mxu1 }
 0xaa4   :  { %v1324_v8 = vadd.f32 %v1323_v16, %v1152_v2 }
 0xaa5   :  { %v1327_v59 = vpack.c.bf16 %v1310_v5, %v1308_v27 }
 0xaa6   :  { %v3484_v10 = vpack.c.bf16 %v1324_v8, %v1322_v6 }
 0xaa7   :  { %v1332_v13 = vsel %vm386_vm7, %v1327_v59, 0 }
 0xaa8   :  { %1382 = vmatpush.bf16.msra.mxu3 %v3484_v10  ;;  %v1295_v14 = vpop.f32.mrf.mxu3  ;;  %1341 = vmatpush.bf16.xpose.msra.mxu2 %v1332_v13 }
 0xaa9   :  { %v1296_v15 = vadd.f32 %v1295_v14, %v1150_v33 }
 0xaab   :  { %v1326_v18 = vpack.c.bf16 %v1296_v15, %v1294_v17 }
 0xaaf   :  { %2487 = vmatmul.msk.bf16.vlgmr.msra.gmra.mxu2 %vm386_vm7, %v1326_v18 }
 0xb32   :  { %v1343_v22 = vpop.f32.mrf.mxu2 }
 0xb33   :  { %v1344_v20 = vadd.f32 %v3492_v11, %v1343_v22 }
 0xb35   :  { %v1348_v21 = vsel %vm407_vm8, %v1344_v20, -inf }
 0xb36   :  { %1349 = vmax.xlane.f32.xlu2 %v1348_v21 }
 0xb3a   :  { %v1345_v23 = vpop.f32.mrf.mxu2 }
 0xb3b   :  { %v1346_v26 = vadd.f32 %v3499_v25, %v1345_v23 }
 0xb3d   :  { %v1351_v29 = vsel %vm407_vm8, %v1346_v26, -inf }
 0xb3e   :  { %1352 = vmax.xlane.f32.xlu0 %v1351_v29 }
 0xb52   :  { %1394 = vrot.lane.b32.xlu0 %v1327_v59, %s2921_s30 }
 0xb5a   :  { %1501 = vrot.lane.b32.xlu0 %v1326_v18, %s2922_s10 }
 0xb62   :  { %1591 = vrot.lane.b32.xlu0 %v1326_v18, %s2923_s11 }
 0xba9   :  { %v1350_v30 = vpop.xlane.xlu2 %1349 }
 0xbaa   :  { %v1354_v31 = vsub.f32 %v1344_v20, %v1350_v30 }
 0xbac   :  { %v1356_v35 = vmul.f32 1.442695, %v1354_v31 }
 0xbae   :  { %2785 = vpow2.f32 %v1356_v35 }
 0xbb1   :  { %v1353_v36 = vpop.xlane.xlu0 %1352 }
 0xbb2   :  { %v1355_v37 = vsub.f32 %v1346_v26, %v1353_v36 }
 0xbb4   :  { %v2786_v38 = vpop.eup %2785  ;;  %v1358_v60 = vmul.f32 1.442695, %v1355_v37 }
 0xbb5   :  { %v1360_v39 = vsel %vm407_vm8, %v2786_v38, 0.0 }
 0xbb6   :  { %2787 = vpow2.f32 %v1358_v60  ;;  %1361 = vadd.xlane.f32.xlu1 %v1360_v39 }
 0xbbc   :  { %v2788_v40 = vpop.eup %2787 }
 0xbbd   :  { %v1363_v41 = vsel %vm407_vm8, %v2788_v40, 0.0 }
 0xbbe   :  { %1364 = vadd.xlane.f32.xlu2 %v1363_v41 }
 0xbc4   :  { %v1395_v42 = vpop.permute.xlu0 %1394 }
 0xbc5   :  { %v1400_v0 = vsel %vm386_vm7, %v1395_v42, 0 }
 0xbc6   :  { %1409 = vmatpush.bf16.xpose.msrb.mxu0 %v1400_v0 }
 0xbcc   :  { %v1502_v7 = vpop.permute.xlu0 %1501 }
 0xbce   :  { %1494 = vmatpush.bf16.msra.mxu0 %v1485_v52 }
 0xbcf   :  { %1391 = vrot.lane.b32.xlu1 %v1326_v18, %s2921_s30 }
 0xbd4   :  { %v1592_v16 = vpop.permute.xlu0 %1591 }
 0xbd6   :  { %1503 = vrot.lane.b32.xlu2 %v1327_v59, %s2922_s10 }
 0xbd7   :  { %1593 = vrot.lane.b32.xlu1 %v1327_v59, %s2923_s11 }
 0xc29   :  { %v1362_v45 = vpop.xlane.xlu1 %1361 }
 0xc2a   :  { %2789 = vrcp.f32 %v1362_v45 }
 0xc30   :  { %v2790_v53 = vpop.eup %2789 }
 0xc31   :  { %v1365_v46 = vpop.xlane.xlu2 %1364  ;;  %v1368_v48 = vmul.f32 %v2790_v53, %v2786_v38 }
 0xc32   :  { %2791 = vrcp.f32 %v1365_v46 }
 0xc38   :  { %v2792_v47 = vpop.eup %2791 }
 0xc39   :  { %v1369_v49 = vmul.f32 %v2792_v47, %v2788_v40  ;;  %v1504_v50 = vpop.permute.xlu2 %1503 }
 0xc3a   :  { %v1509_v51 = vsel %vm386_vm7, %v1504_v50, 0 }
 0xc3b   :  { %v1370_v54 = vpack.c.bf16 %v1369_v49, %v1368_v48  ;;  %1518 = vmatpush.bf16.xpose.msrb.mxu1 %v1509_v51 }
 0xc3d   :  { %2488 = vmatmul.msk.bf16.vlgmr.msra.gmra.mxu3 %vm407_vm8, %v1370_v54 }
 0xc41   :  { %v1392_v28 = vpop.permute.xlu1 %1391 }
 0xc42   :  { %2489 = vmatmul.msk.bf16.vlgmr.msrb.gmra.mxu0 %vm386_vm7, %v1392_v28  ;;  %2493 = vmatmul.msk.bf16.vlgmr.msrb.gmra.mxu1 %vm386_vm7, %v1502_v7 }
 0xc49   :  { %v1594_v55 = vpop.permute.xlu1 %1593 }
 0xc4a   :  { %v1599_v56 = vsel %vm386_vm7, %v1594_v55, 0 }
 0xc4b   :  { %1608 = vmatpush.bf16.xpose.msrb.mxu0 %v1599_v56 }
 0xcbf   :  { %v1411_v12 = vpop.f32.mrf.mxu0  ;;  %v1520_v57 = vpop.f32.mrf.mxu1 }
 0xcc0   :  { %v1412_v58 = vadd.f32 %v3492_v11, %v1411_v12  ;;  %v1521_v61 = vadd.f32 %v3492_v11, %v1520_v57  ;;  %v1384_v9 = vpop.f32.mrf.mxu3 }
 0xcc2   :  { %v1416_v63 = vsel %vm407_vm8, %v1412_v58, -inf  ;;  %v1525_v32 = vsel %vm407_vm8, %v1521_v61, -inf }
 0xcc3   :  { %1417 = vmax.xlane.f32.xlu2 %v1416_v63  ;;  %1526 = vmax.xlane.f32.xlu0 %v1525_v32 }
 0xcc7   :  { %v1413_v44 = vpop.f32.mrf.mxu0  ;;  %v1522_v19 = vpop.f32.mrf.mxu1 }
 0xcc8   :  { %v1414_v1 = vadd.f32 %v3499_v25, %v1413_v44  ;;  %v1523_v2 = vadd.f32 %v3499_v25, %v1522_v19  ;;  %v1386_v24 = vpop.f32.mrf.mxu3 }
 0xcc9   :  { %v1389_v4 = vpack.c.bf16 %v1386_v24, %v1384_v9 }
 0xcca   :  { %v1419_v27 = vsel %vm407_vm8, %v1414_v1, -inf  ;;  %v1528_v5 = vsel %vm407_vm8, %v1523_v2, -inf }
 0xccb   :  { %1420 = vmax.xlane.f32.xlu1 %v1419_v27  ;;  %2492 = vmatmul.msk.bf16.vlgmr.msra.gmra.mxu0 %vm386_vm7, %v1389_v4  ;;  %v1077_v4 = vld [vmem:[#allocation2 + $0x44] sm:$0xf] }
 0xccc   :  { %1529 = vmax.xlane.f32.xlu2 %v1528_v5  ;;  %v1465_v5 = vsel %vm524_vm9, %v1077_v4, 0 }
 0xccd   :  { %1474 = vmatpush.bf16.msrb.mxu3 %v1465_v5 }
 0xcdb   :  { %2496 = vmatmul.msk.bf16.vlgmr.msrb.gmra.mxu0 %vm386_vm7, %v1592_v16 }
 0xd36   :  { %v1418_v6 = vpop.xlane.xlu2 %1417  ;;  %v1527_v8 = vpop.xlane.xlu0 %1526 }
 0xd37   :  { %v1422_v59 = vsub.f32 %v1412_v58, %v1418_v6  ;;  %v1531_v13 = vsub.f32 %v1521_v61, %v1527_v8 }
 0xd39   :  { %v1424_v33 = vmul.f32 1.442695, %v1422_v59  ;;  %v1533_v14 = vmul.f32 1.442695, %v1531_v13 }
 0xd3b   :  { %2793 = vpow2.f32 %v1424_v33 }
 0xd3c   :  { %2795 = vpow2.f32 %v1533_v14 }
 0xd3e   :  { %v1421_v21 = vpop.xlane.xlu1 %1420 }
 0xd3f   :  { %v1423_v26 = vsub.f32 %v1414_v1, %v1421_v21  ;;  %v1530_v30 = vpop.xlane.xlu2 %1529 }
 0xd40   :  { %v1532_v36 = vsub.f32 %v1523_v2, %v1530_v30 }
 0xd41   :  { %v2794_v15 = vpop.eup %2793  ;;  %v1426_v29 = vmul.f32 1.442695, %v1423_v26 }
 0xd42   :  { %v1428_v17 = vsel %vm407_vm8, %v2794_v15, 0.0  ;;  %v3529_v18 = vpop.eup %2795  ;;  %v1535_v38 = vmul.f32 1.442695, %v1532_v36 }
 0xd43   :  { %1429 = vadd.xlane.f32.xlu2 %v1428_v17  ;;  %v1537_v20 = vsel %vm407_vm8, %v3529_v18, 0.0  ;;  %2797 = vpow2.f32 %v1426_v29 }
 0xd44   :  { %2799 = vpow2.f32 %v1535_v38  ;;  %v3564_v38 = vld [vmem:[%s3658_s6 + $0x8] sm:$0xff] }
 0xd48   :  { %v3531_v22 = vpop.f32.mrf.mxu0 }
 0xd49   :  { %v2798_v60 = vpop.eup %2797 }
 0xd4a   :  { %v1431_v41 = vsel %vm407_vm8, %v2798_v60, 0.0  ;;  %v2800_v0 = vpop.eup %2799 }
 0xd4b   :  { %1538 = vadd.xlane.f32.xlu2 %v1537_v20 }
 0xd50   :  { %v3535_v23 = vpop.f32.mrf.mxu0 }
 0xd58   :  { %v1610_v31 = vpop.f32.mrf.mxu0 }
 0xd59   :  { %v1611_v35 = vadd.f32 %v3492_v11, %v1610_v31  ;;  %v1540_v11 = vsel %vm407_vm8, %v2800_v0, 0.0 }
 0xd5b   :  { %v1615_v37 = vsel %vm407_vm8, %v1611_v35, -inf }
 0xd5c   :  { %1616 = vmax.xlane.f32.xlu1 %v1615_v37 }
 0xd60   :  { %v1612_v39 = vpop.f32.mrf.mxu0 }
 0xd61   :  { %v1613_v40 = vadd.f32 %v3499_v25, %v1612_v39 }
 0xd63   :  { %v1618_v42 = vsel %vm407_vm8, %v1613_v40, -inf }
 0xd64   :  { %1432 = vadd.xlane.f32.xlu1 %v1431_v41  ;;  %1619 = vmax.xlane.f32.xlu0 %v1618_v42  ;;  %v1681_v41 = vperm.slane %v3564_v38, 0 }
 0xd6c   :  { %1541 = vadd.xlane.f32.xlu1 %v1540_v11 }
 0xd78   :  { %1440 = vrot.lane.b32.xlu0 %v3484_v10, %s2921_s30 }
 0xd80   :  { %1638 = vrot.lane.b32.xlu0 %v3484_v10, %s2923_s11 }
 0xdb6   :  { %v1430_v50 = vpop.xlane.xlu2 %1429 }
 0xdbe   :  { %v1539_v61 = vpop.xlane.xlu2 %1538 }
 0xdcf   :  { %v1617_v43 = vpop.xlane.xlu1 %1616 }
 0xdd0   :  { %v1621_v52 = vsub.f32 %v1611_v35, %v1617_v43 }
 0xdd2   :  { %v1623_v25 = vmul.f32 1.442695, %v1621_v52 }
 0xdd4   :  { %2801 = vpow2.f32 %v1623_v25 }
 0xdd7   :  { %v1620_v45 = vpop.xlane.xlu0 %1619  ;;  %v1433_v49 = vpop.xlane.xlu1 %1432 }
 0xdd8   :  { %v1622_v46 = vsub.f32 %v1613_v40, %v1620_v45 }
 0xdda   :  { %v2802_v53 = vpop.eup %2801  ;;  %v1625_v47 = vmul.f32 1.442695, %v1622_v46 }
 0xddb   :  { %v1627_v48 = vsel %vm407_vm8, %v2802_v53, 0.0 }
 0xddc   :  { %2803 = vpow2.f32 %v1625_v47  ;;  %1628 = vadd.xlane.f32.xlu2 %v1627_v48 }
 0xddd   :  { %2805 = vrcp.f32 %v1433_v49 }
 0xdde   :  { %2807 = vrcp.f32 %v1430_v50 }
 0xddf   :  { %v1542_v9 = vpop.xlane.xlu1 %1541 }
 0xde0   :  { %2809 = vrcp.f32 %v1542_v9  ;;  %v2670_v9 = vld [vmem:[#allocation4 + $0x88] sm:$0xff] }
 0xde1   :  { %2811 = vrcp.f32 %v1539_v61  ;;  %v2671_v61 = vld [vmem:[#allocation4 + $0x90] sm:$0xff] }
 0xde2   :  { %v2804_v51 = vpop.eup %2803 }
 0xde3   :  { %v1630_v54 = vsel %vm407_vm8, %v2804_v51, 0.0  ;;  %v2806_v7 = vpop.eup %2805 }
 0xde4   :  { %1631 = vadd.xlane.f32.xlu1 %v1630_v54  ;;  %v2808_v28 = vpop.eup %2807  ;;  %v1437_v55 = vmul.f32 %v2806_v7, %v2798_v60 }
 0xde5   :  { %v1436_v56 = vmul.f32 %v2808_v28, %v2794_v15  ;;  %v1078_v15 = vld [vmem:[#allocation2 + $0x48] sm:$0xf] }
 0xde6   :  { %v2810_v32 = vpop.eup %2809  ;;  %v1573_v17 = vsel %vm524_vm9, %v1078_v15, 0 }
 0xde7   :  { %v1438_v57 = vpack.c.bf16 %v1437_v55, %v1436_v56  ;;  %v2812_v44 = vpop.eup %2811  ;;  %v1546_v19 = vmul.f32 %v2810_v32, %v2800_v0  ;;  %1582 = vmatpush.bf16.msra.mxu3 %v1573_v17  ;;  %v2676_v56 = vld [vmem:[#allocation4 + $0xb8] sm:$0xff] }
 0xde8   :  { %v1545_v1 = vmul.f32 %v2812_v44, %v3529_v18  ;;  %v1079_v18 = vld [vmem:[#allocation2 + $0x4c] sm:$0xf]  ;;  %v2669_v44 = vld [vmem:[#allocation4 + $0x80] sm:$0xff] }
 0xde9   :  { %v1663_v20 = vsel %vm524_vm9, %v1079_v18, 0  ;;  %v1728_v18 = vperm.slane %v3564_v38, 1 }
 0xdea   :  { %v1441_v12 = vpop.permute.xlu0 %1440  ;;  %v1547_v27 = vpack.c.bf16 %v1546_v19, %v1545_v1 }
 0xdeb   :  { %1453 = vmatpush.bf16.msrb.mxu2 %v1441_v12  ;;  %v2674_v12 = vld [vmem:[#allocation4 + $0xa8] sm:$0xff] }
 0xdee   :  { %2490 = vmatmul.msk.bf16.vlgmr.msrb.gmra.mxu2 %vm407_vm8, %v1438_v57  ;;  %v2673_v57 = vld [vmem:[#allocation4 + $0xa0] sm:$0xff] }
 0xdf2   :  { %v1639_v58 = vpop.permute.xlu0 %1638 }
 0xdf3   :  { %1651 = vmatpush.bf16.msra.mxu1 %v1639_v58  ;;  %v2672_v58 = vld [vmem:[#allocation4 + $0x98] sm:$0xff] }
 0xdf4   :  { %1548 = vrot.lane.b32.xlu2 %v3484_v10, %s2922_s10 }
 0xe4f   :  { %v1629_v63 = vpop.xlane.xlu2 %1628 }
 0xe50   :  { %2813 = vrcp.f32 %v1629_v63 }
 0xe56   :  { %v2814_v10 = vpop.eup %2813 }
 0xe57   :  { %v1632_v2 = vpop.xlane.xlu1 %1631  ;;  %v1549_v24 = vpop.permute.xlu2 %1548  ;;  %v1635_v6 = vmul.f32 %v2814_v10, %v2802_v53 }
 0xe58   :  { %2815 = vrcp.f32 %v1632_v2  ;;  %1561 = vmatpush.bf16.msra.mxu2 %v1549_v24 }
 0xe5b   :  { %2494 = vmatmul.msk.bf16.vlgmr.msra.gmra.mxu2 %vm407_vm8, %v1547_v27 }
 0xe5c   :  { %1672 = vmatpush.bf16.msrb.mxu2 %v1663_v20 }
 0xe5e   :  { %v2816_v16 = vpop.eup %2815 }
 0xe5f   :  { %v1636_v8 = vmul.f32 %v2816_v16, %v2804_v51 }
 0xe61   :  { %v1637_v59 = vpack.c.bf16 %v1636_v8, %v1635_v6 }
 0xe63   :  { %2497 = vmatmul.msk.bf16.vlgmr.msra.gmra.mxu1 %vm407_vm8, %v1637_v59 }
 0xe71   :  { %v1455_v33 = vpop.f32.mrf.mxu2 }
 0xe79   :  { %v1457_v13 = vpop.f32.mrf.mxu2 }
 0xe7a   :  { %v1460_v14 = vpack.c.bf16 %v1457_v13, %v1455_v33 }
 0xe7c   :  { %2491 = vmatmul.msk.bf16.vlgmr.msrb.gmra.mxu3 %vm386_vm7, %v1460_v14 }
 0xe7d   :  { %1784 = vmatpush.bf16.msrb.mxu3 %v2676_v56 }
 0xede   :  { %v1563_v21 = vpop.f32.mrf.mxu2 }
 0xee0   :  { %v1653_v26 = vpop.f32.mrf.mxu1 }
 0xee6   :  { %v1565_v29 = vpop.f32.mrf.mxu2 }
 0xee7   :  { %v1568_v30 = vpack.c.bf16 %v1565_v29, %v1563_v21 }
 0xee8   :  { %v1655_v31 = vpop.f32.mrf.mxu1 }
 0xee9   :  { %v1658_v35 = vpack.c.bf16 %v1655_v31, %v1653_v26  ;;  %2495 = vmatmul.msk.bf16.vlgmr.msra.gmra.mxu3 %vm386_vm7, %v1568_v30  ;;  %v1731_v30 = vperm.slane %v3564_v38, 2 }
 0xeeb   :  { %2498 = vmatmul.msk.bf16.vlgmr.msrb.gmra.mxu2 %vm386_vm7, %v1658_v35 }
 0xeff   :  { %v1476_v36 = vpop.f32.mrf.mxu3 }
 0xf00   :  { %v1497_v60 = vadd.f32 %v3531_v22, %v1476_v36 }
 0xf07   :  { %v1478_v37 = vpop.f32.mrf.mxu3 }
 0xf08   :  { %v1499_v43 = vadd.f32 %v3535_v23, %v1478_v37 }
 0xf6c   :  { %v1584_v39 = vpop.f32.mrf.mxu3 }
 0xf6d   :  { %v1589_v40 = vadd.f32 %v1584_v39, %v1497_v60  ;;  %v1735_v60 = vperm.slane %v3564_v38, 3 }
 0xf6e   :  { %v1674_v42 = vpop.f32.mrf.mxu2 }
 0xf6f   :  { %v1679_v0 = vadd.f32 %v1674_v42, %v1589_v40 }
 0xf71   :  { %v1682_v11 = vadd.f32 %v1681_v41, %v1679_v0 }
 0xf73   :  { %v1684_v52 = vadd.f32 %v1682_v11, %v3475_v62 }
 0xf74   :  { %v1586_v25 = vpop.f32.mrf.mxu3 }
 0xf75   :  { %v1590_v45 = vadd.f32 %v1586_v25, %v1499_v43  ;;  %1686 = vadd.xlane.f32.xlu1 %v1684_v52 }
 0xf76   :  { %v1676_v46 = vpop.f32.mrf.mxu2 }
 0xf77   :  { %v1680_v53 = vadd.f32 %v1676_v46, %v1590_v45 }
 0xf79   :  { %v1683_v47 = vadd.f32 %v1681_v41, %v1680_v53 }
 0xf7b   :  { %v1685_v48 = vadd.f32 %v1683_v47, %v3477_v34  ;;  %v2675_v34 = vld [vmem:[#allocation4 + $0xb0] sm:$0xff] }
 0xf7c   :  { %1785 = vmatpush.bf16.msrb.mxu3 %v2675_v34 }
 0xf7d   :  { %1688 = vadd.xlane.f32.xlu0 %v1685_v48 }
 0xf80   :  { %1786 = vmatpush.bf16.msrb.mxu3 %v2674_v12 }
 0xf84   :  { %1787 = vmatpush.bf16.msrb.mxu3 %v2673_v57 }
 0xf88   :  { %1788 = vmatpush.bf16.msrb.mxu3 %v2672_v58 }
 0xf8c   :  { %1789 = vmatpush.bf16.msrb.mxu3 %v2671_v61 }
 0xf90   :  { %1790 = vmatpush.bf16.msrb.mxu3 %v2670_v9  ;;  %v2684_v9 = vld [vmem:[#allocation4 + $0xf8] sm:$0xff] }
 0xf91   :  { %1948 = vmatpush.bf16.msra.mxu0 %v2684_v9 }
 0xf94   :  { %1791 = vmatpush.bf16.msrb.mxu3 %v2669_v44 }
 0xfe8   :  { %v1687_v22 = vpop.xlane.xlu1 %1686 }
 0xfe9   :  { %v1690_v49 = vmul.f32 0.03125, %v1687_v22 }
 0xfeb   :  { %v1692_v50 = vsub.f32 %v1684_v52, %v1690_v49 }
 0xfed   :  { %v1694_v51 = vsel %vm87_vm0, %v1692_v50, 0.0 }
 0xfee   :  { %v1696_v54 = vmul.f32 %v1694_v51, %v1694_v51 }
 0xff0   :  { %1698 = vadd.xlane.f32.xlu1 %v1696_v54  ;;  %v1689_v23 = vpop.xlane.xlu0 %1688 }
 0xff1   :  { %v1691_v7 = vmul.f32 0.03125, %v1689_v23 }
 0xff3   :  { %v1693_v62 = vsub.f32 %v1685_v48, %v1691_v7 }
 0xff5   :  { %v1695_v28 = vsel %vm87_vm0, %v1693_v62, 0.0 }
 0xff6   :  { %v1697_v55 = vmul.f32 %v1695_v28, %v1695_v28 }
 0xff8   :  { %1700 = vadd.xlane.f32.xlu1 %v1697_v55 }
0x1063   :  { %v1699_v63 = vpop.xlane.xlu1 %1698 }
0x1064   :  { %v1702_v32 = vmul.f32 0.03125, %v1699_v63 }
0x1066   :  { %v1704_v19 = vadd.f32 1e-12, %v1702_v32 }
0x1068   :  { %2817 = vrsqrt.f32 %v1704_v19  ;;  %vm1712_vm8 = vweird.f32 %v1704_v19 }
0x106b   :  { %v1701_v1 = vpop.xlane.xlu1 %1700 }
0x106c   :  { %v1703_v2 = vmul.f32 0.03125, %v1701_v1 }
0x106e   :  { %v2818_v24 = vpop.eup %2817  ;;  %v1705_v4 = vadd.f32 1e-12, %v1703_v2  ;;  %v2683_v2 = vld [vmem:[#allocation4 + $0xf0] sm:$0xff] }
0x106f   :  { %v1707_v27 = vmul.f32 %v2818_v24, %v1704_v19  ;;  %vm1713_vm7 = vweird.f32 %v2818_v24  ;;  %1949 = vmatpush.bf16.msra.mxu0 %v2683_v2 }
0x1070   :  { %2819 = vrsqrt.f32 %v1705_v4  ;;  %vm1714_vm9 = vmor %vm1712_vm8, %vm1713_vm7  ;;  %vm1722_vm6 = vweird.f32 %v1705_v4 }
0x1071   :  { %v1708_v5 = vmul.f32 %v2818_v24, %v1707_v27 }
0x1073   :  { %v1709_v10 = vmul.f32 0.5, %v1708_v5 }
0x1075   :  { %v1710_v16 = vsub.f32 1.5, %v1709_v10 }
0x1076   :  { %v2820_v6 = vpop.eup %2819 }
0x1077   :  { %v1711_v8 = vmul.f32 %v2818_v24, %v1710_v16  ;;  %v1717_v59 = vmul.f32 %v2820_v6, %v1705_v4  ;;  %vm1723_vm5 = vweird.f32 %v2820_v6  ;;  %v2682_v16 = vld [vmem:[#allocation4 + $0xe8] sm:$0xff] }
0x1078   :  { %vm1724_vm10 = vmor %vm1722_vm6, %vm1723_vm5  ;;  %1950 = vmatpush.bf16.msra.mxu0 %v2682_v16 }
0x1079   :  { %v1718_v33 = vmul.f32 %v2820_v6, %v1717_v59  ;;  %v1715_v13 = vsel %vm1714_vm9, %v2818_v24, %v1711_v8 }
0x107a   :  { %v1726_v17 = vmul.f32 %v1715_v13, %v1694_v51  ;;  %v2681_v13 = vld [vmem:[#allocation4 + $0xe0] sm:$0xff] }
0x107b   :  { %v1719_v14 = vmul.f32 0.5, %v1718_v33 }
0x107c   :  { %v1729_v29 = vmul.f32 %v1728_v18, %v1726_v17  ;;  %1951 = vmatpush.bf16.msra.mxu0 %v2681_v13 }
0x107d   :  { %v1720_v15 = vsub.f32 1.5, %v1719_v14 }
0x107e   :  { %v3577_v35 = vadd.f32 %v1731_v30, %v1729_v29 }
0x107f   :  { %v1721_v20 = vmul.f32 %v2820_v6, %v1720_v15 }
0x1081   :  { %v1725_v21 = vsel %vm1724_vm10, %v2820_v6, %v1721_v20  ;;  %v2680_v20 = vld [vmem:[#allocation4 + $0xd8] sm:$0xff] }
0x1082   :  { %v1727_v26 = vmul.f32 %v1725_v21, %v1695_v28  ;;  %1952 = vmatpush.bf16.msra.mxu0 %v2680_v20 }
0x1084   :  { %v1730_v31 = vmul.f32 %v1728_v18, %v1727_v26 }
0x1086   :  { %v3579_v36 = vadd.f32 %v1731_v30, %v1730_v31  ;;  %v2679_v31 = vld [vmem:[#allocation4 + $0xd0] sm:$0xff] }
0x1087   :  { %1953 = vmatpush.bf16.msra.mxu0 %v2679_v31  ;;  %v2716_v31 = vld [vmem:[#allocation6 + $0x38] sm:$0xff] }
0x1088   :  { %v1734_v37 = vpack.c.bf16 %v3579_v36, %v3577_v35  ;;  %2078 = vmatpush.bf16.msrb.mxu1 %v2716_v31 }
0x108a   :  { %1792 = vmatmul.bf16.vlgmr.msrb.gmra.mxu3 %v1734_v37 }
0x110d   :  { %v1793_v39 = vpop.f32.mrf.mxu3 }
0x110e   :  { %v3584_v40 = vadd.f32 %v1793_v39, %v1735_v60 }
0x1110   :  { %v3587_v41 = vmul.f32 0.70710677, %v3584_v40 }
0x1112   :  { %v3590_v42 = vand.u32 2147483647, %v3587_v41  ;;  %vm1886_vm4 = vcmp.ge.f32.partialorder %v3587_v41, 0.0  ;;  %v1899_v41 = vperm.slane %v3564_v38, 4 }
0x1114   :  { %v1804_v0 = vmul.f32 0.5, %v3590_v42 }
0x1115   :  { %v1795_v11 = vpop.f32.mrf.mxu3 }
0x1116   :  { %v1806_v43 = vadd.f32 1.0, %v1804_v0  ;;  %v3593_v52 = vadd.f32 %v1795_v11, %v1735_v60  ;;  %v2678_v11 = vld [vmem:[#allocation4 + $0xc8] sm:$0xff] }
0x1117   :  { %1954 = vmatpush.bf16.msra.mxu0 %v2678_v11  ;;  %v2710_v11 = vld [vmem:[#allocation6 + $0x8] sm:$0xff] }
0x1118   :  { %2821 = vrcp.f32 %v1806_v43  ;;  %v3596_v25 = vmul.f32 0.70710677, %v3593_v52  ;;  %v1819_v49 = vand.u32 2147483648, %v1806_v43  ;;  %v1817_v51 = vand.u32 2147483647, %v1806_v43 }
0x1119   :  { %vm1813_vm12 = vweird.f32 %v1806_v43 }
0x111a   :  { %v3599_v45 = vand.u32 2147483647, %v3596_v25  ;;  %v1820_v23 = vor.u32 1.1754944e-38, %v1819_v49  ;;  %vm1818_vm14 = vcmp.eq.f32.partialorder %v1817_v51, 8.507059e+37  ;;  %vm1887_vm7 = vcmp.ge.f32.partialorder %v3596_v25, 0.0 }
0x111c   :  { %v1805_v46 = vmul.f32 0.5, %v3599_v45 }
0x111e   :  { %v2822_v53 = vpop.eup %2821  ;;  %v1807_v48 = vadd.f32 1.0, %v1805_v46 }
0x111f   :  { %v1809_v47 = vmul.f32 %v2822_v53, %v1806_v43  ;;  %vm1814_vm11 = vweird.f32 %v2822_v53 }
0x1120   :  { %2823 = vrcp.f32 %v1807_v48  ;;  %vm1815_vm13 = vmor %vm1813_vm12, %vm1814_vm11  ;;  %v1834_v57 = vand.u32 2147483648, %v1807_v48  ;;  %v1832_v61 = vand.u32 2147483647, %v1807_v48  ;;  %vm1828_vm1 = vweird.f32 %v1807_v48 }
0x1121   :  { %v1810_v22 = vsub.f32 1.0, %v1809_v47  ;;  %v1874_v47 = vsub.f32 0.0, %v3590_v42 }
0x1122   :  { %v1835_v19 = vor.u32 1.1754944e-38, %v1834_v57  ;;  %vm1833_vm3 = vcmp.eq.f32.partialorder %v1832_v61, 8.507059e+37 }
0x1123   :  { %v1811_v50 = vmul.f32 %v2822_v53, %v1810_v22  ;;  %v2677_v22 = vld [vmem:[#allocation4 + $0xc0] sm:$0xff] }
0x1124   :  { %1955 = vmatpush.bf16.msra.mxu0 %v2677_v22 }
0x1125   :  { %v1812_v54 = vadd.f32 %v2822_v53, %v1811_v50 }
0x1126   :  { %v2824_v7 = vpop.eup %2823 }
0x1127   :  { %v1816_v62 = vsel %vm1815_vm13, %v2822_v53, %v1812_v54  ;;  %v1824_v55 = vmul.f32 %v2824_v7, %v1807_v48  ;;  %vm1829_vm15 = vweird.f32 %v2824_v7  ;;  %v1876_v54 = vmul.f32 %v1874_v47, %v3590_v42  ;;  %v2724_v47 = vld [vmem:[#allocation6 + $0x78] sm:$0xff] }
0x1128   :  { %v3602_v28 = vsel %vm1818_vm14, %v1820_v23, %v1816_v62  ;;  %vm1830_vm2 = vmor %vm1828_vm1, %vm1829_vm15  ;;  %2161 = vmatpush.bf16.msra.mxu2 %v2724_v47 }
0x1129   :  { %v1838_v56 = vmul.f32 0.17087276, %v3602_v28  ;;  %v1825_v34 = vsub.f32 1.0, %v1824_v55 }
0x112b   :  { %v1840_v12 = vadd.f32 -0.82215226, %v1838_v56  ;;  %v1826_v58 = vmul.f32 %v2824_v7, %v1825_v34  ;;  %v1875_v34 = vsub.f32 0.0, %v3599_v45 }
0x112d   :  { %v1842_v63 = vmul.f32 %v1840_v12, %v3602_v28  ;;  %v1827_v32 = vadd.f32 %v2824_v7, %v1826_v58  ;;  %v1877_v58 = vmul.f32 %v1875_v34, %v3599_v45 }
0x112f   :  { %v1844_v44 = vadd.f32 1.4885159, %v1842_v63  ;;  %v1831_v1 = vsel %vm1830_vm2, %v2824_v7, %v1827_v32 }
0x1130   :  { %v3607_v4 = vsel %vm1833_vm3, %v1835_v19, %v1831_v1  ;;  %v1798_v1 = vmul.f32 0.5, %v3584_v40 }
0x1131   :  { %v1846_v24 = vmul.f32 %v1844_v44, %v3602_v28  ;;  %v1839_v27 = vmul.f32 0.17087276, %v3607_v4 }
0x1133   :  { %v1848_v5 = vadd.f32 -1.135204, %v1846_v24  ;;  %v1841_v10 = vadd.f32 -0.82215226, %v1839_v27 }
0x1135   :  { %v1850_v6 = vmul.f32 %v1848_v5, %v3602_v28  ;;  %v1843_v8 = vmul.f32 %v1841_v10, %v3607_v4 }
0x1137   :  { %v1852_v59 = vadd.f32 0.27886808, %v1850_v6  ;;  %v1845_v33 = vadd.f32 1.4885159, %v1843_v8 }
0x1139   :  { %v1854_v14 = vmul.f32 %v1852_v59, %v3602_v28  ;;  %v1847_v15 = vmul.f32 %v1845_v33, %v3607_v4 }
0x113b   :  { %v1856_v17 = vadd.f32 -0.18628806, %v1854_v14  ;;  %v1849_v18 = vadd.f32 -1.135204, %v1847_v15 }
0x113d   :  { %v1858_v21 = vmul.f32 %v1856_v17, %v3602_v28  ;;  %v1851_v26 = vmul.f32 %v1849_v18, %v3607_v4 }
0x113f   :  { %v1860_v29 = vadd.f32 0.09678418, %v1858_v21  ;;  %v1853_v30 = vadd.f32 0.27886808, %v1851_v26 }
0x1141   :  { %v1862_v37 = vmul.f32 %v1860_v29, %v3602_v28  ;;  %v1855_v60 = vmul.f32 %v1853_v30, %v3607_v4 }
0x1143   :  { %v1864_v39 = vadd.f32 0.37409195, %v1862_v37  ;;  %v1857_v0 = vadd.f32 -0.18628806, %v1855_v60  ;;  %v2714_v37 = vld [vmem:[#allocation6 + $0x28] sm:$0xff]  ;;  %v2713_v60 = vld [vmem:[#allocation6 + $0x20] sm:$0xff] }
0x1145   :  { %v1866_v43 = vmul.f32 %v1864_v39, %v3602_v28  ;;  %v1859_v46 = vmul.f32 %v1857_v0, %v3607_v4  ;;  %v2712_v39 = vld [vmem:[#allocation6 + $0x18] sm:$0xff]  ;;  %v2711_v0 = vld [vmem:[#allocation6 + $0x10] sm:$0xff] }
0x1147   :  { %v1868_v53 = vadd.f32 1.0000237, %v1866_v43  ;;  %v1861_v48 = vadd.f32 0.09678418, %v1859_v46 }
0x1149   :  { %v1870_v49 = vmul.f32 %v1868_v53, %v3602_v28  ;;  %v1863_v50 = vmul.f32 %v1861_v48, %v3607_v4 }
0x114b   :  { %v1872_v51 = vadd.f32 -1.2655122, %v1870_v49  ;;  %v1865_v23 = vadd.f32 0.37409195, %v1863_v50  ;;  %v2723_v49 = vld [vmem:[#allocation6 + $0x70] sm:$0xff] }
0x114c   :  { %2162 = vmatpush.bf16.msra.mxu2 %v2723_v49 }
0x114d   :  { %v1878_v7 = vadd.f32 %v1876_v54, %v1872_v51  ;;  %v1867_v62 = vmul.f32 %v1865_v23, %v3607_v4  ;;  %v2722_v23 = vld [vmem:[#allocation6 + $0x68] sm:$0xff] }
0x114f   :  { %v1880_v55 = vmul.f32 1.442695, %v1878_v7  ;;  %v1869_v56 = vadd.f32 1.0000237, %v1867_v62 }
0x1150   :  { %2163 = vmatpush.bf16.msra.mxu2 %v2722_v23 }
0x1151   :  { %2825 = vpow2.f32 %v1880_v55  ;;  %v1871_v12 = vmul.f32 %v1869_v56, %v3607_v4 }
0x1153   :  { %v1873_v57 = vadd.f32 -1.2655122, %v1871_v12 }
0x1155   :  { %v1879_v61 = vadd.f32 %v1877_v58, %v1873_v57 }
0x1157   :  { %v2826_v9 = vpop.eup %2825  ;;  %v1882_v32 = vmul.f32 1.442695, %v1879_v61 }
0x1158   :  { %v1884_v63 = vmul.f32 %v2826_v9, %v3602_v28  ;;  %v1799_v28 = vmul.f32 0.5, %v3593_v52 }
0x1159   :  { %2827 = vpow2.f32 %v1882_v32  ;;  %v2006_v32 = vperm.slane %v3564_v38, 5 }
0x115a   :  { %v1888_v42 = vsub.f32 1.0, %v1884_v63  ;;  %v2531_v44 = vadd.f32 -1.0, %v1884_v63 }
0x115c   :  { %v1892_v19 = vsel %vm1886_vm4, %v1888_v42, %v2531_v44 }
0x115d   :  { %v1894_v2 = vadd.f32 1.0, %v1892_v19 }
0x115f   :  { %v1896_v24 = vmul.f32 %v1894_v2, %v1798_v1  ;;  %v2828_v27 = vpop.eup %2827  ;;  %v2009_v2 = vperm.slane %v3564_v38, 6  ;;  %v2839_v38 = vld [vmem:[%s3660_s8] sm:$0xff] }
0x1160   :  { %v1885_v5 = vmul.f32 %v2828_v27, %v3607_v4 }
0x1162   :  { %v1889_v10 = vsub.f32 1.0, %v1885_v5  ;;  %v2532_v45 = vadd.f32 -1.0, %v1885_v5 }
0x1164   :  { %v1893_v16 = vsel %vm1887_vm7, %v1889_v10, %v2532_v45  ;;  %v2721_v45 = vld [vmem:[#allocation6 + $0x60] sm:$0xff] }
0x1165   :  { %v1895_v6 = vadd.f32 1.0, %v1893_v16  ;;  %2164 = vmatpush.bf16.msra.mxu2 %v2721_v45  ;;  %v2720_v16 = vld [vmem:[#allocation6 + $0x58] sm:$0xff] }
0x1167   :  { %v1897_v8 = vmul.f32 %v1895_v6, %v1799_v28  ;;  %v2719_v28 = vld [vmem:[#allocation6 + $0x50] sm:$0xff]  ;;  %v2718_v6 = vld [vmem:[#allocation6 + $0x48] sm:$0xff] }
0x1169   :  { %v1898_v59 = vpack.c.bf16 %v1897_v8, %v1896_v24  ;;  %2165 = vmatpush.bf16.msra.mxu2 %v2720_v16  ;;  %v2717_v8 = vld [vmem:[#allocation6 + $0x40] sm:$0xff] }
0x116b   :  { %1956 = vmatmul.bf16.vlgmr.msra.gmra.mxu0 %v1898_v59 }
0x116d   :  { %2166 = vmatpush.bf16.msra.mxu2 %v2719_v28 }
0x1171   :  { %2167 = vmatpush.bf16.msra.mxu2 %v2718_v6 }
0x1175   :  { %2168 = vmatpush.bf16.msra.mxu2 %v2717_v8 }
0x11e8   :  { %v1957_v33 = vpop.f32.mrf.mxu0 }
0x11e9   :  { %v1958_v40 = vadd.f32 %v1957_v33, %v1899_v41 }
0x11eb   :  { %v1962_v13 = vadd.f32 %v1958_v40, %v3577_v35 }
0x11ed   :  { %1964 = vadd.xlane.f32.xlu2 %v1962_v13 }
0x11f0   :  { %v1959_v14 = vpop.f32.mrf.mxu0 }
0x11f1   :  { %v1960_v4 = vadd.f32 %v1959_v14, %v1899_v41  ;;  %v2029_v41 = vperm.slane %v2839_v38, 2 }
0x11f3   :  { %v1963_v15 = vadd.f32 %v1960_v4, %v3579_v36  ;;  %v2715_v36 = vld [vmem:[#allocation6 + $0x30] sm:$0xff] }
0x11f4   :  { %2079 = vmatpush.bf16.msrb.mxu1 %v2715_v36 }
0x11f5   :  { %1966 = vadd.xlane.f32.xlu1 %v1963_v15 }
0x11f8   :  { %2080 = vmatpush.bf16.msrb.mxu1 %v2714_v37 }
0x11fc   :  { %2081 = vmatpush.bf16.msrb.mxu1 %v2713_v60 }
0x1200   :  { %2082 = vmatpush.bf16.msrb.mxu1 %v2712_v39 }
0x1204   :  { %2083 = vmatpush.bf16.msrb.mxu1 %v2711_v0 }
0x1208   :  { %2084 = vmatpush.bf16.msrb.mxu1 %v2710_v11 }
0x120c   :  { %2085 = vmatpush.bf16.msrb.mxu1 %v2709_v3 }
0x1260   :  { %v1965_v25 = vpop.xlane.xlu2 %1964 }
0x1261   :  { %v1968_v17 = vmul.f32 0.03125, %v1965_v25  ;;  %v2112_v25 = vperm.slane %v2839_v38, 3 }
0x1263   :  { %v1970_v18 = vsub.f32 %v1962_v13, %v1968_v17 }
0x1265   :  { %v1972_v52 = vsel %vm87_vm0, %v1970_v18, 0.0 }
0x1266   :  { %v1974_v20 = vmul.f32 %v1972_v52, %v1972_v52 }
0x1268   :  { %v1967_v21 = vpop.xlane.xlu1 %1966  ;;  %1976 = vadd.xlane.f32.xlu1 %v1974_v20 }
0x1269   :  { %v1969_v26 = vmul.f32 0.03125, %v1967_v21 }
0x126b   :  { %v1971_v29 = vsub.f32 %v1963_v15, %v1969_v26 }
0x126d   :  { %v1973_v35 = vsel %vm87_vm0, %v1971_v29, 0.0 }
0x126e   :  { %v1975_v30 = vmul.f32 %v1973_v35, %v1973_v35 }
0x1270   :  { %1978 = vadd.xlane.f32.xlu1 %v1975_v30 }
0x12db   :  { %v1977_v43 = vpop.xlane.xlu1 %1976 }
0x12dc   :  { %v1980_v46 = vmul.f32 0.03125, %v1977_v43 }
0x12de   :  { %v1982_v53 = vadd.f32 1e-12, %v1980_v46 }
0x12e0   :  { %2829 = vrsqrt.f32 %v1982_v53  ;;  %vm1990_vm8 = vweird.f32 %v1982_v53 }
0x12e3   :  { %v1979_v48 = vpop.xlane.xlu1 %1978 }
0x12e4   :  { %v1981_v22 = vmul.f32 0.03125, %v1979_v48 }
0x12e6   :  { %v2830_v50 = vpop.eup %2829  ;;  %v1983_v51 = vadd.f32 1e-12, %v1981_v22 }
0x12e7   :  { %v1985_v54 = vmul.f32 %v2830_v50, %v1982_v53  ;;  %vm1991_vm0 = vweird.f32 %v2830_v50 }
0x12e8   :  { %2831 = vrsqrt.f32 %v1983_v51  ;;  %vm1992_vm9 = vmor %vm1990_vm8, %vm1991_vm0  ;;  %vm2000_vm6 = vweird.f32 %v1983_v51 }
0x12e9   :  { %v1986_v7 = vmul.f32 %v2830_v50, %v1985_v54 }
0x12eb   :  { %v1987_v62 = vmul.f32 0.5, %v1986_v7 }
0x12ed   :  { %v1988_v55 = vsub.f32 1.5, %v1987_v62 }
0x12ee   :  { %v2832_v56 = vpop.eup %2831 }
0x12ef   :  { %v1989_v34 = vmul.f32 %v2830_v50, %v1988_v55  ;;  %v1995_v12 = vmul.f32 %v2832_v56, %v1983_v51  ;;  %vm2001_vm5 = vweird.f32 %v2832_v56 }
0x12f0   :  { %vm2002_vm10 = vmor %vm2000_vm6, %vm2001_vm5 }
0x12f1   :  { %v1996_v57 = vmul.f32 %v2832_v56, %v1995_v12  ;;  %v1993_v58 = vsel %vm1992_vm9, %v2830_v50, %v1989_v34 }
0x12f2   :  { %v2004_v63 = vmul.f32 %v1993_v58, %v1972_v52 }
0x12f3   :  { %v1997_v61 = vmul.f32 0.5, %v1996_v57 }
0x12f4   :  { %v2007_v1 = vmul.f32 %v2006_v32, %v2004_v63 }
0x12f5   :  { %v1998_v9 = vsub.f32 1.5, %v1997_v61 }
0x12f6   :  { %v2010_v27 = vadd.f32 %v2009_v2, %v2007_v1 }
0x12f7   :  { %v1999_v42 = vmul.f32 %v2832_v56, %v1998_v9 }
0x12f9   :  { %v2003_v44 = vsel %vm2002_vm10, %v2832_v56, %v1999_v42 }
0x12fa   :  { %v2005_v19 = vmul.f32 %v2003_v44, %v1973_v35 }
0x12fc   :  { %v2008_v24 = vmul.f32 %v2006_v32, %v2005_v19 }
0x12fe   :  { %v2011_v5 = vadd.f32 %v2009_v2, %v2008_v24 }
0x1300   :  { %v2028_v10 = vpack.c.bf16 %v2011_v5, %v2010_v27 }
0x1302   :  { %2086 = vmatmul.bf16.vlgmr.msrb.gmra.mxu1 %v2028_v10 }
0x137f   :  { %v2087_v59 = vpop.f32.mrf.mxu1 }
0x1380   :  { %v2088_v33 = vadd.f32 %v2087_v59, %v2029_v41 }
0x1382   :  { %2833 = vtanh.f32 %v2088_v33 }
0x1387   :  { %v2089_v40 = vpop.f32.mrf.mxu1 }
0x1388   :  { %v2090_v13 = vadd.f32 %v2089_v40, %v2029_v41  ;;  %v2834_v14 = vpop.eup %2833 }
0x138a   :  { %2835 = vtanh.f32 %v2090_v13 }
0x1390   :  { %v2836_v4 = vpop.eup %2835 }
0x1391   :  { %v2111_v15 = vpack.c.bf16 %v2836_v4, %v2834_v14 }
0x1393   :  { %2169 = vmatmul.bf16.vlgmr.msra.gmra.mxu2 %v2111_v15 }
0x1416   :  { %v2170_v17 = vpop.f32.mrf.mxu2 }
0x1417   :  { %v2171_v18 = vadd.f32 %v2170_v17, %v2112_v25 }
0x1419   :  { %2175 = vst [vmem:[%s3661_s9] sm:$0xff] %v2171_v18 }
0x141e   :  { %v2172_v52 = vpop.f32.mrf.mxu2 }
0x141f   :  { %v2173_v20 = vadd.f32 %v2172_v52, %v2112_v25 }
0x1421   :  { %2176 = vst [vmem:[%s3661_s9 + $0x8] sm:$0xff] %v2173_v20 }
0x1422   :  { %2181 = vsyncpa [#allocation3], 1 }
0x1423   :  { %2182 = vsyncpa [#allocation5], 1 }

</bundles_post_ra>
